<compile_context>
chip_gen: v6e
topology: v6e:2x2x1
jax: 0.10.0
libtpu: 0.0.40
codegen_flags: <defaults>
</compile_context>

<pallas_src>
import functools

import jax
import jax.numpy as jnp
from jax.experimental import pallas as pl
from jax.experimental.pallas import tpu as pltpu


def _round_up(x, m):
    return (x + m - 1) // m * m


# ------------------------ conv matmul (gridded, bf16) ----------------------- #

def _conv_matmul_kernel(x_ref, w_ref, shift_ref, o_ref):
    # out_tile = relu(X_tile @ W + shift)   (BN scale pre-folded into W columns)
    acc = jnp.dot(x_ref[...], w_ref[...], preferred_element_type=jnp.float32)
    o_ref[...] = jnp.maximum(acc + shift_ref[...], 0.0).astype(o_ref.dtype)


def conv_matmul(x, w, shift, *, tm_max=512):
    """relu(x @ w + shift); x:(M,K) bf16, w:(K,N) bf16, shift:(1,N) f32 -> (M,N) bf16."""
    M, K = x.shape
    Kw, N = w.shape
    assert K == Kw
    TM = min(tm_max, _round_up(M, 8))
    M_pad = _round_up(M, TM)
    if M_pad != M:
        x = jnp.pad(x, ((0, M_pad - M), (0, 0)))
    grid = (M_pad // TM,)

    out = pl.pallas_call(
        _conv_matmul_kernel,
        out_shape=jax.ShapeDtypeStruct((M_pad, N), jnp.bfloat16),
        grid_spec=pltpu.PrefetchScalarGridSpec(
            num_scalar_prefetch=0,
            grid=grid,
            in_specs=[
                pl.BlockSpec((TM, K), lambda i: (i, 0)),   # activation tiles stream
                pl.BlockSpec((K, N), lambda i: (0, 0)),    # weights stay resident
                pl.BlockSpec((1, N), lambda i: (0, 0)),    # per-channel shift resident
            ],
            out_specs=pl.BlockSpec((TM, N), lambda i: (i, 0)),
        ),
        compiler_params=pltpu.CompilerParams(
            dimension_semantics=("parallel",),             # split M tiles across TCs
            vmem_limit_bytes=32 * 1024 * 1024,             # safe on v5e/v6e/v7x
        ),
        cost_estimate=pl.CostEstimate(
            flops=2 * M_pad * K * N,
            transcendentals=0,
            bytes_accessed=M_pad * K * x.dtype.itemsize
            + K * N * w.dtype.itemsize
            + M_pad * N * 2,
        ),
    )(x, w, shift)
    return out[:M] if M_pad != M else out


# ------------------- fused FC tail (one kernel, VMEM-resident) -------------- #

def _fc_tail_kernel(flat_ref, act_ref,
                    hw_ref, hb_ref, fw_ref, fb_ref,
                    shz_ref, sha_ref, shb_ref,
                    w1_ref, b1_ref, w2_ref, b2_ref, o_ref):
    f32 = jnp.float32
    # head: Linear(3136, 512) + ReLU
    h = jnp.dot(flat_ref[...], hw_ref[...], preferred_element_type=f32)
    h = jnp.maximum(h + hb_ref[...], 0.0)
    # final: Linear(512, E)
    z = jnp.dot(h.astype(jnp.bfloat16), fw_ref[...], preferred_element_type=f32)
    z = z + fb_ref[...]
    # state_head on cat([z, action]): z @ W_z + action * w_a + b   (rank-1 update)
    h1 = jnp.dot(z, shz_ref[...], preferred_element_type=f32)
    h1 = jnp.maximum(h1 + act_ref[...] * sha_ref[...] + shb_ref[...], 0.0)
    # fc1 + ReLU, fc2
    h2 = jnp.dot(h1, w1_ref[...], preferred_element_type=f32) + b1_ref[...]
    h2 = jnp.maximum(h2, 0.0)
    o_ref[...] = (jnp.dot(h2, w2_ref[...], preferred_element_type=f32)
                  + b2_ref[...]).astype(o_ref.dtype)


def fc_tail(flat, action, kp):
    """flat:(B,3136) bf16 (H,W,C order), action:(B,1) -> (B,E) f32."""
    B = flat.shape[0]
    Bp = _round_up(B, 8)
    if Bp != B:
        flat = jnp.pad(flat, ((0, Bp - B), (0, 0)))
        action = jnp.pad(action, ((0, Bp - B), (0, 0)))
    E = kp["fc2_w"].shape[1]
    vmem = pl.BlockSpec(memory_space=pltpu.MemorySpace.VMEM)
    args = (flat, action.astype(jnp.float32),
            kp["head_w"], kp["head_b"],
            kp["final_w"], kp["final_b"],
            kp["sh_wz"], kp["sh_wa"], kp["sh_b"],
            kp["fc1_w"], kp["fc1_b"],
            kp["fc2_w"], kp["fc2_b"])
    out = pl.pallas_call(
        _fc_tail_kernel,
        out_shape=jax.ShapeDtypeStruct((Bp, E), jnp.float32),
        in_specs=[vmem] * len(args),
        out_specs=vmem,
        compiler_params=pltpu.CompilerParams(vmem_limit_bytes=32 * 1024 * 1024),
    )(*args)
    return out[:B] if Bp != B else out


# ------------------------------- JAX glue (NHWC) ---------------------------- #

def im2col_nhwc(x, kh, kw, stride):
    """x: (B, H, W, C) -> ((B*Ho*Wo, kh*kw*C), Ho, Wo); feature order (kh, kw, C)."""
    B, H, W, C = x.shape
    Ho = (H - kh) // stride + 1
    Wo = (W - kw) // stride + 1
    cols = []
    for i in range(kh):
        for j in range(kw):
            cols.append(x[:, i:i + stride * Ho:stride, j:j + stride * Wo:stride, :])
    col = jnp.stack(cols, axis=3)                       # (B, Ho, Wo, kh*kw, C)
    return col.reshape(B * Ho * Wo, kh * kw * C), Ho, Wo


def conv_bn_relu_nhwc(x, wmat, shift, kh, kw, stride):
    """Conv2d(VALID) + folded eval-BN + ReLU, NHWC in -> NHWC out (bf16)."""
    B = x.shape[0]
    col, Ho, Wo = im2col_nhwc(x, kh, kw, stride)
    y = conv_matmul(col.astype(jnp.bfloat16), wmat, shift)  # (B*Ho*Wo, Cout)
    return y.reshape(B, Ho, Wo, wmat.shape[1])


# --------------------------- parameter creation ------------------------------ #

def _uniform(key, shape, fan_in):
    bound = 1.0 / float(fan_in) ** 0.5
    return jax.random.uniform(key, shape, jnp.float32, -bound, bound)


def init_params(key, num_input_channel=4, encoded_state_size=32):
    """PyTorch-layout parameters (Conv: (Cout,Cin,kh,kw), Linear: (out,in))."""
    ks = jax.random.split(key, 16)
    eps = jnp.float32(1e-5)

    def bn(c):
        return (jnp.ones((c,), jnp.float32), jnp.zeros((c,), jnp.float32),
                jnp.zeros((c,), jnp.float32), jnp.ones((c,), jnp.float32), eps)

    e = encoded_state_size
    p = {}
    p["conv1_w"] = _uniform(ks[0], (32, num_input_channel, 8, 8), num_input_channel * 64)
    p["conv1_b"] = _uniform(ks[1], (32,), num_input_channel * 64)
    p["bn1"] = bn(32)
    p["conv2_w"] = _uniform(ks[2], (64, 32, 4, 4), 32 * 16)
    p["conv2_b"] = _uniform(ks[3], (64,), 32 * 16)
    p["bn2"] = bn(64)
    p["conv3_w"] = _uniform(ks[4], (64, 64, 3, 3), 64 * 9)
    p["conv3_b"] = _uniform(ks[5], (64,), 64 * 9)
    p["bn3"] = bn(64)
    p["head_w"] = _uniform(ks[6], (512, 3136), 3136)
    p["head_b"] = _uniform(ks[7], (512,), 3136)
    p["final_w"] = _uniform(ks[8], (e, 512), 512)
    p["final_b"] = _uniform(ks[9], (e,), 512)
    p["sh_w"] = _uniform(ks[10], (e, e + 1), e + 1)
    p["sh_b"] = _uniform(ks[11], (e,), e + 1)
    p["fc1_w"] = _uniform(ks[12], (e, e), e)
    p["fc1_b"] = _uniform(ks[13], (e,), e)
    p["fc2_w"] = _uniform(ks[14], (e, e), e)
    p["fc2_b"] = _uniform(ks[15], (e,), e)
    return p


def prepare_params(p):
    """One-time fold/permute of PyTorch-layout params into kernel-ready form."""
    def fold_conv(w, b, bn):
        gamma, beta, mean, var, eps = bn
        scale = gamma / jnp.sqrt(var + eps)
        cout, cin, kh, kw = w.shape
        # im2col(NHWC) feature order is (kh, kw, Cin).
        wmat = w.transpose(2, 3, 1, 0).reshape(kh * kw * cin, cout)
        shift = (b - mean) * scale + beta
        return (wmat * scale[None, :]).astype(jnp.bfloat16), \
               shift.reshape(1, cout).astype(jnp.float32)

    kp = {}
    kp["c1_w"], kp["c1_shift"] = fold_conv(p["conv1_w"], p["conv1_b"], p["bn1"])
    kp["c2_w"], kp["c2_shift"] = fold_conv(p["conv2_w"], p["conv2_b"], p["bn2"])
    kp["c3_w"], kp["c3_shift"] = fold_conv(p["conv3_w"], p["conv3_b"], p["bn3"])

    # head: torch flattens NCHW -> (C=64, H=7, W=7); our flat is (H, W, C).
    hw = p["head_w"].reshape(512, 64, 7, 7).transpose(2, 3, 1, 0).reshape(3136, 512)
    kp["head_w"] = hw.astype(jnp.bfloat16)
    kp["head_b"] = p["head_b"].reshape(1, -1)
    kp["final_w"] = p["final_w"].T.astype(jnp.bfloat16)       # (512, E)
    kp["final_b"] = p["final_b"].reshape(1, -1)

    e = p["sh_w"].shape[0]
    kp["sh_wz"] = p["sh_w"][:, :e].T                          # (E, E) — state columns
    kp["sh_wa"] = p["sh_w"][:, e:].T                          # (1, E) — action column
    kp["sh_b"] = p["sh_b"].reshape(1, -1)
    kp["fc1_w"] = p["fc1_w"].T
    kp["fc1_b"] = p["fc1_b"].reshape(1, -1)
    kp["fc2_w"] = p["fc2_w"].T
    kp["fc2_b"] = p["fc2_b"].reshape(1, -1)
    return kp


# ------------------------------ forward pass --------------------------------- #

def predictor_forward(kp, state, action):
    # Single NCHW -> NHWC permute at the boundary; NHWC everywhere after.
    x = state.transpose(0, 2, 3, 1)
    x = conv_bn_relu_nhwc(x, kp["c1_w"], kp["c1_shift"], 8, 8, 4)   # (B,20,20,32)
    x = conv_bn_relu_nhwc(x, kp["c2_w"], kp["c2_shift"], 4, 4, 2)   # (B, 9, 9,64)
    x = conv_bn_relu_nhwc(x, kp["c3_w"], kp["c3_shift"], 3, 3, 1)   # (B, 7, 7,64)
    B = x.shape[0]
    flat = x.reshape(B, -1)                                         # (B, 3136) bf16, (H,W,C)
    # head + final + DynamicsModel fused into one VMEM-resident kernel.
    return fc_tail(flat, action, kp)


if __name__ == "__main__":
    key = jax.random.PRNGKey(0)
    pkey, skey, akey = jax.random.split(key, 3)
    params = init_params(pkey)
    kparams = prepare_params(params)

    # Linear(3136, 512) implies 84x84 Atari frames: 84 -> 20 -> 9 -> 7, 64*7*7 = 3136.
    state = jax.random.normal(skey, (2, 4, 84, 84), jnp.float32)
    action = jax.random.uniform(akey, (2, 1), jnp.float32)

    out = jax.jit(predictor_forward)(kparams, state, action)
    out = jax.block_until_ready(out)
    assert out.shape == (2, 32) and out.dtype == jnp.float32
    print("KERNEL_OK")
</pallas_src>

<mosaic_0001>
module attributes {stable_mosaic.version = 11 : i64} {
  func.func @_conv_matmul_kernel(%arg0: i32, %arg1: memref<512x256xbf16, #tpu.memory_space<vmem>>, %arg2: memref<256x32xbf16, #tpu.memory_space<vmem>>, %arg3: memref<1x32xf32, #tpu.memory_space<vmem>>, %arg4: memref<512x32xbf16, #tpu.memory_space<vmem>>) attributes {dimension_semantics = [#tpu.dimension_semantics<parallel>], iteration_bounds = array<i64: 2>, scalar_prefetch = 0 : i64, scratch_operands = 0 : i64, tpu.core_type = #tpu.core_type<tc>, window_params = [{transform_indices = @transform_0, window_bounds = array<i64: 512, 256>}, {pipeline_mode = #tpu.pipeline_mode<synchronous>, transform_indices = @transform_1, window_bounds = array<i64: 256, 32>}, {pipeline_mode = #tpu.pipeline_mode<synchronous>, transform_indices = @transform_2, window_bounds = array<i64: 1, 32>}, {transform_indices = @transform_3, window_bounds = array<i64: 512, 32>}]} {
    %c0 = arith.constant 0 : index
    %c0_0 = arith.constant 0 : index
    %0 = vector.load %arg1[%c0, %c0_0] : memref<512x256xbf16, #tpu.memory_space<vmem>>, vector<512x256xbf16>
    %c0_1 = arith.constant 0 : index
    %c0_2 = arith.constant 0 : index
    %1 = vector.load %arg2[%c0_1, %c0_2] : memref<256x32xbf16, #tpu.memory_space<vmem>>, vector<256x32xbf16>
    %cst = arith.constant dense<0.000000e+00> : vector<512x32xf32>
    %2 = tpu.matmul %0, %1, %cst {dimension_numbers = #tpu.dot_dimension_numbers<[1], [0], [0], [1], [0, 0, 1, 1], [], []>} : vector<512x256xbf16>, vector<256x32xbf16>, vector<512x32xf32> -> vector<512x32xf32>
    %c0_3 = arith.constant 0 : index
    %c0_4 = arith.constant 0 : index
    %3 = vector.load %arg3[%c0_3, %c0_4] : memref<1x32xf32, #tpu.memory_space<vmem>>, vector<1x32xf32>
    %4 = vector.broadcast %3 : vector<1x32xf32> to vector<512x32xf32>
    %5 = arith.addf %2, %4 : vector<512x32xf32>
    %cst_5 = arith.constant 0.000000e+00 : f32
    %6 = vector.broadcast %cst_5 : f32 to vector<512x32xf32>
    %7 = arith.maximumf %5, %6 : vector<512x32xf32>
    %8 = arith.truncf %7 : vector<512x32xf32> to vector<512x32xbf16>
    %c0_6 = arith.constant 0 : index
    %c0_7 = arith.constant 0 : index
    %9 = vector.load %arg4[%c0_6, %c0_7] : memref<512x32xbf16, #tpu.memory_space<vmem>>, vector<512x32xbf16>
    tpu.vector_store %arg4[%c0_6, %c0_7], %8 {strides = array<i32>} : memref<512x32xbf16, #tpu.memory_space<vmem>>, vector<512x32xbf16>,
    return
  }
  func.func @transform_0(%arg0: i32) -> (i32, i32) {
    %c0_i32 = arith.constant 0 : i32
    %c0_i32_0 = arith.constant 0 : i32
    return %arg0, %c0_i32 : i32, i32
  }
  func.func @transform_1(%arg0: i32) -> (i32, i32) {
    %c0_i32 = arith.constant 0 : i32
    %c0_i32_0 = arith.constant 0 : i32
    %c0_i32_1 = arith.constant 0 : i32
    return %c0_i32, %c0_i32_0 : i32, i32
  }
  func.func @transform_2(%arg0: i32) -> (i32, i32) {
    %c0_i32 = arith.constant 0 : i32
    %c0_i32_0 = arith.constant 0 : i32
    %c0_i32_1 = arith.constant 0 : i32
    return %c0_i32, %c0_i32_0 : i32, i32
  }
  func.func @transform_3(%arg0: i32) -> (i32, i32) {
    %c0_i32 = arith.constant 0 : i32
    %c0_i32_0 = arith.constant 0 : i32
    return %arg0, %c0_i32 : i32, i32
  }
}

module attributes {stable_mosaic.version = 11 : i64} {
  func.func @_conv_matmul_kernel(%arg0: i32, %arg1: memref<168x512xbf16, #tpu.memory_space<vmem>>, %arg2: memref<512x64xbf16, #tpu.memory_space<vmem>>, %arg3: memref<1x64xf32, #tpu.memory_space<vmem>>, %arg4: memref<168x64xbf16, #tpu.memory_space<vmem>>) attributes {dimension_semantics = [#tpu.dimension_semantics<parallel>], iteration_bounds = array<i64: 1>, scalar_prefetch = 0 : i64, scratch_operands = 0 : i64, tpu.core_type = #tpu.core_type<tc>, window_params = [{transform_indices = @transform_0, window_bounds = array<i64: 168, 512>}, {pipeline_mode = #tpu.pipeline_mode<synchronous>, transform_indices = @transform_1, window_bounds = array<i64: 512, 64>}, {pipeline_mode = #tpu.pipeline_mode<synchronous>, transform_indices = @transform_2, window_bounds = array<i64: 1, 64>}, {transform_indices = @transform_3, window_bounds = array<i64: 168, 64>}]} {
    %c0 = arith.constant 0 : index
    %c0_0 = arith.constant 0 : index
    %0 = vector.load %arg1[%c0, %c0_0] : memref<168x512xbf16, #tpu.memory_space<vmem>>, vector<168x512xbf16>
    %c0_1 = arith.constant 0 : index
    %c0_2 = arith.constant 0 : index
    %1 = vector.load %arg2[%c0_1, %c0_2] : memref<512x64xbf16, #tpu.memory_space<vmem>>, vector<512x64xbf16>
    %cst = arith.constant dense<0.000000e+00> : vector<168x64xf32>
    %2 = tpu.matmul %0, %1, %cst {dimension_numbers = #tpu.dot_dimension_numbers<[1], [0], [0], [1], [0, 0, 1, 1], [], []>} : vector<168x512xbf16>, vector<512x64xbf16>, vector<168x64xf32> -> vector<168x64xf32>
    %c0_3 = arith.constant 0 : index
    %c0_4 = arith.constant 0 : index
    %3 = vector.load %arg3[%c0_3, %c0_4] : memref<1x64xf32, #tpu.memory_space<vmem>>, vector<1x64xf32>
    %4 = vector.broadcast %3 : vector<1x64xf32> to vector<168x64xf32>
    %5 = arith.addf %2, %4 : vector<168x64xf32>
    %cst_5 = arith.constant 0.000000e+00 : f32
    %6 = vector.broadcast %cst_5 : f32 to vector<168x64xf32>
    %7 = arith.maximumf %5, %6 : vector<168x64xf32>
    %8 = arith.truncf %7 : vector<168x64xf32> to vector<168x64xbf16>
    %c0_6 = arith.constant 0 : index
    %c0_7 = arith.constant 0 : index
    %9 = vector.load %arg4[%c0_6, %c0_7] : memref<168x64xbf16, #tpu.memory_space<vmem>>, vector<168x64xbf16>
    tpu.vector_store %arg4[%c0_6, %c0_7], %8 {strides = array<i32>} : memref<168x64xbf16, #tpu.memory_space<vmem>>, vector<168x64xbf16>,
    return
  }
  func.func @transform_0(%arg0: i32) -> (i32, i32) {
    %c0_i32 = arith.constant 0 : i32
    %c0_i32_0 = arith.constant 0 : i32
    return %arg0, %c0_i32 : i32, i32
  }
  func.func @transform_1(%arg0: i32) -> (i32, i32) {
    %c0_i32 = arith.constant 0 : i32
    %c0_i32_0 = arith.constant 0 : i32
    %c0_i32_1 = arith.constant 0 : i32
    return %c0_i32, %c0_i32_0 : i32, i32
  }
  func.func @transform_2(%arg0: i32) -> (i32, i32) {
    %c0_i32 = arith.constant 0 : i32
    %c0_i32_0 = arith.constant 0 : i32
    %c0_i32_1 = arith.constant 0 : i32
    return %c0_i32, %c0_i32_0 : i32, i32
  }
  func.func @transform_3(%arg0: i32) -> (i32, i32) {
    %c0_i32 = arith.constant 0 : i32
    %c0_i32_0 = arith.constant 0 : i32
    return %arg0, %c0_i32 : i32, i32
  }
}

module attributes {stable_mosaic.version = 11 : i64} {
  func.func @_conv_matmul_kernel(%arg0: i32, %arg1: memref<104x576xbf16, #tpu.memory_space<vmem>>, %arg2: memref<576x64xbf16, #tpu.memory_space<vmem>>, %arg3: memref<1x64xf32, #tpu.memory_space<vmem>>, %arg4: memref<104x64xbf16, #tpu.memory_space<vmem>>) attributes {dimension_semantics = [#tpu.dimension_semantics<parallel>], iteration_bounds = array<i64: 1>, scalar_prefetch = 0 : i64, scratch_operands = 0 : i64, tpu.core_type = #tpu.core_type<tc>, window_params = [{transform_indices = @transform_0, window_bounds = array<i64: 104, 576>}, {pipeline_mode = #tpu.pipeline_mode<synchronous>, transform_indices = @transform_1, window_bounds = array<i64: 576, 64>}, {pipeline_mode = #tpu.pipeline_mode<synchronous>, transform_indices = @transform_2, window_bounds = array<i64: 1, 64>}, {transform_indices = @transform_3, window_bounds = array<i64: 104, 64>}]} {
    %c0 = arith.constant 0 : index
    %c0_0 = arith.constant 0 : index
    %0 = vector.load %arg1[%c0, %c0_0] : memref<104x576xbf16, #tpu.memory_space<vmem>>, vector<104x576xbf16>
    %c0_1 = arith.constant 0 : index
    %c0_2 = arith.constant 0 : index
    %1 = vector.load %arg2[%c0_1, %c0_2] : memref<576x64xbf16, #tpu.memory_space<vmem>>, vector<576x64xbf16>
    %cst = arith.constant dense<0.000000e+00> : vector<104x64xf32>
    %2 = tpu.matmul %0, %1, %cst {dimension_numbers = #tpu.dot_dimension_numbers<[1], [0], [0], [1], [0, 0, 1, 1], [], []>} : vector<104x576xbf16>, vector<576x64xbf16>, vector<104x64xf32> -> vector<104x64xf32>
    %c0_3 = arith.constant 0 : index
    %c0_4 = arith.constant 0 : index
    %3 = vector.load %arg3[%c0_3, %c0_4] : memref<1x64xf32, #tpu.memory_space<vmem>>, vector<1x64xf32>
    %4 = vector.broadcast %3 : vector<1x64xf32> to vector<104x64xf32>
    %5 = arith.addf %2, %4 : vector<104x64xf32>
    %cst_5 = arith.constant 0.000000e+00 : f32
    %6 = vector.broadcast %cst_5 : f32 to vector<104x64xf32>
    %7 = arith.maximumf %5, %6 : vector<104x64xf32>
    %8 = arith.truncf %7 : vector<104x64xf32> to vector<104x64xbf16>
    %c0_6 = arith.constant 0 : index
    %c0_7 = arith.constant 0 : index
    %9 = vector.load %arg4[%c0_6, %c0_7] : memref<104x64xbf16, #tpu.memory_space<vmem>>, vector<104x64xbf16>
    tpu.vector_store %arg4[%c0_6, %c0_7], %8 {strides = array<i32>} : memref<104x64xbf16, #tpu.memory_space<vmem>>, vector<104x64xbf16>,
    return
  }
  func.func @transform_0(%arg0: i32) -> (i32, i32) {
    %c0_i32 = arith.constant 0 : i32
    %c0_i32_0 = arith.constant 0 : i32
    return %arg0, %c0_i32 : i32, i32
  }
  func.func @transform_1(%arg0: i32) -> (i32, i32) {
    %c0_i32 = arith.constant 0 : i32
    %c0_i32_0 = arith.constant 0 : i32
    %c0_i32_1 = arith.constant 0 : i32
    return %c0_i32, %c0_i32_0 : i32, i32
  }
  func.func @transform_2(%arg0: i32) -> (i32, i32) {
    %c0_i32 = arith.constant 0 : i32
    %c0_i32_0 = arith.constant 0 : i32
    %c0_i32_1 = arith.constant 0 : i32
    return %c0_i32, %c0_i32_0 : i32, i32
  }
  func.func @transform_3(%arg0: i32) -> (i32, i32) {
    %c0_i32 = arith.constant 0 : i32
    %c0_i32_0 = arith.constant 0 : i32
    return %arg0, %c0_i32 : i32, i32
  }
}

module attributes {stable_mosaic.version = 11 : i64} {
  func.func @_fc_tail_kernel(%arg0: memref<8x3136xbf16, #tpu.memory_space<vmem>>, %arg1: memref<8x1xf32, #tpu.memory_space<vmem>>, %arg2: memref<3136x512xbf16, #tpu.memory_space<vmem>>, %arg3: memref<1x512xf32, #tpu.memory_space<vmem>>, %arg4: memref<512x32xbf16, #tpu.memory_space<vmem>>, %arg5: memref<1x32xf32, #tpu.memory_space<vmem>>, %arg6: memref<32x32xf32, #tpu.memory_space<vmem>>, %arg7: memref<1x32xf32, #tpu.memory_space<vmem>>, %arg8: memref<1x32xf32, #tpu.memory_space<vmem>>, %arg9: memref<32x32xf32, #tpu.memory_space<vmem>>, %arg10: memref<1x32xf32, #tpu.memory_space<vmem>>, %arg11: memref<32x32xf32, #tpu.memory_space<vmem>>, %arg12: memref<1x32xf32, #tpu.memory_space<vmem>>, %arg13: memref<8x32xf32, #tpu.memory_space<vmem>>) attributes {dimension_semantics = [], scalar_prefetch = 0 : i64, scratch_operands = 0 : i64, tpu.core_type = #tpu.core_type<tc>} {
    %c0 = arith.constant 0 : index
    %c0_0 = arith.constant 0 : index
    %0 = vector.load %arg0[%c0, %c0_0] : memref<8x3136xbf16, #tpu.memory_space<vmem>>, vector<8x3136xbf16>
    %c0_1 = arith.constant 0 : index
    %c0_2 = arith.constant 0 : index
    %1 = vector.load %arg2[%c0_1, %c0_2] : memref<3136x512xbf16, #tpu.memory_space<vmem>>, vector<3136x512xbf16>
    %cst = arith.constant dense<0.000000e+00> : vector<8x512xf32>
    %2 = tpu.matmul %0, %1, %cst {dimension_numbers = #tpu.dot_dimension_numbers<[1], [0], [0], [1], [0, 0, 1, 1], [], []>} : vector<8x3136xbf16>, vector<3136x512xbf16>, vector<8x512xf32> -> vector<8x512xf32>
    %c0_3 = arith.constant 0 : index
    %c0_4 = arith.constant 0 : index
    %3 = vector.load %arg3[%c0_3, %c0_4] : memref<1x512xf32, #tpu.memory_space<vmem>>, vector<1x512xf32>
    %4 = vector.broadcast %3 : vector<1x512xf32> to vector<8x512xf32>
    %5 = arith.addf %2, %4 : vector<8x512xf32>
    %cst_5 = arith.constant 0.000000e+00 : f32
    %6 = vector.broadcast %cst_5 : f32 to vector<8x512xf32>
    %7 = arith.maximumf %5, %6 : vector<8x512xf32>
    %8 = arith.truncf %7 : vector<8x512xf32> to vector<8x512xbf16>
    %c0_6 = arith.constant 0 : index
    %c0_7 = arith.constant 0 : index
    %9 = vector.load %arg4[%c0_6, %c0_7] : memref<512x32xbf16, #tpu.memory_space<vmem>>, vector<512x32xbf16>
    %cst_8 = arith.constant dense<0.000000e+00> : vector<8x32xf32>
    %10 = tpu.matmul %8, %9, %cst_8 {dimension_numbers = #tpu.dot_dimension_numbers<[1], [0], [0], [1], [0, 0, 1, 1], [], []>} : vector<8x512xbf16>, vector<512x32xbf16>, vector<8x32xf32> -> vector<8x32xf32>
    %c0_9 = arith.constant 0 : index
    %c0_10 = arith.constant 0 : index
    %11 = vector.load %arg5[%c0_9, %c0_10] : memref<1x32xf32, #tpu.memory_space<vmem>>, vector<1x32xf32>
    %12 = vector.broadcast %11 : vector<1x32xf32> to vector<8x32xf32>
    %13 = arith.addf %10, %12 : vector<8x32xf32>
    %c0_11 = arith.constant 0 : index
    %c0_12 = arith.constant 0 : index
    %14 = vector.load %arg6[%c0_11, %c0_12] : memref<32x32xf32, #tpu.memory_space<vmem>>, vector<32x32xf32>
    %cst_13 = arith.constant dense<0.000000e+00> : vector<8x32xf32>
    %15 = tpu.matmul %13, %14, %cst_13 {dimension_numbers = #tpu.dot_dimension_numbers<[1], [0], [0], [1], [0, 0, 1, 1], [], []>} : vector<8x32xf32>, vector<32x32xf32>, vector<8x32xf32> -> vector<8x32xf32>
    %c0_14 = arith.constant 0 : index
    %c0_15 = arith.constant 0 : index
    %16 = vector.load %arg1[%c0_14, %c0_15] : memref<8x1xf32, #tpu.memory_space<vmem>>, vector<8x1xf32>
    %c0_16 = arith.constant 0 : index
    %c0_17 = arith.constant 0 : index
    %17 = vector.load %arg7[%c0_16, %c0_17] : memref<1x32xf32, #tpu.memory_space<vmem>>, vector<1x32xf32>
    %18 = vector.broadcast %16 : vector<8x1xf32> to vector<8x32xf32>
    %19 = vector.broadcast %17 : vector<1x32xf32> to vector<8x32xf32>
    %20 = arith.mulf %18, %19 : vector<8x32xf32>
    %21 = arith.addf %15, %20 : vector<8x32xf32>
    %c0_18 = arith.constant 0 : index
    %c0_19 = arith.constant 0 : index
    %22 = vector.load %arg8[%c0_18, %c0_19] : memref<1x32xf32, #tpu.memory_space<vmem>>, vector<1x32xf32>
    %23 = vector.broadcast %22 : vector<1x32xf32> to vector<8x32xf32>
    %24 = arith.addf %21, %23 : vector<8x32xf32>
    %cst_20 = arith.constant 0.000000e+00 : f32
    %25 = vector.broadcast %cst_20 : f32 to vector<8x32xf32>
    %26 = arith.maximumf %24, %25 : vector<8x32xf32>
    %c0_21 = arith.constant 0 : index
    %c0_22 = arith.constant 0 : index
    %27 = vector.load %arg9[%c0_21, %c0_22] : memref<32x32xf32, #tpu.memory_space<vmem>>, vector<32x32xf32>
    %cst_23 = arith.constant dense<0.000000e+00> : vector<8x32xf32>
    %28 = tpu.matmul %26, %27, %cst_23 {dimension_numbers = #tpu.dot_dimension_numbers<[1], [0], [0], [1], [0, 0, 1, 1], [], []>} : vector<8x32xf32>, vector<32x32xf32>, vector<8x32xf32> -> vector<8x32xf32>
    %c0_24 = arith.constant 0 : index
    %c0_25 = arith.constant 0 : index
    %29 = vector.load %arg10[%c0_24, %c0_25] : memref<1x32xf32, #tpu.memory_space<vmem>>, vector<1x32xf32>
    %30 = vector.broadcast %29 : vector<1x32xf32> to vector<8x32xf32>
    %31 = arith.addf %28, %30 : vector<8x32xf32>
    %cst_26 = arith.constant 0.000000e+00 : f32
    %32 = vector.broadcast %cst_26 : f32 to vector<8x32xf32>
    %33 = arith.maximumf %31, %32 : vector<8x32xf32>
    %c0_27 = arith.constant 0 : index
    %c0_28 = arith.constant 0 : index
    %34 = vector.load %arg11[%c0_27, %c0_28] : memref<32x32xf32, #tpu.memory_space<vmem>>, vector<32x32xf32>
    %cst_29 = arith.constant dense<0.000000e+00> : vector<8x32xf32>
    %35 = tpu.matmul %33, %34, %cst_29 {dimension_numbers = #tpu.dot_dimension_numbers<[1], [0], [0], [1], [0, 0, 1, 1], [], []>} : vector<8x32xf32>, vector<32x32xf32>, vector<8x32xf32> -> vector<8x32xf32>
    %c0_30 = arith.constant 0 : index
    %c0_31 = arith.constant 0 : index
    %36 = vector.load %arg12[%c0_30, %c0_31] : memref<1x32xf32, #tpu.memory_space<vmem>>, vector<1x32xf32>
    %37 = vector.broadcast %36 : vector<1x32xf32> to vector<8x32xf32>
    %38 = arith.addf %35, %37 : vector<8x32xf32>
    %c0_32 = arith.constant 0 : index
    %c0_33 = arith.constant 0 : index
    %39 = vector.load %arg13[%c0_32, %c0_33] : memref<8x32xf32, #tpu.memory_space<vmem>>, vector<8x32xf32>
    tpu.vector_store %arg13[%c0_32, %c0_33], %38 {strides = array<i32>} : memref<8x32xf32, #tpu.memory_space<vmem>>, vector<8x32xf32>,
    return
  }
}

</mosaic_0001>

<bundles_post_ra>
// kernel: predictor_forward.4
= control target key start
LH: loop header
LB: loop body
LE: loop exit
PB: predicated region body
PF: predicated region fallthrough
CT: control target
= control target key end

     0   :  { %s1831_s12 = smov 0   ;;  %s2197_s0 = inlined_call_operand.vmem [shape: bf16[1024,256], index: 0, kind: input, shape index: {}]   ;;  %s2198_s1 = inlined_call_operand.vmem [shape: bf16[256,32], index: 1, kind: input, shape index: {}]   ;;  %s2199_s2 = inlined_call_operand.vmem [shape: f32[1,32], index: 2, kind: input, shape index: {}]   ;;  %s2200_s3 = inlined_call_operand.vmem [shape: bf16[1024,32], index: 3, kind: output, shape index: {}]  }
   0x1 LB: > { %s1427_s13 = sadd.s32 4294967295, %s1808_s12   ;;  %p1431_p0 = scmp.ge.s32.totalorder %s1808_s12, 1  ;;  %s1808_s12 = sphi %s1831_s12, %s13_s12  }
   0x2   : > { %p139_p1 = scmp.lt.s32.totalorder %s1808_s12, 3 }
   0x4   : > { %p140_p2 = pnand %p1431_p0, %p139_p1 }
   0x5   : > { %s1432_s16 = sshll.u32 (!%p140_p2), %s1427_s13, 6 }
   0x6   : > { %143 = sbr.rel (%p140_p2) target bundleno = 400 (0x190), region = 32  ;;  %p165_p3 = scmp.lt.s32.totalorder (!%p140_p2), %s1432_s16, 127 }
   0xb   : > { %v1690_v0 = vld [vmem:[%s2198_s1 + $0x38] sm:$0xff]   ;;  %v1810_v1 = vmov 0   ;;  %v1691_v2 = vld [vmem:[%s2198_s1 + $0x30] sm:$0xff]   ;;  %v1692_v3 = vld [vmem:[%s2198_s1 + $0x28] sm:$0xff]   ;;  %s2202_s16 = smov (!%p165_p3, %s1432_s16), 127  ;;  %vm1306_vm0 = vcmask 257024  }
   0xc   : > { %697 = vmatprep.subr.bf16.mxu0 %v1810_v1  ;;  %1649 = vmatprep.subr.bf16.mxu1 %v1810_v1  ;;  %v1693_v4 = vld [vmem:[%s2198_s1 + $0x20] sm:$0xff]   ;;  %s1584_s23 = sshll.u32 %s2202_s16, 3  ;;  %v1694_v5 = vld [vmem:[%s2198_s1 + $0x18] sm:$0xff]   ;;  %v1695_v7 = vld [vmem:[%s2198_s1 + $0x10] sm:$0xff]   ;;  %s1436_s29 = sshll.u32 %s2202_s16, 2 }
   0xd   : > { %698 = vmatpush1.bf16.msra.mxu0 %v1690_v0  ;;  %1665 = vmatpush1.bf16.msra.mxu1 %v1690_v0  ;;  %s1868_s28 = scalar_lea.vmem %s2197_s0, %s1584_s23  ;;  %v1696_v9 = vld [vmem:[%s2198_s1 + $0x8] sm:$0xff]   ;;  %v1697_v10 = vld [vmem:[%s2198_s1] sm:$0xff]   ;;  %v1698_v11 = vld [vmem:[%s2198_s1 + $0x78] sm:$0xff]   ;;  %s2002_s4 = scalar_lea.vmem %s2200_s3, %s1436_s29 }
   0xe   : > { %699 = vmatprep.subr.bf16.mxu0 %v1810_v1  ;;  %1650 = vmatprep.subr.bf16.mxu1 %v1810_v1  ;;  %v1708_v6 = vld [vmem:[%s1868_s28 + $0x4] ss:$8 sps:$4 sm:$0xff]   ;;  %v1699_v12 = vld [vmem:[%s2198_s1 + $0x70] sm:$0xff]   ;;  %v1702_v15 = vld [vmem:[%s2198_s1 + $0x58] sm:$0xff]  }
   0xf   : > { %v1711_v8 = vld [vmem:[%s1868_s28 + $0x104] ss:$8 sps:$4 sm:$0xff]   ;;  %729 = vmatprep.mubr.bf16.mxu0 %v1708_v6  ;;  %v1703_v16 = vld [vmem:[%s2198_s1 + $0x50] sm:$0xff]   ;;  %v1706_v19 = vld [vmem:[%s1868_s28] ss:$8 sps:$4 sm:$0xff]  }
  0x10   : > { %857 = vmatprep.mubr.bf16.mxu1 %v1711_v8  ;;  %v1700_v13 = vld [vmem:[%s2198_s1 + $0x68] sm:$0xff]   ;;  %v1701_v14 = vld [vmem:[%s2198_s1 + $0x60] sm:$0xff]   ;;  %v1712_v21 = vld [vmem:[%s1868_s28 + $0x14] ss:$8 sps:$4 sm:$0xff]  }
  0x11   : > { %700 = vmatpush1.bf16.msra.mxu0 %v1691_v2  ;;  %1666 = vmatpush1.bf16.msra.mxu1 %v1691_v2  ;;  %v1704_v17 = vld [vmem:[%s2198_s1 + $0x48] sm:$0xff]   ;;  %v1705_v18 = vld [vmem:[%s2198_s1 + $0x40] sm:$0xff]   ;;  %v1714_v22 = vld [vmem:[%s1868_s28 + $0x114] ss:$8 sps:$4 sm:$0xff]  }
  0x12   : > { %701 = vmatprep.subr.bf16.mxu0 %v1810_v1  ;;  %1651 = vmatprep.subr.bf16.mxu1 %v1810_v1  ;;  %v1709_v20 = vld [vmem:[%s1868_s28 + $0x100] ss:$8 sps:$4 sm:$0xff]   ;;  %v1716_v23 = vld [vmem:[%s1868_s28 + $0x10] ss:$8 sps:$4 sm:$0xff]   ;;  %v1718_v25 = vld [vmem:[%s1868_s28 + $0x24] ss:$8 sps:$4 sm:$0xff]  }
  0x13   : > { %v1717_v24 = vld [vmem:[%s1868_s28 + $0x110] ss:$8 sps:$4 sm:$0xff]   ;;  %v1720_v26 = vld [vmem:[%s1868_s28 + $0x124] ss:$8 sps:$4 sm:$0xff]   ;;  %v1722_v27 = vld [vmem:[%s1868_s28 + $0x20] ss:$8 sps:$4 sm:$0xff]  }
  0x14   : > { %v1723_v28 = vld [vmem:[%s1868_s28 + $0x120] ss:$8 sps:$4 sm:$0xff]   ;;  %v1724_v29 = vld [vmem:[%s1868_s28 + $0x34] ss:$8 sps:$4 sm:$0xff]   ;;  %v1728_v31 = vld [vmem:[%s1868_s28 + $0x30] ss:$8 sps:$4 sm:$0xff]  }
  0x15   : > { %702 = vmatpush1.bf16.msra.mxu0 %v1692_v3  ;;  %1667 = vmatpush1.bf16.msra.mxu1 %v1692_v3  ;;  %v1726_v30 = vld [vmem:[%s1868_s28 + $0x134] ss:$8 sps:$4 sm:$0xff]   ;;  %v1729_v32 = vld [vmem:[%s1868_s28 + $0x130] ss:$8 sps:$4 sm:$0xff]   ;;  %v1730_v33 = vld [vmem:[%s1868_s28 + $0x44] ss:$8 sps:$4 sm:$0xff]  }
  0x16   : > { %703 = vmatprep.subr.bf16.mxu0 %v1810_v1  ;;  %1652 = vmatprep.subr.bf16.mxu1 %v1810_v1  ;;  %v1732_v34 = vld [vmem:[%s1868_s28 + $0x144] ss:$8 sps:$4 sm:$0xff]   ;;  %v1734_v35 = vld [vmem:[%s1868_s28 + $0x40] ss:$8 sps:$4 sm:$0xff]   ;;  %v1736_v37 = vld [vmem:[%s1868_s28 + $0x54] ss:$8 sps:$4 sm:$0xff]  }
  0x17   : > { %v1735_v36 = vld [vmem:[%s1868_s28 + $0x140] ss:$8 sps:$4 sm:$0xff]   ;;  %v1738_v38 = vld [vmem:[%s1868_s28 + $0x154] ss:$8 sps:$4 sm:$0xff]   ;;  %v1740_v39 = vld [vmem:[%s1868_s28 + $0x50] ss:$8 sps:$4 sm:$0xff]  }
  0x18   : > { %v1741_v40 = vld [vmem:[%s1868_s28 + $0x150] ss:$8 sps:$4 sm:$0xff]   ;;  %v1742_v41 = vld [vmem:[%s1868_s28 + $0x64] ss:$8 sps:$4 sm:$0xff]   ;;  %v1746_v43 = vld [vmem:[%s1868_s28 + $0x60] ss:$8 sps:$4 sm:$0xff]  }
  0x19   : > { %704 = vmatpush1.bf16.msra.mxu0 %v1693_v4  ;;  %1668 = vmatpush1.bf16.msra.mxu1 %v1693_v4  ;;  %v1744_v42 = vld [vmem:[%s1868_s28 + $0x164] ss:$8 sps:$4 sm:$0xff]   ;;  %v1747_v44 = vld [vmem:[%s1868_s28 + $0x160] ss:$8 sps:$4 sm:$0xff]   ;;  %v1748_v45 = vld [vmem:[%s1868_s28 + $0x74] ss:$8 sps:$4 sm:$0xff]  }
  0x1a   : > { %705 = vmatprep.subr.bf16.mxu0 %v1810_v1  ;;  %1653 = vmatprep.subr.bf16.mxu1 %v1810_v1  ;;  %v1750_v46 = vld [vmem:[%s1868_s28 + $0x174] ss:$8 sps:$4 sm:$0xff]   ;;  %v1752_v47 = vld [vmem:[%s1868_s28 + $0x70] ss:$8 sps:$4 sm:$0xff]   ;;  %v1754_v49 = vld [vmem:[%s1868_s28 + $0x84] ss:$8 sps:$4 sm:$0xff]  }
  0x1b   : > { %v1753_v48 = vld [vmem:[%s1868_s28 + $0x170] ss:$8 sps:$4 sm:$0xff]   ;;  %v1756_v50 = vld [vmem:[%s1868_s28 + $0x184] ss:$8 sps:$4 sm:$0xff]   ;;  %v1758_v51 = vld [vmem:[%s1868_s28 + $0x80] ss:$8 sps:$4 sm:$0xff]  }
  0x1c   : > { %v1759_v52 = vld [vmem:[%s1868_s28 + $0x180] ss:$8 sps:$4 sm:$0xff]   ;;  %v1760_v53 = vld [vmem:[%s1868_s28 + $0x94] ss:$8 sps:$4 sm:$0xff]   ;;  %v1764_v55 = vld [vmem:[%s1868_s28 + $0x90] ss:$8 sps:$4 sm:$0xff]  }
  0x1d   : > { %706 = vmatpush1.bf16.msra.mxu0 %v1694_v5  ;;  %1669 = vmatpush1.bf16.msra.mxu1 %v1694_v5  ;;  %v1762_v54 = vld [vmem:[%s1868_s28 + $0x194] ss:$8 sps:$4 sm:$0xff]   ;;  %v1765_v56 = vld [vmem:[%s1868_s28 + $0x190] ss:$8 sps:$4 sm:$0xff]   ;;  %v1766_v57 = vld [vmem:[%s1868_s28 + $0xa4] ss:$8 sps:$4 sm:$0xff]  }
  0x1e   : > { %707 = vmatprep.subr.bf16.mxu0 %v1810_v1  ;;  %1654 = vmatprep.subr.bf16.mxu1 %v1810_v1  ;;  %v1768_v58 = vld [vmem:[%s1868_s28 + $0x1a4] ss:$8 sps:$4 sm:$0xff]   ;;  %v1770_v59 = vld [vmem:[%s1868_s28 + $0xa0] ss:$8 sps:$4 sm:$0xff]   ;;  %v1772_v61 = vld [vmem:[%s1868_s28 + $0xb4] ss:$8 sps:$4 sm:$0xff]  }
  0x1f   : > { %v1771_v60 = vld [vmem:[%s1868_s28 + $0x1a0] ss:$8 sps:$4 sm:$0xff]   ;;  %v1774_v62 = vld [vmem:[%s1868_s28 + $0x1b4] ss:$8 sps:$4 sm:$0xff]   ;;  %v1776_v63 = vld [vmem:[%s1868_s28 + $0xb0] ss:$8 sps:$4 sm:$0xff]  }
  0x20   : > { %v1777_v0 = vld [vmem:[%s1868_s28 + $0x1b0] ss:$8 sps:$4 sm:$0xff]   ;;  %v1780_v2 = vld [vmem:[%s1868_s28 + $0x1c4] ss:$8 sps:$4 sm:$0xff]   ;;  %v1782_v3 = vld [vmem:[%s1868_s28 + $0xc0] ss:$8 sps:$4 sm:$0xff]  }
  0x21   : > { %708 = vmatpush1.bf16.msra.mxu0 %v1695_v7  ;;  %1670 = vmatpush1.bf16.msra.mxu1 %v1695_v7  ;;  %v1783_v4 = vld [vmem:[%s1868_s28 + $0x1c0] ss:$8 sps:$4 sm:$0xff]   ;;  %v1784_v5 = vld [vmem:[%s1868_s28 + $0xd4] ss:$8 sps:$4 sm:$0xff]   ;;  %v1788_v7 = vld [vmem:[%s1868_s28 + $0xd0] ss:$8 sps:$4 sm:$0xff]  }
  0x22   : > { %709 = vmatprep.subr.bf16.mxu0 %v1810_v1  ;;  %1655 = vmatprep.subr.bf16.mxu1 %v1810_v1  ;;  %v1786_v6 = vld [vmem:[%s1868_s28 + $0x1d4] ss:$8 sps:$4 sm:$0xff]   ;;  %v1789_v8 = vld [vmem:[%s1868_s28 + $0x1d0] ss:$8 sps:$4 sm:$0xff]  }
  0x25   : > { %710 = vmatpush1.bf16.msra.mxu0 %v1696_v9  ;;  %1671 = vmatpush1.bf16.msra.mxu1 %v1696_v9  ;;  %v1790_v9 = vld [vmem:[%s1868_s28 + $0xe4] ss:$8 sps:$4 sm:$0xff]  }
  0x26   : > { %711 = vmatprep.subr.bf16.mxu0 %v1810_v1  ;;  %1656 = vmatprep.subr.bf16.mxu1 %v1810_v1 }
  0x29   : > { %712 = vmatpush1.bf16.msra.mxu0 %v1697_v10  ;;  %1672 = vmatpush1.bf16.msra.mxu1 %v1697_v10  ;;  %v1792_v10 = vld [vmem:[%s1868_s28 + $0x1e4] ss:$8 sps:$4 sm:$0xff]  }
  0x2a   : > { %713 = vmatprep.subr.bf16.mxu0 %v1810_v1  ;;  %1657 = vmatprep.subr.bf16.mxu1 %v1810_v1 }
  0x2d   : > { %714 = vmatpush2.bf16.msra.mxu0 %v1698_v11  ;;  %1673 = vmatpush2.bf16.msra.mxu1 %v1698_v11  ;;  %v1794_v11 = vld [vmem:[%s1868_s28 + $0xe0] ss:$8 sps:$4 sm:$0xff]  }
  0x2e   : > { %715 = vmatprep.subr.bf16.mxu0 %v1810_v1  ;;  %1658 = vmatprep.subr.bf16.mxu1 %v1810_v1 }
  0x31   : > { %716 = vmatpush2.bf16.msra.mxu0 %v1699_v12  ;;  %1674 = vmatpush2.bf16.msra.mxu1 %v1699_v12  ;;  %v1795_v12 = vld [vmem:[%s1868_s28 + $0x1e0] ss:$8 sps:$4 sm:$0xff]  }
  0x32   : > { %717 = vmatprep.subr.bf16.mxu0 %v1810_v1  ;;  %1659 = vmatprep.subr.bf16.mxu1 %v1810_v1 }
  0x35   : > { %718 = vmatpush2.bf16.msra.mxu0 %v1700_v13  ;;  %1675 = vmatpush2.bf16.msra.mxu1 %v1700_v13  ;;  %v1796_v13 = vld [vmem:[%s1868_s28 + $0xf4] ss:$8 sps:$4 sm:$0xff]  }
  0x36   : > { %719 = vmatprep.subr.bf16.mxu0 %v1810_v1  ;;  %1660 = vmatprep.subr.bf16.mxu1 %v1810_v1 }
  0x39   : > { %720 = vmatpush2.bf16.msra.mxu0 %v1701_v14  ;;  %1676 = vmatpush2.bf16.msra.mxu1 %v1701_v14  ;;  %v1798_v14 = vld [vmem:[%s1868_s28 + $0x1f4] ss:$8 sps:$4 sm:$0xff]  }
  0x3a   : > { %721 = vmatprep.subr.bf16.mxu0 %v1810_v1  ;;  %1661 = vmatprep.subr.bf16.mxu1 %v1810_v1 }
  0x3d   : > { %722 = vmatpush2.bf16.msra.mxu0 %v1702_v15  ;;  %1677 = vmatpush2.bf16.msra.mxu1 %v1702_v15  ;;  %v1800_v15 = vld [vmem:[%s1868_s28 + $0xf0] ss:$8 sps:$4 sm:$0xff]  }
  0x3e   : > { %723 = vmatprep.subr.bf16.mxu0 %v1810_v1  ;;  %1662 = vmatprep.subr.bf16.mxu1 %v1810_v1 }
  0x41   : > { %724 = vmatpush2.bf16.msra.mxu0 %v1703_v16  ;;  %1678 = vmatpush2.bf16.msra.mxu1 %v1703_v16  ;;  %v1801_v16 = vld [vmem:[%s1868_s28 + $0x1f0] ss:$8 sps:$4 sm:$0xff]  }
  0x42   : > { %725 = vmatprep.subr.bf16.mxu0 %v1810_v1  ;;  %1663 = vmatprep.subr.bf16.mxu1 %v1810_v1 }
  0x45   : > { %726 = vmatpush2.bf16.msra.mxu0 %v1704_v17  ;;  %1679 = vmatpush2.bf16.msra.mxu1 %v1704_v17  ;;  %v1994_v17 = vld [vmem:[%s2199_s2] ss:$0 sm:$0xff] }
  0x46   : > { %727 = vmatprep.subr.bf16.mxu0 %v1810_v1  ;;  %1664 = vmatprep.subr.bf16.mxu1 %v1810_v1  ;;  %v1778_v1 = vld [vmem:[%s1868_s28 + $0xc4] ss:$8 sps:$4 sm:$0xff]  }
  0x49   : > { %728 = vmatpush2.bf16.msra.mxu0 %v1705_v18  ;;  %1680 = vmatpush2.bf16.msra.mxu1 %v1705_v18 }
  0x4c   : > { %730 = vmatmul.mubr.bf16.vlgmr.msra.gmra.mxu0 %v1706_v19  ;;  %858 = vmatmul.mubr.bf16.vlgmr.msra.gmra.mxu1 %v1709_v20 }
  0x4d   : > { %737 = vmatprep.mubr.bf16.mxu0 %v1712_v21  ;;  %865 = vmatprep.mubr.bf16.mxu1 %v1714_v22 }
  0x54   : > { %738 = vmatmul.mubr.bf16.gmra.mxu0 %v1716_v23  ;;  %866 = vmatmul.mubr.bf16.gmra.mxu1 %v1717_v24 }
  0x55   : > { %745 = vmatprep.mubr.bf16.mxu0 %v1718_v25  ;;  %873 = vmatprep.mubr.bf16.mxu1 %v1720_v26 }
  0x5c   : > { %746 = vmatmul.mubr.bf16.gmra.mxu0 %v1722_v27  ;;  %874 = vmatmul.mubr.bf16.gmra.mxu1 %v1723_v28 }
  0x5d   : > { %753 = vmatprep.mubr.bf16.mxu0 %v1724_v29  ;;  %881 = vmatprep.mubr.bf16.mxu1 %v1726_v30 }
  0x64   : > { %754 = vmatmul.mubr.bf16.gmra.mxu0 %v1728_v31  ;;  %882 = vmatmul.mubr.bf16.gmra.mxu1 %v1729_v32 }
  0x65   : > { %761 = vmatprep.mubr.bf16.mxu0 %v1730_v33  ;;  %889 = vmatprep.mubr.bf16.mxu1 %v1732_v34 }
  0x6c   : > { %762 = vmatmul.mubr.bf16.gmra.mxu0 %v1734_v35  ;;  %890 = vmatmul.mubr.bf16.gmra.mxu1 %v1735_v36 }
  0x6d   : > { %769 = vmatprep.mubr.bf16.mxu0 %v1736_v37  ;;  %897 = vmatprep.mubr.bf16.mxu1 %v1738_v38 }
  0x74   : > { %770 = vmatmul.mubr.bf16.gmra.mxu0 %v1740_v39  ;;  %898 = vmatmul.mubr.bf16.gmra.mxu1 %v1741_v40 }
  0x75   : > { %777 = vmatprep.mubr.bf16.mxu0 %v1742_v41  ;;  %905 = vmatprep.mubr.bf16.mxu1 %v1744_v42 }
  0x7c   : > { %778 = vmatmul.mubr.bf16.gmra.mxu0 %v1746_v43  ;;  %906 = vmatmul.mubr.bf16.gmra.mxu1 %v1747_v44 }
  0x7d   : > { %785 = vmatprep.mubr.bf16.mxu0 %v1748_v45  ;;  %913 = vmatprep.mubr.bf16.mxu1 %v1750_v46 }
  0x84   : > { %786 = vmatmul.mubr.bf16.gmra.mxu0 %v1752_v47  ;;  %914 = vmatmul.mubr.bf16.gmra.mxu1 %v1753_v48 }
  0x85   : > { %793 = vmatprep.mubr.bf16.mxu0 %v1754_v49  ;;  %921 = vmatprep.mubr.bf16.mxu1 %v1756_v50 }
  0x8c   : > { %794 = vmatmul.mubr.bf16.gmra.mxu0 %v1758_v51  ;;  %922 = vmatmul.mubr.bf16.gmra.mxu1 %v1759_v52 }
  0x8d   : > { %801 = vmatprep.mubr.bf16.mxu0 %v1760_v53  ;;  %929 = vmatprep.mubr.bf16.mxu1 %v1762_v54 }
  0x94   : > { %802 = vmatmul.mubr.bf16.gmra.mxu0 %v1764_v55  ;;  %930 = vmatmul.mubr.bf16.gmra.mxu1 %v1765_v56 }
  0x95   : > { %809 = vmatprep.mubr.bf16.mxu0 %v1766_v57  ;;  %937 = vmatprep.mubr.bf16.mxu1 %v1768_v58 }
  0x9c   : > { %810 = vmatmul.mubr.bf16.gmra.mxu0 %v1770_v59  ;;  %938 = vmatmul.mubr.bf16.gmra.mxu1 %v1771_v60 }
  0x9d   : > { %817 = vmatprep.mubr.bf16.mxu0 %v1772_v61  ;;  %945 = vmatprep.mubr.bf16.mxu1 %v1774_v62 }
  0xa4   : > { %818 = vmatmul.mubr.bf16.gmra.mxu0 %v1776_v63  ;;  %946 = vmatmul.mubr.bf16.gmra.mxu1 %v1777_v0 }
  0xa5   : > { %825 = vmatprep.mubr.bf16.mxu0 %v1778_v1  ;;  %953 = vmatprep.mubr.bf16.mxu1 %v1780_v2 }
  0xac   : > { %826 = vmatmul.mubr.bf16.gmra.mxu0 %v1782_v3  ;;  %954 = vmatmul.mubr.bf16.gmra.mxu1 %v1783_v4 }
  0xad   : > { %833 = vmatprep.mubr.bf16.mxu0 %v1784_v5  ;;  %961 = vmatprep.mubr.bf16.mxu1 %v1786_v6 }
  0xb4   : > { %834 = vmatmul.mubr.bf16.gmra.mxu0 %v1788_v7  ;;  %962 = vmatmul.mubr.bf16.gmra.mxu1 %v1789_v8 }
  0xb5   : > { %841 = vmatprep.mubr.bf16.mxu0 %v1790_v9  ;;  %969 = vmatprep.mubr.bf16.mxu1 %v1792_v10 }
  0xbc   : > { %842 = vmatmul.mubr.bf16.gmra.mxu0 %v1794_v11  ;;  %970 = vmatmul.mubr.bf16.gmra.mxu1 %v1795_v12 }
  0xbd   : > { %849 = vmatprep.mubr.bf16.mxu0 %v1796_v13  ;;  %977 = vmatprep.mubr.bf16.mxu1 %v1798_v14 }
  0xc4   : > { %850 = vmatmul.mubr.bf16.gmra.mxu0 %v1800_v15  ;;  %978 = vmatmul.mubr.bf16.gmra.mxu1 %v1801_v16 }
 0x10c   : > { %v731_v18 = vpop.f32.mrf.mxu0  ;;  %v859_v19 = vpop.f32.mrf.mxu1 }
 0x10d   : > { %v732_v20 = vadd.f32 %v1994_v17, %v731_v18  ;;  %v860_v21 = vadd.f32 %v1994_v17, %v859_v19 }
 0x10e   : > { %v733_v22 = vpop.f32.mrf.mxu0  ;;  %v861_v23 = vpop.f32.mrf.mxu1 }
 0x10f   : > { %v986_v24 = vmax.f32 %v732_v20, 0.0  ;;  %v1018_v25 = vmax.f32 %v860_v21, 0.0 }
 0x110   : > { %v734_v26 = vpop.f32.mrf.mxu0  ;;  %v862_v27 = vpop.f32.mrf.mxu1 }
 0x111   : > { %v1585_v28 = vpack.c.bf16 %v986_v24, %v986_v24  ;;  %v1617_v29 = vpack.c.bf16 %v1018_v25, %v1018_v25  ;;  %v735_v30 = vadd.f32 %v1994_v17, %v734_v26  ;;  %v863_v31 = vadd.f32 %v1994_v17, %v862_v27 }
 0x112   : > { %v736_v32 = vpop.f32.mrf.mxu0  ;;  %v864_v33 = vpop.f32.mrf.mxu1 }
 0x113   : > { %1307 = vst.msk [vmem:[%s2002_s4] sm:$0xf] %vm1306_vm0, %v1585_v28  ;;  %1339 = vst.msk [vmem:[%s2002_s4 + $0x80] sm:$0xf] %vm1306_vm0, %v1617_v29  ;;  %v987_v34 = vmax.f32 %v735_v30, 0.0  ;;  %v1019_v35 = vmax.f32 %v863_v31, 0.0 }
 0x114   : > { %v739_v36 = vpop.f32.mrf.mxu0  ;;  %v867_v37 = vpop.f32.mrf.mxu1 }
 0x115   : > { %v1586_v38 = vpack.c.bf16 %v987_v34, %v987_v34  ;;  %v1618_v39 = vpack.c.bf16 %v1019_v35, %v1019_v35  ;;  %v740_v40 = vadd.f32 %v1994_v17, %v739_v36  ;;  %v868_v41 = vadd.f32 %v1994_v17, %v867_v37 }
 0x116   : > { %v741_v42 = vpop.f32.mrf.mxu0  ;;  %v869_v43 = vpop.f32.mrf.mxu1 }
 0x117   : > { %1308 = vst.msk [vmem:[%s2002_s4 + $0x4] sm:$0xf] %vm1306_vm0, %v1586_v38  ;;  %1340 = vst.msk [vmem:[%s2002_s4 + $0x84] sm:$0xf] %vm1306_vm0, %v1618_v39  ;;  %v988_v44 = vmax.f32 %v740_v40, 0.0  ;;  %v1020_v45 = vmax.f32 %v868_v41, 0.0 }
 0x118   : > { %v742_v46 = vpop.f32.mrf.mxu0  ;;  %v870_v47 = vpop.f32.mrf.mxu1 }
 0x119   : > { %v1587_v48 = vpack.c.bf16 %v988_v44, %v988_v44  ;;  %v1619_v49 = vpack.c.bf16 %v1020_v45, %v1020_v45  ;;  %v743_v50 = vadd.f32 %v1994_v17, %v742_v46  ;;  %v871_v51 = vadd.f32 %v1994_v17, %v870_v47 }
 0x11a   : > { %v744_v52 = vpop.f32.mrf.mxu0  ;;  %v872_v53 = vpop.f32.mrf.mxu1 }
 0x11b   : > { %1309 = vst.msk [vmem:[%s2002_s4 + $0x8] sm:$0xf] %vm1306_vm0, %v1587_v48  ;;  %1341 = vst.msk [vmem:[%s2002_s4 + $0x88] sm:$0xf] %vm1306_vm0, %v1619_v49  ;;  %v989_v54 = vmax.f32 %v743_v50, 0.0  ;;  %v1021_v55 = vmax.f32 %v871_v51, 0.0 }
 0x11c   : > { %v747_v56 = vpop.f32.mrf.mxu0  ;;  %v875_v57 = vpop.f32.mrf.mxu1 }
 0x11d   : > { %v1588_v58 = vpack.c.bf16 %v989_v54, %v989_v54  ;;  %v1620_v59 = vpack.c.bf16 %v1021_v55, %v1021_v55  ;;  %v748_v60 = vadd.f32 %v1994_v17, %v747_v56  ;;  %v876_v61 = vadd.f32 %v1994_v17, %v875_v57 }
 0x11e   : > { %v749_v62 = vpop.f32.mrf.mxu0  ;;  %v877_v63 = vpop.f32.mrf.mxu1 }
 0x11f   : > { %1310 = vst.msk [vmem:[%s2002_s4 + $0xc] sm:$0xf] %vm1306_vm0, %v1588_v58  ;;  %1342 = vst.msk [vmem:[%s2002_s4 + $0x8c] sm:$0xf] %vm1306_vm0, %v1620_v59  ;;  %v990_v0 = vmax.f32 %v748_v60, 0.0  ;;  %v1022_v1 = vmax.f32 %v876_v61, 0.0 }
 0x120   : > { %v750_v2 = vpop.f32.mrf.mxu0  ;;  %v878_v3 = vpop.f32.mrf.mxu1 }
 0x121   : > { %v1589_v4 = vpack.c.bf16 %v990_v0, %v990_v0  ;;  %v1621_v5 = vpack.c.bf16 %v1022_v1, %v1022_v1  ;;  %v751_v6 = vadd.f32 %v1994_v17, %v750_v2  ;;  %v879_v7 = vadd.f32 %v1994_v17, %v878_v3 }
 0x122   : > { %v752_v8 = vpop.f32.mrf.mxu0  ;;  %v880_v9 = vpop.f32.mrf.mxu1 }
 0x123   : > { %1311 = vst.msk [vmem:[%s2002_s4 + $0x10] sm:$0xf] %vm1306_vm0, %v1589_v4  ;;  %1343 = vst.msk [vmem:[%s2002_s4 + $0x90] sm:$0xf] %vm1306_vm0, %v1621_v5  ;;  %v991_v10 = vmax.f32 %v751_v6, 0.0  ;;  %v1023_v11 = vmax.f32 %v879_v7, 0.0 }
 0x124   : > { %v755_v12 = vpop.f32.mrf.mxu0  ;;  %v883_v13 = vpop.f32.mrf.mxu1 }
 0x125   : > { %v1590_v14 = vpack.c.bf16 %v991_v10, %v991_v10  ;;  %v1622_v15 = vpack.c.bf16 %v1023_v11, %v1023_v11  ;;  %v756_v16 = vadd.f32 %v1994_v17, %v755_v12  ;;  %v884_v18 = vadd.f32 %v1994_v17, %v883_v13 }
 0x126   : > { %v757_v19 = vpop.f32.mrf.mxu0  ;;  %v885_v20 = vpop.f32.mrf.mxu1 }
 0x127   : > { %1312 = vst.msk [vmem:[%s2002_s4 + $0x14] sm:$0xf] %vm1306_vm0, %v1590_v14  ;;  %1344 = vst.msk [vmem:[%s2002_s4 + $0x94] sm:$0xf] %vm1306_vm0, %v1622_v15  ;;  %v992_v21 = vmax.f32 %v756_v16, 0.0  ;;  %v1024_v22 = vmax.f32 %v884_v18, 0.0 }
 0x128   : > { %v758_v23 = vpop.f32.mrf.mxu0  ;;  %v886_v24 = vpop.f32.mrf.mxu1 }
 0x129   : > { %v1591_v25 = vpack.c.bf16 %v992_v21, %v992_v21  ;;  %v1623_v26 = vpack.c.bf16 %v1024_v22, %v1024_v22  ;;  %v759_v27 = vadd.f32 %v1994_v17, %v758_v23  ;;  %v887_v28 = vadd.f32 %v1994_v17, %v886_v24 }
 0x12a   : > { %v760_v29 = vpop.f32.mrf.mxu0  ;;  %v888_v30 = vpop.f32.mrf.mxu1 }
 0x12b   : > { %1313 = vst.msk [vmem:[%s2002_s4 + $0x18] sm:$0xf] %vm1306_vm0, %v1591_v25  ;;  %1345 = vst.msk [vmem:[%s2002_s4 + $0x98] sm:$0xf] %vm1306_vm0, %v1623_v26  ;;  %v993_v31 = vmax.f32 %v759_v27, 0.0  ;;  %v1025_v32 = vmax.f32 %v887_v28, 0.0 }
 0x12c   : > { %v763_v33 = vpop.f32.mrf.mxu0  ;;  %v891_v34 = vpop.f32.mrf.mxu1 }
 0x12d   : > { %v1592_v35 = vpack.c.bf16 %v993_v31, %v993_v31  ;;  %v1624_v36 = vpack.c.bf16 %v1025_v32, %v1025_v32  ;;  %v764_v37 = vadd.f32 %v1994_v17, %v763_v33  ;;  %v892_v38 = vadd.f32 %v1994_v17, %v891_v34 }
 0x12e   : > { %v765_v39 = vpop.f32.mrf.mxu0  ;;  %v893_v40 = vpop.f32.mrf.mxu1 }
 0x12f   : > { %1314 = vst.msk [vmem:[%s2002_s4 + $0x1c] sm:$0xf] %vm1306_vm0, %v1592_v35  ;;  %1346 = vst.msk [vmem:[%s2002_s4 + $0x9c] sm:$0xf] %vm1306_vm0, %v1624_v36  ;;  %v994_v41 = vmax.f32 %v764_v37, 0.0  ;;  %v1026_v42 = vmax.f32 %v892_v38, 0.0 }
 0x130   : > { %v766_v43 = vpop.f32.mrf.mxu0  ;;  %v894_v44 = vpop.f32.mrf.mxu1 }
 0x131   : > { %v1593_v45 = vpack.c.bf16 %v994_v41, %v994_v41  ;;  %v1625_v46 = vpack.c.bf16 %v1026_v42, %v1026_v42  ;;  %v767_v47 = vadd.f32 %v1994_v17, %v766_v43  ;;  %v895_v48 = vadd.f32 %v1994_v17, %v894_v44 }
 0x132   : > { %v768_v49 = vpop.f32.mrf.mxu0  ;;  %v896_v50 = vpop.f32.mrf.mxu1 }
 0x133   : > { %1315 = vst.msk [vmem:[%s2002_s4 + $0x20] sm:$0xf] %vm1306_vm0, %v1593_v45  ;;  %1347 = vst.msk [vmem:[%s2002_s4 + $0xa0] sm:$0xf] %vm1306_vm0, %v1625_v46  ;;  %v995_v51 = vmax.f32 %v767_v47, 0.0  ;;  %v1027_v52 = vmax.f32 %v895_v48, 0.0 }
 0x134   : > { %v771_v53 = vpop.f32.mrf.mxu0  ;;  %v899_v54 = vpop.f32.mrf.mxu1 }
 0x135   : > { %v1594_v55 = vpack.c.bf16 %v995_v51, %v995_v51  ;;  %v1626_v56 = vpack.c.bf16 %v1027_v52, %v1027_v52  ;;  %v772_v57 = vadd.f32 %v1994_v17, %v771_v53  ;;  %v900_v58 = vadd.f32 %v1994_v17, %v899_v54 }
 0x136   : > { %v773_v59 = vpop.f32.mrf.mxu0  ;;  %v901_v60 = vpop.f32.mrf.mxu1 }
 0x137   : > { %1316 = vst.msk [vmem:[%s2002_s4 + $0x24] sm:$0xf] %vm1306_vm0, %v1594_v55  ;;  %1348 = vst.msk [vmem:[%s2002_s4 + $0xa4] sm:$0xf] %vm1306_vm0, %v1626_v56  ;;  %v996_v61 = vmax.f32 %v772_v57, 0.0  ;;  %v1028_v62 = vmax.f32 %v900_v58, 0.0 }
 0x138   : > { %v774_v63 = vpop.f32.mrf.mxu0  ;;  %v902_v0 = vpop.f32.mrf.mxu1 }
 0x139   : > { %v1595_v1 = vpack.c.bf16 %v996_v61, %v996_v61  ;;  %v1627_v2 = vpack.c.bf16 %v1028_v62, %v1028_v62  ;;  %v775_v3 = vadd.f32 %v1994_v17, %v774_v63  ;;  %v903_v4 = vadd.f32 %v1994_v17, %v902_v0 }
 0x13a   : > { %v776_v5 = vpop.f32.mrf.mxu0  ;;  %v904_v6 = vpop.f32.mrf.mxu1 }
 0x13b   : > { %1317 = vst.msk [vmem:[%s2002_s4 + $0x28] sm:$0xf] %vm1306_vm0, %v1595_v1  ;;  %1349 = vst.msk [vmem:[%s2002_s4 + $0xa8] sm:$0xf] %vm1306_vm0, %v1627_v2  ;;  %v997_v7 = vmax.f32 %v775_v3, 0.0  ;;  %v1029_v8 = vmax.f32 %v903_v4, 0.0 }
 0x13c   : > { %v779_v9 = vpop.f32.mrf.mxu0  ;;  %v907_v10 = vpop.f32.mrf.mxu1 }
 0x13d   : > { %v1596_v11 = vpack.c.bf16 %v997_v7, %v997_v7  ;;  %v1628_v12 = vpack.c.bf16 %v1029_v8, %v1029_v8  ;;  %v780_v13 = vadd.f32 %v1994_v17, %v779_v9  ;;  %v908_v14 = vadd.f32 %v1994_v17, %v907_v10 }
 0x13e   : > { %v781_v15 = vpop.f32.mrf.mxu0  ;;  %v909_v16 = vpop.f32.mrf.mxu1 }
 0x13f   : > { %1318 = vst.msk [vmem:[%s2002_s4 + $0x2c] sm:$0xf] %vm1306_vm0, %v1596_v11  ;;  %1350 = vst.msk [vmem:[%s2002_s4 + $0xac] sm:$0xf] %vm1306_vm0, %v1628_v12  ;;  %v998_v18 = vmax.f32 %v780_v13, 0.0  ;;  %v1030_v19 = vmax.f32 %v908_v14, 0.0 }
 0x140   : > { %v782_v20 = vpop.f32.mrf.mxu0  ;;  %v910_v21 = vpop.f32.mrf.mxu1 }
 0x141   : > { %v1597_v22 = vpack.c.bf16 %v998_v18, %v998_v18  ;;  %v1629_v23 = vpack.c.bf16 %v1030_v19, %v1030_v19  ;;  %v783_v24 = vadd.f32 %v1994_v17, %v782_v20  ;;  %v911_v25 = vadd.f32 %v1994_v17, %v910_v21 }
 0x142   : > { %v784_v26 = vpop.f32.mrf.mxu0  ;;  %v912_v27 = vpop.f32.mrf.mxu1 }
 0x143   : > { %1319 = vst.msk [vmem:[%s2002_s4 + $0x30] sm:$0xf] %vm1306_vm0, %v1597_v22  ;;  %1351 = vst.msk [vmem:[%s2002_s4 + $0xb0] sm:$0xf] %vm1306_vm0, %v1629_v23  ;;  %v999_v28 = vmax.f32 %v783_v24, 0.0  ;;  %v1031_v29 = vmax.f32 %v911_v25, 0.0 }
 0x144   : > { %v787_v30 = vpop.f32.mrf.mxu0  ;;  %v915_v31 = vpop.f32.mrf.mxu1 }
 0x145   : > { %v1598_v32 = vpack.c.bf16 %v999_v28, %v999_v28  ;;  %v1630_v33 = vpack.c.bf16 %v1031_v29, %v1031_v29  ;;  %v788_v34 = vadd.f32 %v1994_v17, %v787_v30  ;;  %v916_v35 = vadd.f32 %v1994_v17, %v915_v31 }
 0x146   : > { %v789_v36 = vpop.f32.mrf.mxu0  ;;  %v917_v37 = vpop.f32.mrf.mxu1 }
 0x147   : > { %1320 = vst.msk [vmem:[%s2002_s4 + $0x34] sm:$0xf] %vm1306_vm0, %v1598_v32  ;;  %1352 = vst.msk [vmem:[%s2002_s4 + $0xb4] sm:$0xf] %vm1306_vm0, %v1630_v33  ;;  %v1000_v38 = vmax.f32 %v788_v34, 0.0  ;;  %v1032_v39 = vmax.f32 %v916_v35, 0.0 }
 0x148   : > { %v790_v40 = vpop.f32.mrf.mxu0  ;;  %v918_v41 = vpop.f32.mrf.mxu1 }
 0x149   : > { %v1599_v42 = vpack.c.bf16 %v1000_v38, %v1000_v38  ;;  %v1631_v43 = vpack.c.bf16 %v1032_v39, %v1032_v39  ;;  %v791_v44 = vadd.f32 %v1994_v17, %v790_v40  ;;  %v919_v45 = vadd.f32 %v1994_v17, %v918_v41 }
 0x14a   : > { %v792_v46 = vpop.f32.mrf.mxu0  ;;  %v920_v47 = vpop.f32.mrf.mxu1 }
 0x14b   : > { %1321 = vst.msk [vmem:[%s2002_s4 + $0x38] sm:$0xf] %vm1306_vm0, %v1599_v42  ;;  %1353 = vst.msk [vmem:[%s2002_s4 + $0xb8] sm:$0xf] %vm1306_vm0, %v1631_v43  ;;  %v1001_v48 = vmax.f32 %v791_v44, 0.0  ;;  %v1033_v49 = vmax.f32 %v919_v45, 0.0 }
 0x14c   : > { %v795_v50 = vpop.f32.mrf.mxu0  ;;  %v923_v51 = vpop.f32.mrf.mxu1 }
 0x14d   : > { %v1600_v52 = vpack.c.bf16 %v1001_v48, %v1001_v48  ;;  %v1632_v53 = vpack.c.bf16 %v1033_v49, %v1033_v49  ;;  %v796_v54 = vadd.f32 %v1994_v17, %v795_v50  ;;  %v924_v55 = vadd.f32 %v1994_v17, %v923_v51 }
 0x14e   : > { %v797_v56 = vpop.f32.mrf.mxu0  ;;  %v925_v57 = vpop.f32.mrf.mxu1 }
 0x14f   : > { %1322 = vst.msk [vmem:[%s2002_s4 + $0x3c] sm:$0xf] %vm1306_vm0, %v1600_v52  ;;  %1354 = vst.msk [vmem:[%s2002_s4 + $0xbc] sm:$0xf] %vm1306_vm0, %v1632_v53  ;;  %v1002_v58 = vmax.f32 %v796_v54, 0.0  ;;  %v1034_v59 = vmax.f32 %v924_v55, 0.0 }
 0x150   : > { %v798_v60 = vpop.f32.mrf.mxu0  ;;  %v926_v61 = vpop.f32.mrf.mxu1 }
 0x151   : > { %v1601_v62 = vpack.c.bf16 %v1002_v58, %v1002_v58  ;;  %v1633_v63 = vpack.c.bf16 %v1034_v59, %v1034_v59  ;;  %v799_v0 = vadd.f32 %v1994_v17, %v798_v60  ;;  %v927_v1 = vadd.f32 %v1994_v17, %v926_v61 }
 0x152   : > { %v800_v2 = vpop.f32.mrf.mxu0  ;;  %v928_v3 = vpop.f32.mrf.mxu1 }
 0x153   : > { %1323 = vst.msk [vmem:[%s2002_s4 + $0x40] sm:$0xf] %vm1306_vm0, %v1601_v62  ;;  %1355 = vst.msk [vmem:[%s2002_s4 + $0xc0] sm:$0xf] %vm1306_vm0, %v1633_v63  ;;  %v1003_v4 = vmax.f32 %v799_v0, 0.0  ;;  %v1035_v5 = vmax.f32 %v927_v1, 0.0 }
 0x154   : > { %v803_v6 = vpop.f32.mrf.mxu0  ;;  %v931_v7 = vpop.f32.mrf.mxu1 }
 0x155   : > { %v1602_v8 = vpack.c.bf16 %v1003_v4, %v1003_v4  ;;  %v1634_v9 = vpack.c.bf16 %v1035_v5, %v1035_v5  ;;  %v804_v10 = vadd.f32 %v1994_v17, %v803_v6  ;;  %v932_v11 = vadd.f32 %v1994_v17, %v931_v7 }
 0x156   : > { %v805_v12 = vpop.f32.mrf.mxu0  ;;  %v933_v13 = vpop.f32.mrf.mxu1 }
 0x157   : > { %1324 = vst.msk [vmem:[%s2002_s4 + $0x44] sm:$0xf] %vm1306_vm0, %v1602_v8  ;;  %1356 = vst.msk [vmem:[%s2002_s4 + $0xc4] sm:$0xf] %vm1306_vm0, %v1634_v9  ;;  %v1004_v14 = vmax.f32 %v804_v10, 0.0  ;;  %v1036_v15 = vmax.f32 %v932_v11, 0.0 }
 0x158   : > { %v806_v16 = vpop.f32.mrf.mxu0  ;;  %v934_v18 = vpop.f32.mrf.mxu1 }
 0x159   : > { %v1603_v19 = vpack.c.bf16 %v1004_v14, %v1004_v14  ;;  %v1635_v20 = vpack.c.bf16 %v1036_v15, %v1036_v15  ;;  %v807_v21 = vadd.f32 %v1994_v17, %v806_v16  ;;  %v935_v22 = vadd.f32 %v1994_v17, %v934_v18 }
 0x15a   : > { %v808_v23 = vpop.f32.mrf.mxu0  ;;  %v936_v24 = vpop.f32.mrf.mxu1 }
 0x15b   : > { %1325 = vst.msk [vmem:[%s2002_s4 + $0x48] sm:$0xf] %vm1306_vm0, %v1603_v19  ;;  %1357 = vst.msk [vmem:[%s2002_s4 + $0xc8] sm:$0xf] %vm1306_vm0, %v1635_v20  ;;  %v1005_v25 = vmax.f32 %v807_v21, 0.0  ;;  %v1037_v26 = vmax.f32 %v935_v22, 0.0 }
 0x15c   : > { %v811_v27 = vpop.f32.mrf.mxu0  ;;  %v939_v28 = vpop.f32.mrf.mxu1 }
 0x15d   : > { %v1604_v29 = vpack.c.bf16 %v1005_v25, %v1005_v25  ;;  %v1636_v30 = vpack.c.bf16 %v1037_v26, %v1037_v26  ;;  %v812_v31 = vadd.f32 %v1994_v17, %v811_v27  ;;  %v940_v32 = vadd.f32 %v1994_v17, %v939_v28 }
 0x15e   : > { %v813_v33 = vpop.f32.mrf.mxu0  ;;  %v941_v34 = vpop.f32.mrf.mxu1 }
 0x15f   : > { %1326 = vst.msk [vmem:[%s2002_s4 + $0x4c] sm:$0xf] %vm1306_vm0, %v1604_v29  ;;  %1358 = vst.msk [vmem:[%s2002_s4 + $0xcc] sm:$0xf] %vm1306_vm0, %v1636_v30  ;;  %v1006_v35 = vmax.f32 %v812_v31, 0.0  ;;  %v1038_v36 = vmax.f32 %v940_v32, 0.0 }
 0x160   : > { %v814_v37 = vpop.f32.mrf.mxu0  ;;  %v942_v38 = vpop.f32.mrf.mxu1 }
 0x161   : > { %v1605_v39 = vpack.c.bf16 %v1006_v35, %v1006_v35  ;;  %v1637_v40 = vpack.c.bf16 %v1038_v36, %v1038_v36  ;;  %v815_v41 = vadd.f32 %v1994_v17, %v814_v37  ;;  %v943_v42 = vadd.f32 %v1994_v17, %v942_v38 }
 0x162   : > { %v816_v43 = vpop.f32.mrf.mxu0  ;;  %v944_v44 = vpop.f32.mrf.mxu1 }
 0x163   : > { %1327 = vst.msk [vmem:[%s2002_s4 + $0x50] sm:$0xf] %vm1306_vm0, %v1605_v39  ;;  %1359 = vst.msk [vmem:[%s2002_s4 + $0xd0] sm:$0xf] %vm1306_vm0, %v1637_v40  ;;  %v1007_v45 = vmax.f32 %v815_v41, 0.0  ;;  %v1039_v46 = vmax.f32 %v943_v42, 0.0 }
 0x164   : > { %v819_v47 = vpop.f32.mrf.mxu0  ;;  %v947_v48 = vpop.f32.mrf.mxu1 }
 0x165   : > { %v1606_v49 = vpack.c.bf16 %v1007_v45, %v1007_v45  ;;  %v1638_v50 = vpack.c.bf16 %v1039_v46, %v1039_v46  ;;  %v820_v51 = vadd.f32 %v1994_v17, %v819_v47  ;;  %v948_v52 = vadd.f32 %v1994_v17, %v947_v48 }
 0x166   : > { %v821_v53 = vpop.f32.mrf.mxu0  ;;  %v949_v54 = vpop.f32.mrf.mxu1 }
 0x167   : > { %1328 = vst.msk [vmem:[%s2002_s4 + $0x54] sm:$0xf] %vm1306_vm0, %v1606_v49  ;;  %1360 = vst.msk [vmem:[%s2002_s4 + $0xd4] sm:$0xf] %vm1306_vm0, %v1638_v50  ;;  %v1008_v55 = vmax.f32 %v820_v51, 0.0  ;;  %v1040_v56 = vmax.f32 %v948_v52, 0.0 }
 0x168   : > { %v822_v57 = vpop.f32.mrf.mxu0  ;;  %v950_v58 = vpop.f32.mrf.mxu1 }
 0x169   : > { %v1607_v59 = vpack.c.bf16 %v1008_v55, %v1008_v55  ;;  %v1639_v60 = vpack.c.bf16 %v1040_v56, %v1040_v56  ;;  %v823_v61 = vadd.f32 %v1994_v17, %v822_v57  ;;  %v951_v62 = vadd.f32 %v1994_v17, %v950_v58 }
 0x16a   : > { %v824_v63 = vpop.f32.mrf.mxu0  ;;  %v952_v0 = vpop.f32.mrf.mxu1 }
 0x16b   : > { %1329 = vst.msk [vmem:[%s2002_s4 + $0x58] sm:$0xf] %vm1306_vm0, %v1607_v59  ;;  %1361 = vst.msk [vmem:[%s2002_s4 + $0xd8] sm:$0xf] %vm1306_vm0, %v1639_v60  ;;  %v1009_v1 = vmax.f32 %v823_v61, 0.0  ;;  %v1041_v2 = vmax.f32 %v951_v62, 0.0 }
 0x16c   : > { %v827_v3 = vpop.f32.mrf.mxu0  ;;  %v955_v4 = vpop.f32.mrf.mxu1 }
 0x16d   : > { %v1608_v5 = vpack.c.bf16 %v1009_v1, %v1009_v1  ;;  %v1640_v6 = vpack.c.bf16 %v1041_v2, %v1041_v2  ;;  %v828_v7 = vadd.f32 %v1994_v17, %v827_v3  ;;  %v956_v8 = vadd.f32 %v1994_v17, %v955_v4 }
 0x16e   : > { %v829_v9 = vpop.f32.mrf.mxu0  ;;  %v957_v10 = vpop.f32.mrf.mxu1 }
 0x16f   : > { %1330 = vst.msk [vmem:[%s2002_s4 + $0x5c] sm:$0xf] %vm1306_vm0, %v1608_v5  ;;  %1362 = vst.msk [vmem:[%s2002_s4 + $0xdc] sm:$0xf] %vm1306_vm0, %v1640_v6  ;;  %v1010_v11 = vmax.f32 %v828_v7, 0.0  ;;  %v1042_v12 = vmax.f32 %v956_v8, 0.0 }
 0x170   : > { %v830_v13 = vpop.f32.mrf.mxu0  ;;  %v958_v14 = vpop.f32.mrf.mxu1 }
 0x171   : > { %v1609_v15 = vpack.c.bf16 %v1010_v11, %v1010_v11  ;;  %v1641_v16 = vpack.c.bf16 %v1042_v12, %v1042_v12  ;;  %v831_v18 = vadd.f32 %v1994_v17, %v830_v13  ;;  %v959_v19 = vadd.f32 %v1994_v17, %v958_v14 }
 0x172   : > { %v832_v20 = vpop.f32.mrf.mxu0  ;;  %v960_v21 = vpop.f32.mrf.mxu1 }
 0x173   : > { %1331 = vst.msk [vmem:[%s2002_s4 + $0x60] sm:$0xf] %vm1306_vm0, %v1609_v15  ;;  %1363 = vst.msk [vmem:[%s2002_s4 + $0xe0] sm:$0xf] %vm1306_vm0, %v1641_v16  ;;  %v1011_v22 = vmax.f32 %v831_v18, 0.0  ;;  %v1043_v23 = vmax.f32 %v959_v19, 0.0 }
 0x174   : > { %v835_v24 = vpop.f32.mrf.mxu0  ;;  %v963_v25 = vpop.f32.mrf.mxu1 }
 0x175   : > { %v1610_v26 = vpack.c.bf16 %v1011_v22, %v1011_v22  ;;  %v1642_v27 = vpack.c.bf16 %v1043_v23, %v1043_v23  ;;  %v836_v28 = vadd.f32 %v1994_v17, %v835_v24  ;;  %v964_v29 = vadd.f32 %v1994_v17, %v963_v25 }
 0x176   : > { %v837_v30 = vpop.f32.mrf.mxu0  ;;  %v965_v31 = vpop.f32.mrf.mxu1 }
 0x177   : > { %1332 = vst.msk [vmem:[%s2002_s4 + $0x64] sm:$0xf] %vm1306_vm0, %v1610_v26  ;;  %1364 = vst.msk [vmem:[%s2002_s4 + $0xe4] sm:$0xf] %vm1306_vm0, %v1642_v27  ;;  %v1012_v32 = vmax.f32 %v836_v28, 0.0  ;;  %v1044_v33 = vmax.f32 %v964_v29, 0.0 }
 0x178   : > { %v838_v34 = vpop.f32.mrf.mxu0  ;;  %v966_v35 = vpop.f32.mrf.mxu1 }
 0x179   : > { %v1611_v36 = vpack.c.bf16 %v1012_v32, %v1012_v32  ;;  %v1643_v37 = vpack.c.bf16 %v1044_v33, %v1044_v33  ;;  %v839_v38 = vadd.f32 %v1994_v17, %v838_v34  ;;  %v967_v39 = vadd.f32 %v1994_v17, %v966_v35 }
 0x17a   : > { %v840_v40 = vpop.f32.mrf.mxu0  ;;  %v968_v41 = vpop.f32.mrf.mxu1 }
 0x17b   : > { %1333 = vst.msk [vmem:[%s2002_s4 + $0x68] sm:$0xf] %vm1306_vm0, %v1611_v36  ;;  %1365 = vst.msk [vmem:[%s2002_s4 + $0xe8] sm:$0xf] %vm1306_vm0, %v1643_v37  ;;  %v1013_v42 = vmax.f32 %v839_v38, 0.0  ;;  %v1045_v43 = vmax.f32 %v967_v39, 0.0 }
 0x17c   : > { %v843_v44 = vpop.f32.mrf.mxu0  ;;  %v971_v45 = vpop.f32.mrf.mxu1 }
 0x17d   : > { %v1612_v46 = vpack.c.bf16 %v1013_v42, %v1013_v42  ;;  %v1644_v47 = vpack.c.bf16 %v1045_v43, %v1045_v43  ;;  %v844_v48 = vadd.f32 %v1994_v17, %v843_v44  ;;  %v972_v49 = vadd.f32 %v1994_v17, %v971_v45 }
 0x17e   : > { %v845_v50 = vpop.f32.mrf.mxu0  ;;  %v973_v51 = vpop.f32.mrf.mxu1 }
 0x17f   : > { %1334 = vst.msk [vmem:[%s2002_s4 + $0x6c] sm:$0xf] %vm1306_vm0, %v1612_v46  ;;  %1366 = vst.msk [vmem:[%s2002_s4 + $0xec] sm:$0xf] %vm1306_vm0, %v1644_v47  ;;  %v1014_v52 = vmax.f32 %v844_v48, 0.0  ;;  %v1046_v53 = vmax.f32 %v972_v49, 0.0 }
 0x180   : > { %v846_v54 = vpop.f32.mrf.mxu0  ;;  %v974_v55 = vpop.f32.mrf.mxu1 }
 0x181   : > { %v1613_v56 = vpack.c.bf16 %v1014_v52, %v1014_v52  ;;  %v1645_v57 = vpack.c.bf16 %v1046_v53, %v1046_v53  ;;  %v847_v58 = vadd.f32 %v1994_v17, %v846_v54  ;;  %v975_v59 = vadd.f32 %v1994_v17, %v974_v55 }
 0x182   : > { %v848_v60 = vpop.f32.mrf.mxu0  ;;  %v976_v61 = vpop.f32.mrf.mxu1 }
 0x183   : > { %1335 = vst.msk [vmem:[%s2002_s4 + $0x70] sm:$0xf] %vm1306_vm0, %v1613_v56  ;;  %1367 = vst.msk [vmem:[%s2002_s4 + $0xf0] sm:$0xf] %vm1306_vm0, %v1645_v57  ;;  %v1015_v62 = vmax.f32 %v847_v58, 0.0  ;;  %v1047_v63 = vmax.f32 %v975_v59, 0.0 }
 0x184   : > { %v851_v0 = vpop.f32.mrf.mxu0  ;;  %v979_v1 = vpop.f32.mrf.mxu1 }
 0x185   : > { %v1614_v2 = vpack.c.bf16 %v1015_v62, %v1015_v62  ;;  %v1646_v3 = vpack.c.bf16 %v1047_v63, %v1047_v63  ;;  %v852_v4 = vadd.f32 %v1994_v17, %v851_v0  ;;  %v980_v5 = vadd.f32 %v1994_v17, %v979_v1 }
 0x186   : > { %v853_v6 = vpop.f32.mrf.mxu0  ;;  %v981_v7 = vpop.f32.mrf.mxu1 }
 0x187   : > { %1336 = vst.msk [vmem:[%s2002_s4 + $0x74] sm:$0xf] %vm1306_vm0, %v1614_v2  ;;  %1368 = vst.msk [vmem:[%s2002_s4 + $0xf4] sm:$0xf] %vm1306_vm0, %v1646_v3  ;;  %v1016_v8 = vmax.f32 %v852_v4, 0.0  ;;  %v1048_v9 = vmax.f32 %v980_v5, 0.0 }
 0x188   : > { %v854_v10 = vpop.f32.mrf.mxu0  ;;  %v982_v11 = vpop.f32.mrf.mxu1 }
 0x189   : > { %v1615_v12 = vpack.c.bf16 %v1016_v8, %v1016_v8  ;;  %v1647_v13 = vpack.c.bf16 %v1048_v9, %v1048_v9  ;;  %v855_v14 = vadd.f32 %v1994_v17, %v854_v10  ;;  %v983_v15 = vadd.f32 %v1994_v17, %v982_v11 }
 0x18a   : > { %v856_v16 = vpop.f32.mrf.mxu0  ;;  %v984_v18 = vpop.f32.mrf.mxu1 }
 0x18b   : > { %1337 = vst.msk [vmem:[%s2002_s4 + $0x78] sm:$0xf] %vm1306_vm0, %v1615_v12  ;;  %1369 = vst.msk [vmem:[%s2002_s4 + $0xf8] sm:$0xf] %vm1306_vm0, %v1647_v13  ;;  %v1017_v19 = vmax.f32 %v855_v14, 0.0  ;;  %v1049_v20 = vmax.f32 %v983_v15, 0.0 }
 0x18d   : > { %v1616_v21 = vpack.c.bf16 %v1017_v19, %v1017_v19  ;;  %v1648_v22 = vpack.c.bf16 %v1049_v20, %v1049_v20 }
 0x18f   : > { %1338 = vst.msk [vmem:[%s2002_s4 + $0x7c] sm:$0xf] %vm1306_vm0, %v1616_v21  ;;  %1370 = vst.msk [vmem:[%s2002_s4 + $0xfc] sm:$0xf] %vm1306_vm0, %v1648_v22 }
 0x190 PF: > { %s13_s12 = sadd.s32 1, %s1808_s12  }
 0x191   : > { %p10_p4 = scmp.ge.s32.totalorder %s13_s12, 4  }
 0x193   :  { %12 = sbr.rel (!%p10_p4) target bundleno = 1 (0x1), region = 62 }

// kernel: predictor_forward.5
= control target key start
LH: loop header
LB: loop body
LE: loop exit
PB: predicated region body
PF: predicated region fallthrough
CT: control target
= control target key end

     0   :  { %vm880_vm0 = vcmask 519168   ;;  %s1637_s1 = inlined_call_operand.vmem [shape: bf16[512,64], index: 1, kind: input, shape index: {}]   ;;  %s1638_s0 = inlined_call_operand.vmem [shape: bf16[168,512], index: 0, kind: input, shape index: {}]   ;;  %s1639_s2 = inlined_call_operand.vmem [shape: f32[1,64], index: 2, kind: input, shape index: {}]   ;;  %s1640_s3 = inlined_call_operand.vmem [shape: bf16[168,64], index: 3, kind: output, shape index: {}]  }
   0x1   :  { %v1189_v0 = vld [vmem:[%s1637_s1 + $0x78] sm:$0xff]   ;;  %v1193_v4 = vld [vmem:[%s1637_s1 + $0x70] sm:$0xff]   ;;  %v1197_v8 = vld [vmem:[%s1637_s1 + $0x68] sm:$0xff]  }
   0x2   :  { %v1190_v1 = vld [vmem:[%s1637_s1 + $0xf8] sm:$0xff]   ;;  %1025 = vmatprep.subr.bf16.mxu0 %v1189_v0  ;;  %v1194_v5 = vld [vmem:[%s1637_s1 + $0xf0] sm:$0xff]   ;;  %v1198_v9 = vld [vmem:[%s1637_s1 + $0xe8] sm:$0xff]  }
   0x3   :  { %v1191_v2 = vld [vmem:[%s1637_s1 + $0x38] sm:$0xff]   ;;  %1107 = vmatprep.subr.bf16.mxu1 %v1190_v1  ;;  %v1195_v6 = vld [vmem:[%s1637_s1 + $0x30] sm:$0xff]   ;;  %v1199_v10 = vld [vmem:[%s1637_s1 + $0x28] sm:$0xff]  }
   0x4   :  { %v1192_v3 = vld [vmem:[%s1637_s1 + $0xb8] sm:$0xff]   ;;  %1026 = vmatpush3.bf16.msra.mxu0 %v1191_v2  ;;  %v1196_v7 = vld [vmem:[%s1637_s1 + $0xb0] sm:$0xff]   ;;  %v1200_v11 = vld [vmem:[%s1637_s1 + $0xa8] sm:$0xff]  }
   0x5   :  { %1108 = vmatpush3.bf16.msra.mxu1 %v1192_v3  ;;  %1027 = vmatprep.subr.bf16.mxu0 %v1193_v4  ;;  %v1201_v12 = vld [vmem:[%s1637_s1 + $0x60] sm:$0xff]   ;;  %v1205_v16 = vld [vmem:[%s1637_s1 + $0x58] sm:$0xff]   ;;  %v1209_v20 = vld [vmem:[%s1637_s1 + $0x50] sm:$0xff]  }
   0x6   :  { %1109 = vmatprep.subr.bf16.mxu1 %v1194_v5  ;;  %v1202_v13 = vld [vmem:[%s1637_s1 + $0xe0] sm:$0xff]   ;;  %v1206_v17 = vld [vmem:[%s1637_s1 + $0xd8] sm:$0xff]   ;;  %v1210_v21 = vld [vmem:[%s1637_s1 + $0xd0] sm:$0xff]  }
   0x7   :  { %v1203_v14 = vld [vmem:[%s1637_s1 + $0x20] sm:$0xff]   ;;  %v1207_v18 = vld [vmem:[%s1637_s1 + $0x18] sm:$0xff]   ;;  %v1211_v22 = vld [vmem:[%s1637_s1 + $0x10] sm:$0xff]  }
   0x8   :  { %1028 = vmatpush3.bf16.msra.mxu0 %v1195_v6  ;;  %v1204_v15 = vld [vmem:[%s1637_s1 + $0xa0] sm:$0xff]   ;;  %v1208_v19 = vld [vmem:[%s1637_s1 + $0x98] sm:$0xff]   ;;  %v1212_v23 = vld [vmem:[%s1637_s1 + $0x90] sm:$0xff]  }
   0x9   :  { %1110 = vmatpush3.bf16.msra.mxu1 %v1196_v7  ;;  %1029 = vmatprep.subr.bf16.mxu0 %v1197_v8  ;;  %v1213_v24 = vld [vmem:[%s1637_s1 + $0x48] sm:$0xff]   ;;  %v1217_v28 = vld [vmem:[%s1637_s1 + $0x40] sm:$0xff]  }
   0xa   :  { %1111 = vmatprep.subr.bf16.mxu1 %v1198_v9  ;;  %v1214_v25 = vld [vmem:[%s1637_s1 + $0xc8] sm:$0xff]   ;;  %v1218_v29 = vld [vmem:[%s1637_s1 + $0xc0] sm:$0xff]  }
   0xb   :  { %v1215_v26 = vld [vmem:[%s1637_s1 + $0x8] sm:$0xff]   ;;  %v1219_v30 = vld [vmem:[%s1637_s1] sm:$0xff]  }
   0xc   :  { %1030 = vmatpush3.bf16.msra.mxu0 %v1199_v10  ;;  %v1216_v27 = vld [vmem:[%s1637_s1 + $0x88] sm:$0xff]   ;;  %v1220_v31 = vld [vmem:[%s1637_s1 + $0x80] sm:$0xff]  }
   0xd   :  { %1112 = vmatpush3.bf16.msra.mxu1 %v1200_v11  ;;  %1031 = vmatprep.subr.bf16.mxu0 %v1201_v12  ;;  %v1221_v32 = vld [vmem:[%s1638_s0] ss:$16 sps:$4 sm:$0xff]   ;;  %v1223_v33 = vld [vmem:[%s1638_s0 + $0x4] ss:$16 sps:$4 sm:$0xff]   ;;  %v1224_v34 = vld [vmem:[%s1638_s0 + $0x8] ss:$16 sps:$4 sm:$0xff]  }
   0xe   :  { %1113 = vmatprep.subr.bf16.mxu1 %v1202_v13  ;;  %v1226_v35 = vld [vmem:[%s1638_s0 + $0xc] ss:$16 sps:$4 sm:$0xff]   ;;  %566 = vmatprep.mubr.bf16.mxu0 %v1223_v33  ;;  %v1227_v36 = vld [vmem:[%s1638_s0 + $0x24] ss:$16 sps:$4 sm:$0xff]   ;;  %v1231_v38 = vld [vmem:[%s1638_s0 + $0x20] ss:$16 sps:$4 sm:$0xff]  }
   0xf   :  { %686 = vmatprep.mubr.bf16.mxu1 %v1226_v35  ;;  %v1229_v37 = vld [vmem:[%s1638_s0 + $0x2c] ss:$16 sps:$4 sm:$0xff]   ;;  %v1232_v39 = vld [vmem:[%s1638_s0 + $0x28] ss:$16 sps:$4 sm:$0xff]   ;;  %v1233_v40 = vld [vmem:[%s1638_s0 + $0x44] ss:$16 sps:$4 sm:$0xff]  }
  0x10   :  { %1032 = vmatpush3.bf16.msra.mxu0 %v1203_v14  ;;  %v1235_v41 = vld [vmem:[%s1638_s0 + $0x4c] ss:$16 sps:$4 sm:$0xff]   ;;  %v1237_v42 = vld [vmem:[%s1638_s0 + $0x40] ss:$16 sps:$4 sm:$0xff]   ;;  %v1238_v43 = vld [vmem:[%s1638_s0 + $0x48] ss:$16 sps:$4 sm:$0xff]  }
  0x11   :  { %1114 = vmatpush3.bf16.msra.mxu1 %v1204_v15  ;;  %1033 = vmatprep.subr.bf16.mxu0 %v1205_v16  ;;  %v1239_v44 = vld [vmem:[%s1638_s0 + $0x64] ss:$16 sps:$4 sm:$0xff]   ;;  %v1241_v45 = vld [vmem:[%s1638_s0 + $0x6c] ss:$16 sps:$4 sm:$0xff]   ;;  %v1243_v46 = vld [vmem:[%s1638_s0 + $0x60] ss:$16 sps:$4 sm:$0xff]  }
  0x12   :  { %1115 = vmatprep.subr.bf16.mxu1 %v1206_v17  ;;  %v1244_v47 = vld [vmem:[%s1638_s0 + $0x68] ss:$16 sps:$4 sm:$0xff]   ;;  %v1245_v48 = vld [vmem:[%s1638_s0 + $0x84] ss:$16 sps:$4 sm:$0xff]   ;;  %v1247_v49 = vld [vmem:[%s1638_s0 + $0x8c] ss:$16 sps:$4 sm:$0xff]  }
  0x13   :  { %v1249_v50 = vld [vmem:[%s1638_s0 + $0x80] ss:$16 sps:$4 sm:$0xff]   ;;  %v1250_v51 = vld [vmem:[%s1638_s0 + $0x88] ss:$16 sps:$4 sm:$0xff]   ;;  %v1251_v52 = vld [vmem:[%s1638_s0 + $0xa4] ss:$16 sps:$4 sm:$0xff]  }
  0x14   :  { %1034 = vmatpush3.bf16.msra.mxu0 %v1207_v18  ;;  %v1253_v53 = vld [vmem:[%s1638_s0 + $0xac] ss:$16 sps:$4 sm:$0xff]   ;;  %v1255_v54 = vld [vmem:[%s1638_s0 + $0xa0] ss:$16 sps:$4 sm:$0xff]   ;;  %v1256_v55 = vld [vmem:[%s1638_s0 + $0xa8] ss:$16 sps:$4 sm:$0xff]  }
  0x15   :  { %1116 = vmatpush3.bf16.msra.mxu1 %v1208_v19  ;;  %1035 = vmatprep.subr.bf16.mxu0 %v1209_v20  ;;  %v1257_v56 = vld [vmem:[%s1638_s0 + $0xc4] ss:$16 sps:$4 sm:$0xff]   ;;  %v1259_v57 = vld [vmem:[%s1638_s0 + $0xcc] ss:$16 sps:$4 sm:$0xff]   ;;  %v1261_v58 = vld [vmem:[%s1638_s0 + $0xc0] ss:$16 sps:$4 sm:$0xff]  }
  0x16   :  { %1117 = vmatprep.subr.bf16.mxu1 %v1210_v21  ;;  %v1262_v59 = vld [vmem:[%s1638_s0 + $0xc8] ss:$16 sps:$4 sm:$0xff]   ;;  %v1263_v60 = vld [vmem:[%s1638_s0 + $0xe4] ss:$16 sps:$4 sm:$0xff]   ;;  %v1265_v61 = vld [vmem:[%s1638_s0 + $0xec] ss:$16 sps:$4 sm:$0xff]  }
  0x17   :  { %v1267_v62 = vld [vmem:[%s1638_s0 + $0xe0] ss:$16 sps:$4 sm:$0xff]   ;;  %v1268_v63 = vld [vmem:[%s1638_s0 + $0xe8] ss:$16 sps:$4 sm:$0xff]   ;;  %v1269_v0 = vld [vmem:[%s1638_s0 + $0x104] ss:$16 sps:$4 sm:$0xff]  }
  0x18   :  { %1036 = vmatpush3.bf16.msra.mxu0 %v1211_v22  ;;  %v1271_v1 = vld [vmem:[%s1638_s0 + $0x10c] ss:$16 sps:$4 sm:$0xff]   ;;  %v1273_v2 = vld [vmem:[%s1638_s0 + $0x100] ss:$16 sps:$4 sm:$0xff]   ;;  %v1274_v3 = vld [vmem:[%s1638_s0 + $0x108] ss:$16 sps:$4 sm:$0xff]  }
  0x19   :  { %1118 = vmatpush3.bf16.msra.mxu1 %v1212_v23  ;;  %1037 = vmatprep.subr.bf16.mxu0 %v1213_v24  ;;  %v1275_v4 = vld [vmem:[%s1638_s0 + $0x124] ss:$16 sps:$4 sm:$0xff]   ;;  %v1277_v5 = vld [vmem:[%s1638_s0 + $0x12c] ss:$16 sps:$4 sm:$0xff]   ;;  %v1279_v8 = vld [vmem:[%s1638_s0 + $0x120] ss:$16 sps:$4 sm:$0xff]  }
  0x1a   :  { %1119 = vmatprep.subr.bf16.mxu1 %v1214_v25  ;;  %v55_v6 = vld [vmem:[%s1638_s0 + $0x140] sm:$0xff]  ;;  %v56_v7 = vld [vmem:[%s1638_s0 + $0x148] sm:$0xff] }
  0x1b   :  { %v1280_v9 = vld [vmem:[%s1638_s0 + $0x128] ss:$16 sps:$4 sm:$0xff]   ;;  %v948_v10 = vcombine.high %v55_v6, %v55_v6  ;;  %v950_v11 = vcombine.high %v56_v7, %v56_v7  ;;  %v947_v12 = vcombine.low %v55_v6, %v55_v6  ;;  %v949_v13 = vcombine.low %v56_v7, %v56_v7  ;;  %v1530_v16 = vld [vmem:[%s1639_s2] ss:$0 sm:$0xff] }
  0x1c   :  { %1038 = vmatpush3.bf16.msra.mxu0 %v1215_v26 }
  0x1d   :  { %1120 = vmatpush3.bf16.msra.mxu1 %v1216_v27  ;;  %1039 = vmatprep.subr.bf16.mxu0 %v1217_v28 }
  0x1e   :  { %1121 = vmatprep.subr.bf16.mxu1 %v1218_v29 }
  0x20   :  { %1040 = vmatpush3.bf16.msra.mxu0 %v1219_v30 }
  0x21   :  { %1122 = vmatpush3.bf16.msra.mxu1 %v1220_v31 }
  0x23   :  { %567 = vmatmul.mubr.bf16.vlgmr.msra.gmra.mxu0 %v1221_v32 }
  0x24   :  { %687 = vmatmul.mubr.bf16.vlgmr.msra.gmra.mxu1 %v1224_v34  ;;  %574 = vmatprep.mubr.bf16.mxu0 %v1227_v36 }
  0x25   :  { %694 = vmatprep.mubr.bf16.mxu1 %v1229_v37 }
  0x2b   :  { %575 = vmatmul.mubr.bf16.gmra.mxu0 %v1231_v38 }
  0x2c   :  { %695 = vmatmul.mubr.bf16.gmra.mxu1 %v1232_v39  ;;  %582 = vmatprep.mubr.bf16.mxu0 %v1233_v40 }
  0x2d   :  { %702 = vmatprep.mubr.bf16.mxu1 %v1235_v41 }
  0x33   :  { %583 = vmatmul.mubr.bf16.gmra.mxu0 %v1237_v42 }
  0x34   :  { %703 = vmatmul.mubr.bf16.gmra.mxu1 %v1238_v43  ;;  %590 = vmatprep.mubr.bf16.mxu0 %v1239_v44 }
  0x35   :  { %710 = vmatprep.mubr.bf16.mxu1 %v1241_v45 }
  0x3b   :  { %591 = vmatmul.mubr.bf16.gmra.mxu0 %v1243_v46 }
  0x3c   :  { %711 = vmatmul.mubr.bf16.gmra.mxu1 %v1244_v47  ;;  %598 = vmatprep.mubr.bf16.mxu0 %v1245_v48 }
  0x3d   :  { %718 = vmatprep.mubr.bf16.mxu1 %v1247_v49 }
  0x43   :  { %599 = vmatmul.mubr.bf16.gmra.mxu0 %v1249_v50 }
  0x44   :  { %719 = vmatmul.mubr.bf16.gmra.mxu1 %v1250_v51  ;;  %606 = vmatprep.mubr.bf16.mxu0 %v1251_v52 }
  0x45   :  { %726 = vmatprep.mubr.bf16.mxu1 %v1253_v53 }
  0x4b   :  { %607 = vmatmul.mubr.bf16.gmra.mxu0 %v1255_v54 }
  0x4c   :  { %727 = vmatmul.mubr.bf16.gmra.mxu1 %v1256_v55  ;;  %614 = vmatprep.mubr.bf16.mxu0 %v1257_v56 }
  0x4d   :  { %734 = vmatprep.mubr.bf16.mxu1 %v1259_v57 }
  0x53   :  { %615 = vmatmul.mubr.bf16.gmra.mxu0 %v1261_v58 }
  0x54   :  { %735 = vmatmul.mubr.bf16.gmra.mxu1 %v1262_v59  ;;  %622 = vmatprep.mubr.bf16.mxu0 %v1263_v60 }
  0x55   :  { %742 = vmatprep.mubr.bf16.mxu1 %v1265_v61 }
  0x5b   :  { %623 = vmatmul.mubr.bf16.gmra.mxu0 %v1267_v62 }
  0x5c   :  { %743 = vmatmul.mubr.bf16.gmra.mxu1 %v1268_v63  ;;  %630 = vmatprep.mubr.bf16.mxu0 %v1269_v0 }
  0x5d   :  { %750 = vmatprep.mubr.bf16.mxu1 %v1271_v1 }
  0x63   :  { %631 = vmatmul.mubr.bf16.gmra.mxu0 %v1273_v2 }
  0x64   :  { %751 = vmatmul.mubr.bf16.gmra.mxu1 %v1274_v3  ;;  %638 = vmatprep.mubr.bf16.mxu0 %v1275_v4 }
  0x65   :  { %758 = vmatprep.mubr.bf16.mxu1 %v1277_v5 }
  0x6b   :  { %639 = vmatmul.mubr.bf16.gmra.mxu0 %v1279_v8 }
  0x6c   :  { %759 = vmatmul.mubr.bf16.gmra.mxu1 %v1280_v9  ;;  %646 = vmatprep.mubr.bf16.mxu0 %v948_v10 }
  0x6d   :  { %766 = vmatprep.mubr.bf16.mxu1 %v950_v11 }
  0x73   :  { %647 = vmatmul.mubr.bf16.gmra.mxu0 %v947_v12 }
  0x74   :  { %767 = vmatmul.mubr.bf16.gmra.mxu1 %v949_v13 }
  0xe3   :  { %v1041_v14 = vpop.f32.mrf.mxu0 }
  0xe4   :  { %v1123_v15 = vpop.f32.mrf.mxu1 }
  0xe5   :  { %v1042_v17 = vpop.f32.mrf.mxu0 }
  0xe6   :  { %v1043_v18 = vadd.f32 %v1042_v17, %v1041_v14  ;;  %v1124_v19 = vpop.f32.mrf.mxu1 }
  0xe7   :  { %v1044_v20 = vpop.f32.mrf.mxu0  ;;  %v1125_v22 = vadd.f32 %v1124_v19, %v1123_v15 }
  0xe8   :  { %v569_v21 = vadd.f32 %v1043_v18, %v1530_v16  ;;  %v1126_v23 = vpop.f32.mrf.mxu1 }
  0xe9   :  { %v1045_v24 = vpop.f32.mrf.mxu0 }
  0xea   :  { %v689_v25 = vadd.f32 %v1125_v22, %v569_v21  ;;  %v1046_v26 = vadd.f32 %v1045_v24, %v1044_v20  ;;  %v1127_v27 = vpop.f32.mrf.mxu1 }
  0xeb   :  { %v1047_v28 = vpop.f32.mrf.mxu0  ;;  %v1128_v31 = vadd.f32 %v1127_v27, %v1126_v23 }
  0xec   :  { %v774_v29 = vmax.f32 %v689_v25, 0.0  ;;  %v572_v30 = vadd.f32 %v1046_v26, %v1530_v16  ;;  %v1129_v32 = vpop.f32.mrf.mxu1 }
  0xed   :  { %v1048_v33 = vpop.f32.mrf.mxu0 }
  0xee   :  { %v1004_v34 = vpack.c.bf16 %v774_v29, %v774_v29  ;;  %v692_v35 = vadd.f32 %v1128_v31, %v572_v30  ;;  %v1049_v36 = vadd.f32 %v1048_v33, %v1047_v28  ;;  %v1130_v37 = vpop.f32.mrf.mxu1 }
  0xef   :  { %v1050_v38 = vpop.f32.mrf.mxu0  ;;  %v1131_v41 = vadd.f32 %v1130_v37, %v1129_v32 }
  0xf0   :  { %881 = vst.msk [vmem:[%s1640_s3] sm:$0xf] %vm880_vm0, %v1004_v34  ;;  %v775_v39 = vmax.f32 %v692_v35, 0.0  ;;  %v577_v40 = vadd.f32 %v1049_v36, %v1530_v16  ;;  %v1132_v42 = vpop.f32.mrf.mxu1 }
  0xf1   :  { %v1051_v43 = vpop.f32.mrf.mxu0 }
  0xf2   :  { %v1005_v44 = vpack.c.bf16 %v775_v39, %v775_v39  ;;  %v697_v45 = vadd.f32 %v1131_v41, %v577_v40  ;;  %v1052_v46 = vadd.f32 %v1051_v43, %v1050_v38  ;;  %v1133_v47 = vpop.f32.mrf.mxu1 }
  0xf3   :  { %v1053_v48 = vpop.f32.mrf.mxu0  ;;  %v1134_v51 = vadd.f32 %v1133_v47, %v1132_v42 }
  0xf4   :  { %882 = vst.msk [vmem:[%s1640_s3 + $0x4] sm:$0xf] %vm880_vm0, %v1005_v44  ;;  %v776_v49 = vmax.f32 %v697_v45, 0.0  ;;  %v580_v50 = vadd.f32 %v1052_v46, %v1530_v16  ;;  %v1135_v52 = vpop.f32.mrf.mxu1 }
  0xf5   :  { %v1054_v53 = vpop.f32.mrf.mxu0 }
  0xf6   :  { %v1006_v54 = vpack.c.bf16 %v776_v49, %v776_v49  ;;  %v700_v55 = vadd.f32 %v1134_v51, %v580_v50  ;;  %v1055_v56 = vadd.f32 %v1054_v53, %v1053_v48  ;;  %v1136_v57 = vpop.f32.mrf.mxu1 }
  0xf7   :  { %v1056_v58 = vpop.f32.mrf.mxu0  ;;  %v1137_v61 = vadd.f32 %v1136_v57, %v1135_v52 }
  0xf8   :  { %883 = vst.msk [vmem:[%s1640_s3 + $0x8] sm:$0xf] %vm880_vm0, %v1006_v54  ;;  %v777_v59 = vmax.f32 %v700_v55, 0.0  ;;  %v585_v60 = vadd.f32 %v1055_v56, %v1530_v16  ;;  %v1138_v62 = vpop.f32.mrf.mxu1 }
  0xf9   :  { %v1057_v63 = vpop.f32.mrf.mxu0 }
  0xfa   :  { %v1007_v0 = vpack.c.bf16 %v777_v59, %v777_v59  ;;  %v705_v1 = vadd.f32 %v1137_v61, %v585_v60  ;;  %v1058_v2 = vadd.f32 %v1057_v63, %v1056_v58  ;;  %v1139_v3 = vpop.f32.mrf.mxu1 }
  0xfb   :  { %v1059_v4 = vpop.f32.mrf.mxu0  ;;  %v1140_v7 = vadd.f32 %v1139_v3, %v1138_v62 }
  0xfc   :  { %884 = vst.msk [vmem:[%s1640_s3 + $0xc] sm:$0xf] %vm880_vm0, %v1007_v0  ;;  %v778_v5 = vmax.f32 %v705_v1, 0.0  ;;  %v588_v6 = vadd.f32 %v1058_v2, %v1530_v16  ;;  %v1141_v8 = vpop.f32.mrf.mxu1 }
  0xfd   :  { %v1060_v9 = vpop.f32.mrf.mxu0 }
  0xfe   :  { %v1008_v10 = vpack.c.bf16 %v778_v5, %v778_v5  ;;  %v708_v11 = vadd.f32 %v1140_v7, %v588_v6  ;;  %v1061_v12 = vadd.f32 %v1060_v9, %v1059_v4  ;;  %v1142_v13 = vpop.f32.mrf.mxu1 }
  0xff   :  { %v1062_v14 = vpop.f32.mrf.mxu0  ;;  %v1143_v18 = vadd.f32 %v1142_v13, %v1141_v8 }
 0x100   :  { %885 = vst.msk [vmem:[%s1640_s3 + $0x10] sm:$0xf] %vm880_vm0, %v1008_v10  ;;  %v779_v15 = vmax.f32 %v708_v11, 0.0  ;;  %v593_v17 = vadd.f32 %v1061_v12, %v1530_v16  ;;  %v1144_v19 = vpop.f32.mrf.mxu1 }
 0x101   :  { %v1063_v20 = vpop.f32.mrf.mxu0 }
 0x102   :  { %v1009_v21 = vpack.c.bf16 %v779_v15, %v779_v15  ;;  %v713_v22 = vadd.f32 %v1143_v18, %v593_v17  ;;  %v1064_v23 = vadd.f32 %v1063_v20, %v1062_v14  ;;  %v1145_v24 = vpop.f32.mrf.mxu1 }
 0x103   :  { %v1065_v25 = vpop.f32.mrf.mxu0  ;;  %v1146_v28 = vadd.f32 %v1145_v24, %v1144_v19 }
 0x104   :  { %886 = vst.msk [vmem:[%s1640_s3 + $0x14] sm:$0xf] %vm880_vm0, %v1009_v21  ;;  %v780_v26 = vmax.f32 %v713_v22, 0.0  ;;  %v596_v27 = vadd.f32 %v1064_v23, %v1530_v16  ;;  %v1147_v29 = vpop.f32.mrf.mxu1 }
 0x105   :  { %v1066_v30 = vpop.f32.mrf.mxu0 }
 0x106   :  { %v1010_v31 = vpack.c.bf16 %v780_v26, %v780_v26  ;;  %v716_v32 = vadd.f32 %v1146_v28, %v596_v27  ;;  %v1067_v33 = vadd.f32 %v1066_v30, %v1065_v25  ;;  %v1148_v34 = vpop.f32.mrf.mxu1 }
 0x107   :  { %v1068_v35 = vpop.f32.mrf.mxu0  ;;  %v1149_v38 = vadd.f32 %v1148_v34, %v1147_v29 }
 0x108   :  { %887 = vst.msk [vmem:[%s1640_s3 + $0x18] sm:$0xf] %vm880_vm0, %v1010_v31  ;;  %v781_v36 = vmax.f32 %v716_v32, 0.0  ;;  %v601_v37 = vadd.f32 %v1067_v33, %v1530_v16  ;;  %v1150_v39 = vpop.f32.mrf.mxu1 }
 0x109   :  { %v1069_v40 = vpop.f32.mrf.mxu0 }
 0x10a   :  { %v1011_v41 = vpack.c.bf16 %v781_v36, %v781_v36  ;;  %v721_v42 = vadd.f32 %v1149_v38, %v601_v37  ;;  %v1070_v43 = vadd.f32 %v1069_v40, %v1068_v35  ;;  %v1151_v44 = vpop.f32.mrf.mxu1 }
 0x10b   :  { %v1071_v45 = vpop.f32.mrf.mxu0  ;;  %v1152_v48 = vadd.f32 %v1151_v44, %v1150_v39 }
 0x10c   :  { %888 = vst.msk [vmem:[%s1640_s3 + $0x1c] sm:$0xf] %vm880_vm0, %v1011_v41  ;;  %v782_v46 = vmax.f32 %v721_v42, 0.0  ;;  %v604_v47 = vadd.f32 %v1070_v43, %v1530_v16  ;;  %v1153_v49 = vpop.f32.mrf.mxu1 }
 0x10d   :  { %v1072_v50 = vpop.f32.mrf.mxu0 }
 0x10e   :  { %v1012_v51 = vpack.c.bf16 %v782_v46, %v782_v46  ;;  %v724_v52 = vadd.f32 %v1152_v48, %v604_v47  ;;  %v1073_v53 = vadd.f32 %v1072_v50, %v1071_v45  ;;  %v1154_v54 = vpop.f32.mrf.mxu1 }
 0x10f   :  { %v1074_v55 = vpop.f32.mrf.mxu0  ;;  %v1155_v58 = vadd.f32 %v1154_v54, %v1153_v49 }
 0x110   :  { %889 = vst.msk [vmem:[%s1640_s3 + $0x20] sm:$0xf] %vm880_vm0, %v1012_v51  ;;  %v783_v56 = vmax.f32 %v724_v52, 0.0  ;;  %v609_v57 = vadd.f32 %v1073_v53, %v1530_v16  ;;  %v1156_v59 = vpop.f32.mrf.mxu1 }
 0x111   :  { %v1075_v60 = vpop.f32.mrf.mxu0 }
 0x112   :  { %v1013_v61 = vpack.c.bf16 %v783_v56, %v783_v56  ;;  %v729_v62 = vadd.f32 %v1155_v58, %v609_v57  ;;  %v1076_v63 = vadd.f32 %v1075_v60, %v1074_v55  ;;  %v1157_v0 = vpop.f32.mrf.mxu1 }
 0x113   :  { %v1077_v1 = vpop.f32.mrf.mxu0  ;;  %v1158_v4 = vadd.f32 %v1157_v0, %v1156_v59 }
 0x114   :  { %890 = vst.msk [vmem:[%s1640_s3 + $0x24] sm:$0xf] %vm880_vm0, %v1013_v61  ;;  %v784_v2 = vmax.f32 %v729_v62, 0.0  ;;  %v612_v3 = vadd.f32 %v1076_v63, %v1530_v16  ;;  %v1159_v5 = vpop.f32.mrf.mxu1 }
 0x115   :  { %v1078_v6 = vpop.f32.mrf.mxu0 }
 0x116   :  { %v1014_v7 = vpack.c.bf16 %v784_v2, %v784_v2  ;;  %v732_v8 = vadd.f32 %v1158_v4, %v612_v3  ;;  %v1079_v9 = vadd.f32 %v1078_v6, %v1077_v1  ;;  %v1160_v10 = vpop.f32.mrf.mxu1 }
 0x117   :  { %v1080_v11 = vpop.f32.mrf.mxu0  ;;  %v1161_v14 = vadd.f32 %v1160_v10, %v1159_v5 }
 0x118   :  { %891 = vst.msk [vmem:[%s1640_s3 + $0x28] sm:$0xf] %vm880_vm0, %v1014_v7  ;;  %v785_v12 = vmax.f32 %v732_v8, 0.0  ;;  %v617_v13 = vadd.f32 %v1079_v9, %v1530_v16  ;;  %v1162_v15 = vpop.f32.mrf.mxu1 }
 0x119   :  { %v1081_v17 = vpop.f32.mrf.mxu0 }
 0x11a   :  { %v1015_v18 = vpack.c.bf16 %v785_v12, %v785_v12  ;;  %v737_v19 = vadd.f32 %v1161_v14, %v617_v13  ;;  %v1082_v20 = vadd.f32 %v1081_v17, %v1080_v11  ;;  %v1163_v21 = vpop.f32.mrf.mxu1 }
 0x11b   :  { %v1083_v22 = vpop.f32.mrf.mxu0  ;;  %v1164_v25 = vadd.f32 %v1163_v21, %v1162_v15 }
 0x11c   :  { %892 = vst.msk [vmem:[%s1640_s3 + $0x2c] sm:$0xf] %vm880_vm0, %v1015_v18  ;;  %v786_v23 = vmax.f32 %v737_v19, 0.0  ;;  %v620_v24 = vadd.f32 %v1082_v20, %v1530_v16  ;;  %v1165_v26 = vpop.f32.mrf.mxu1 }
 0x11d   :  { %v1084_v27 = vpop.f32.mrf.mxu0 }
 0x11e   :  { %v1016_v28 = vpack.c.bf16 %v786_v23, %v786_v23  ;;  %v740_v29 = vadd.f32 %v1164_v25, %v620_v24  ;;  %v1085_v30 = vadd.f32 %v1084_v27, %v1083_v22  ;;  %v1166_v31 = vpop.f32.mrf.mxu1 }
 0x11f   :  { %v1086_v32 = vpop.f32.mrf.mxu0  ;;  %v1167_v35 = vadd.f32 %v1166_v31, %v1165_v26 }
 0x120   :  { %893 = vst.msk [vmem:[%s1640_s3 + $0x30] sm:$0xf] %vm880_vm0, %v1016_v28  ;;  %v787_v33 = vmax.f32 %v740_v29, 0.0  ;;  %v625_v34 = vadd.f32 %v1085_v30, %v1530_v16  ;;  %v1168_v36 = vpop.f32.mrf.mxu1 }
 0x121   :  { %v1087_v37 = vpop.f32.mrf.mxu0 }
 0x122   :  { %v1017_v38 = vpack.c.bf16 %v787_v33, %v787_v33  ;;  %v745_v39 = vadd.f32 %v1167_v35, %v625_v34  ;;  %v1088_v40 = vadd.f32 %v1087_v37, %v1086_v32  ;;  %v1169_v41 = vpop.f32.mrf.mxu1 }
 0x123   :  { %v1089_v42 = vpop.f32.mrf.mxu0  ;;  %v1170_v45 = vadd.f32 %v1169_v41, %v1168_v36 }
 0x124   :  { %894 = vst.msk [vmem:[%s1640_s3 + $0x34] sm:$0xf] %vm880_vm0, %v1017_v38  ;;  %v788_v43 = vmax.f32 %v745_v39, 0.0  ;;  %v628_v44 = vadd.f32 %v1088_v40, %v1530_v16  ;;  %v1171_v46 = vpop.f32.mrf.mxu1 }
 0x125   :  { %v1090_v47 = vpop.f32.mrf.mxu0 }
 0x126   :  { %v1018_v48 = vpack.c.bf16 %v788_v43, %v788_v43  ;;  %v748_v49 = vadd.f32 %v1170_v45, %v628_v44  ;;  %v1091_v50 = vadd.f32 %v1090_v47, %v1089_v42  ;;  %v1172_v51 = vpop.f32.mrf.mxu1 }
 0x127   :  { %v1092_v52 = vpop.f32.mrf.mxu0  ;;  %v1173_v55 = vadd.f32 %v1172_v51, %v1171_v46 }
 0x128   :  { %895 = vst.msk [vmem:[%s1640_s3 + $0x38] sm:$0xf] %vm880_vm0, %v1018_v48  ;;  %v789_v53 = vmax.f32 %v748_v49, 0.0  ;;  %v633_v54 = vadd.f32 %v1091_v50, %v1530_v16  ;;  %v1174_v56 = vpop.f32.mrf.mxu1 }
 0x129   :  { %v1093_v57 = vpop.f32.mrf.mxu0 }
 0x12a   :  { %v1019_v58 = vpack.c.bf16 %v789_v53, %v789_v53  ;;  %v753_v59 = vadd.f32 %v1173_v55, %v633_v54  ;;  %v1094_v60 = vadd.f32 %v1093_v57, %v1092_v52  ;;  %v1175_v61 = vpop.f32.mrf.mxu1 }
 0x12b   :  { %v1095_v62 = vpop.f32.mrf.mxu0  ;;  %v1176_v1 = vadd.f32 %v1175_v61, %v1174_v56 }
 0x12c   :  { %896 = vst.msk [vmem:[%s1640_s3 + $0x3c] sm:$0xf] %vm880_vm0, %v1019_v58  ;;  %v790_v63 = vmax.f32 %v753_v59, 0.0  ;;  %v636_v0 = vadd.f32 %v1094_v60, %v1530_v16  ;;  %v1177_v2 = vpop.f32.mrf.mxu1 }
 0x12d   :  { %v1096_v3 = vpop.f32.mrf.mxu0 }
 0x12e   :  { %v1020_v4 = vpack.c.bf16 %v790_v63, %v790_v63  ;;  %v756_v5 = vadd.f32 %v1176_v1, %v636_v0  ;;  %v1097_v6 = vadd.f32 %v1096_v3, %v1095_v62  ;;  %v1178_v7 = vpop.f32.mrf.mxu1 }
 0x12f   :  { %v1098_v8 = vpop.f32.mrf.mxu0  ;;  %v1179_v11 = vadd.f32 %v1178_v7, %v1177_v2 }
 0x130   :  { %897 = vst.msk [vmem:[%s1640_s3 + $0x40] sm:$0xf] %vm880_vm0, %v1020_v4  ;;  %v791_v9 = vmax.f32 %v756_v5, 0.0  ;;  %v641_v10 = vadd.f32 %v1097_v6, %v1530_v16  ;;  %v1180_v12 = vpop.f32.mrf.mxu1 }
 0x131   :  { %v1099_v13 = vpop.f32.mrf.mxu0 }
 0x132   :  { %v1021_v14 = vpack.c.bf16 %v791_v9, %v791_v9  ;;  %v761_v15 = vadd.f32 %v1179_v11, %v641_v10  ;;  %v1100_v17 = vadd.f32 %v1099_v13, %v1098_v8  ;;  %v1181_v18 = vpop.f32.mrf.mxu1 }
 0x133   :  { %v1101_v19 = vpop.f32.mrf.mxu0  ;;  %v1182_v22 = vadd.f32 %v1181_v18, %v1180_v12 }
 0x134   :  { %898 = vst.msk [vmem:[%s1640_s3 + $0x44] sm:$0xf] %vm880_vm0, %v1021_v14  ;;  %v792_v20 = vmax.f32 %v761_v15, 0.0  ;;  %v644_v21 = vadd.f32 %v1100_v17, %v1530_v16  ;;  %v1183_v23 = vpop.f32.mrf.mxu1 }
 0x135   :  { %v1102_v24 = vpop.f32.mrf.mxu0 }
 0x136   :  { %v1022_v25 = vpack.c.bf16 %v792_v20, %v792_v20  ;;  %v764_v26 = vadd.f32 %v1182_v22, %v644_v21  ;;  %v1103_v27 = vadd.f32 %v1102_v24, %v1101_v19  ;;  %v1184_v28 = vpop.f32.mrf.mxu1 }
 0x137   :  { %v1104_v29 = vpop.f32.mrf.mxu0  ;;  %v1185_v32 = vadd.f32 %v1184_v28, %v1183_v23 }
 0x138   :  { %899 = vst.msk [vmem:[%s1640_s3 + $0x48] sm:$0xf] %vm880_vm0, %v1022_v25  ;;  %v793_v30 = vmax.f32 %v764_v26, 0.0  ;;  %v649_v31 = vadd.f32 %v1103_v27, %v1530_v16  ;;  %v1186_v33 = vpop.f32.mrf.mxu1 }
 0x139   :  { %v1105_v34 = vpop.f32.mrf.mxu0 }
 0x13a   :  { %v1023_v35 = vpack.c.bf16 %v793_v30, %v793_v30  ;;  %v769_v36 = vadd.f32 %v1185_v32, %v649_v31  ;;  %v1187_v37 = vpop.f32.mrf.mxu1 }
 0x13c   :  { %900 = vst.msk [vmem:[%s1640_s3 + $0x4c] sm:$0xf] %vm880_vm0, %v1023_v35  ;;  %v794_v38 = vmax.f32 %v769_v36, 0.0 }
 0x13e   :  { %v1024_v39 = vpack.c.bf16 %v794_v38, %v794_v38 }
 0x140   :  { %901 = vst.msk [vmem:[%s1640_s3 + $0x50] sm:$0xf] %vm880_vm0, %v1024_v39 }

// kernel: predictor_forward.6
= control target key start
LH: loop header
LB: loop body
LE: loop exit
PB: predicated region body
PF: predicated region fallthrough
CT: control target
= control target key end

     0   :  { %v1247_v34 = vmov 0.0   ;;  %vm1248_vm0 = vmmov 0   ;;  %vm516_vm1 = vcmask 523264   ;;  %vm868_vm2 = vcmask 519168   ;;  %s1647_s1 = inlined_call_operand.vmem [shape: bf16[576,64], index: 1, kind: input, shape index: {}]   ;;  %s1648_s0 = inlined_call_operand.vmem [shape: bf16[104,576], index: 0, kind: input, shape index: {}]   ;;  %s1649_s2 = inlined_call_operand.vmem [shape: f32[1,64], index: 2, kind: input, shape index: {}]   ;;  %s1650_s3 = inlined_call_operand.vmem [shape: bf16[104,64], index: 3, kind: output, shape index: {}]  }
   0x1   :  { %v1164_v0 = vld [vmem:[%s1647_s1 + $0x78] sm:$0xff]   ;;  %v1168_v4 = vld [vmem:[%s1647_s1 + $0x70] sm:$0xff]   ;;  %v1172_v8 = vld [vmem:[%s1647_s1 + $0x68] sm:$0xff]  }
   0x2   :  { %v1165_v1 = vld [vmem:[%s1647_s1 + $0xf8] sm:$0xff]   ;;  %991 = vmatprep.subr.bf16.mxu0 %v1164_v0  ;;  %v1169_v5 = vld [vmem:[%s1647_s1 + $0xf0] sm:$0xff]   ;;  %v1173_v9 = vld [vmem:[%s1647_s1 + $0xe8] sm:$0xff]  }
   0x3   :  { %v1166_v2 = vld [vmem:[%s1647_s1 + $0x38] sm:$0xff]   ;;  %1049 = vmatprep.subr.bf16.mxu1 %v1165_v1  ;;  %v1170_v6 = vld [vmem:[%s1647_s1 + $0x30] sm:$0xff]   ;;  %v1174_v10 = vld [vmem:[%s1647_s1 + $0x28] sm:$0xff]  }
   0x4   :  { %v1167_v3 = vld [vmem:[%s1647_s1 + $0xb8] sm:$0xff]   ;;  %992 = vmatpush3.bf16.msra.mxu0 %v1166_v2  ;;  %v1171_v7 = vld [vmem:[%s1647_s1 + $0xb0] sm:$0xff]   ;;  %v1175_v11 = vld [vmem:[%s1647_s1 + $0xa8] sm:$0xff]  }
   0x5   :  { %1050 = vmatpush3.bf16.msra.mxu1 %v1167_v3  ;;  %993 = vmatprep.subr.bf16.mxu0 %v1168_v4  ;;  %v1176_v12 = vld [vmem:[%s1647_s1 + $0x60] sm:$0xff]   ;;  %v1180_v16 = vld [vmem:[%s1647_s1 + $0x58] sm:$0xff]   ;;  %v1184_v20 = vld [vmem:[%s1647_s1 + $0x50] sm:$0xff]  }
   0x6   :  { %1051 = vmatprep.subr.bf16.mxu1 %v1169_v5  ;;  %v1177_v13 = vld [vmem:[%s1647_s1 + $0xe0] sm:$0xff]   ;;  %v1181_v17 = vld [vmem:[%s1647_s1 + $0xd8] sm:$0xff]   ;;  %v1185_v21 = vld [vmem:[%s1647_s1 + $0xd0] sm:$0xff]  }
   0x7   :  { %v1178_v14 = vld [vmem:[%s1647_s1 + $0x20] sm:$0xff]   ;;  %v1182_v18 = vld [vmem:[%s1647_s1 + $0x18] sm:$0xff]   ;;  %v1186_v22 = vld [vmem:[%s1647_s1 + $0x10] sm:$0xff]  }
   0x8   :  { %994 = vmatpush3.bf16.msra.mxu0 %v1170_v6  ;;  %v1179_v15 = vld [vmem:[%s1647_s1 + $0xa0] sm:$0xff]   ;;  %v1183_v19 = vld [vmem:[%s1647_s1 + $0x98] sm:$0xff]   ;;  %v1187_v23 = vld [vmem:[%s1647_s1 + $0x90] sm:$0xff]  }
   0x9   :  { %1052 = vmatpush3.bf16.msra.mxu1 %v1171_v7  ;;  %995 = vmatprep.subr.bf16.mxu0 %v1172_v8  ;;  %v1188_v24 = vld [vmem:[%s1647_s1 + $0x48] sm:$0xff]   ;;  %v1192_v28 = vld [vmem:[%s1647_s1 + $0x40] sm:$0xff]   ;;  %v1202_v37 = vld [vmem:[%s1647_s1 + $0x118] sm:$0xff]  }
   0xa   :  { %1053 = vmatprep.subr.bf16.mxu1 %v1173_v9  ;;  %v1189_v25 = vld [vmem:[%s1647_s1 + $0xc8] sm:$0xff]   ;;  %v1193_v29 = vld [vmem:[%s1647_s1 + $0xc0] sm:$0xff]   ;;  %v1213_v43 = vld [vmem:[%s1647_s1 + $0x110] sm:$0xff]  }
   0xb   :  { %v1190_v26 = vld [vmem:[%s1647_s1 + $0x8] sm:$0xff]   ;;  %v1194_v30 = vld [vmem:[%s1647_s1] sm:$0xff]   ;;  %v1211_v44 = vld [vmem:[%s1648_s0 + $0x5c] ss:$20 sps:$4 sm:$0xff]  }
   0xc   :  { %996 = vmatpush3.bf16.msra.mxu0 %v1174_v10  ;;  %v1191_v27 = vld [vmem:[%s1647_s1 + $0x88] sm:$0xff]   ;;  %v1195_v31 = vld [vmem:[%s1647_s1 + $0x80] sm:$0xff]   ;;  %v1216_v48 = vld [vmem:[%s1648_s0 + $0x7c] ss:$20 sps:$4 sm:$0xff]  }
   0xd   :  { %1054 = vmatpush3.bf16.msra.mxu1 %v1175_v11  ;;  %997 = vmatprep.subr.bf16.mxu0 %v1176_v12  ;;  %v1196_v32 = vld [vmem:[%s1648_s0] ss:$20 sps:$4 sm:$0xff]   ;;  %v1198_v33 = vld [vmem:[%s1648_s0 + $0x4] ss:$20 sps:$4 sm:$0xff]   ;;  %v1199_v35 = vld [vmem:[%s1648_s0 + $0x8] ss:$20 sps:$4 sm:$0xff]  }
   0xe   :  { %1055 = vmatprep.subr.bf16.mxu1 %v1177_v13  ;;  %v1201_v36 = vld [vmem:[%s1648_s0 + $0xc] ss:$20 sps:$4 sm:$0xff]   ;;  %570 = vmatprep.mubr.bf16.mxu0 %v1198_v33  ;;  %v1205_v39 = vld [vmem:[%s1648_s0 + $0x34] ss:$20 sps:$4 sm:$0xff]   ;;  %v1208_v41 = vld [vmem:[%s1648_s0 + $0x30] ss:$20 sps:$4 sm:$0xff]  }
   0xf   :  { %658 = vmatprep.mubr.bf16.mxu1 %v1201_v36  ;;  %v1203_v38 = vld [vmem:[%s1648_s0 + $0x2c] ss:$20 sps:$4 sm:$0xff]   ;;  %v1207_v40 = vld [vmem:[%s1648_s0 + $0x28] ss:$20 sps:$4 sm:$0xff]   ;;  %v1214_v46 = vld [vmem:[%s1648_s0 + $0x50] ss:$20 sps:$4 sm:$0xff]  }
  0x10   :  { %998 = vmatpush3.bf16.msra.mxu0 %v1178_v14  ;;  %v1209_v42 = vld [vmem:[%s1648_s0 + $0x54] ss:$20 sps:$4 sm:$0xff]   ;;  %v1215_v47 = vld [vmem:[%s1648_s0 + $0x58] ss:$20 sps:$4 sm:$0xff]   ;;  %v1235_v50 = vld [vmem:[%s1647_s1 + $0x100] sm:$0xff]  }
  0x11   :  { %1056 = vmatpush3.bf16.msra.mxu1 %v1179_v15  ;;  %999 = vmatprep.subr.bf16.mxu0 %v1180_v16  ;;  %v1222_v45 = vld [vmem:[%s1647_s1 + $0x108] sm:$0xff]   ;;  %v1218_v49 = vld [vmem:[%s1648_s0 + $0x84] ss:$20 sps:$4 sm:$0xff]   ;;  %v1221_v52 = vld [vmem:[%s1648_s0 + $0x80] ss:$20 sps:$4 sm:$0xff]  }
  0x12   :  { %1057 = vmatprep.subr.bf16.mxu1 %v1181_v17  ;;  %v1220_v51 = vld [vmem:[%s1648_s0 + $0x78] ss:$20 sps:$4 sm:$0xff]   ;;  %v1227_v55 = vld [vmem:[%s1648_s0 + $0xa0] ss:$20 sps:$4 sm:$0xff]   ;;  %v1228_v56 = vld [vmem:[%s1648_s0 + $0xa8] ss:$20 sps:$4 sm:$0xff]  }
  0x13   :  { %v1223_v53 = vld [vmem:[%s1648_s0 + $0xa4] ss:$20 sps:$4 sm:$0xff]   ;;  %v1225_v54 = vld [vmem:[%s1648_s0 + $0xac] ss:$20 sps:$4 sm:$0xff]   ;;  %v1231_v58 = vld [vmem:[%s1648_s0 + $0xd4] ss:$20 sps:$4 sm:$0xff]  }
  0x14   :  { %1000 = vmatpush3.bf16.msra.mxu0 %v1182_v18  ;;  %v1229_v57 = vld [vmem:[%s1648_s0 + $0xcc] ss:$20 sps:$4 sm:$0xff]   ;;  %v51_v59 = vld [vmem:[%s1648_s0 + $0xf0] sm:$0xff]  ;;  %v52_v60 = vld [vmem:[%s1648_s0 + $0xf8] sm:$0xff] }
  0x15   :  { %1058 = vmatpush3.bf16.msra.mxu1 %v1183_v19  ;;  %1001 = vmatprep.subr.bf16.mxu0 %v1184_v20  ;;  %v1233_v61 = vld [vmem:[%s1648_s0 + $0xc8] ss:$20 sps:$4 sm:$0xff]   ;;  %v1234_v62 = vld [vmem:[%s1648_s0 + $0xd0] ss:$20 sps:$4 sm:$0xff]   ;;  %v918_v63 = vcombine.high %v51_v59, %v51_v59  ;;  %v920_v0 = vcombine.high %v52_v60, %v52_v60  ;;  %v917_v1 = vcombine.low %v51_v59, %v51_v59  ;;  %v1242_v5 = vld [vmem:[%s1648_s0 + $0x38] ss:$20 sps:$4 sm:$0xff]  }
  0x16   :  { %1059 = vmatprep.subr.bf16.mxu1 %v1185_v21  ;;  %v919_v2 = vcombine.low %v52_v60, %v52_v60  ;;  %v1240_v3 = vld [vmem:[%s1648_s0 + $0x10] ss:$20 sps:$4 sm:$0xff]   ;;  %v1243_v6 = vld [vmem:[%s1648_s0 + $0xd8] ss:$20 sps:$4 sm:$0xff]   ;;  %v1244_v7 = vld [vmem:[%s1648_s0 + $0x60] ss:$20 sps:$4 sm:$0xff]  }
  0x17   :  { %v1241_v4 = vld [vmem:[%s1648_s0 + $0xb0] ss:$20 sps:$4 sm:$0xff]   ;;  %v1245_v8 = vld [vmem:[%s1648_s0 + $0x100] ss:$0 sps:$4 sm:$0xff]   ;;  %v1246_v9 = vld [vmem:[%s1648_s0 + $0x88] ss:$20 sps:$4 sm:$0xff]  }
  0x18   :  { %1002 = vmatpush3.bf16.msra.mxu0 %v1186_v22  ;;  %v1552_v59 = vld [vmem:[%s1649_s2] ss:$0 sm:$0xff] }
  0x19   :  { %1060 = vmatpush3.bf16.msra.mxu1 %v1187_v23  ;;  %1003 = vmatprep.subr.bf16.mxu0 %v1188_v24 }
  0x1a   :  { %1061 = vmatprep.subr.bf16.mxu1 %v1189_v25 }
  0x1c   :  { %1004 = vmatpush3.bf16.msra.mxu0 %v1190_v26 }
  0x1d   :  { %1062 = vmatpush3.bf16.msra.mxu1 %v1191_v27  ;;  %1005 = vmatprep.subr.bf16.mxu0 %v1192_v28 }
  0x1e   :  { %1063 = vmatprep.subr.bf16.mxu1 %v1193_v29 }
  0x20   :  { %1006 = vmatpush3.bf16.msra.mxu0 %v1194_v30 }
  0x21   :  { %1064 = vmatpush3.bf16.msra.mxu1 %v1195_v31  ;;  %1118 = vmatprep.subr.bf16.mxu0 %v1247_v34 }
  0x22   :  { %1154 = vmatprep.subr.bf16.mxu1 %v1247_v34 }
  0x23   :  { %571 = vmatmul.mubr.bf16.vlgmr.msra.gmra.mxu0 %v1196_v32 }
  0x24   :  { %659 = vmatmul.mubr.bf16.vlgmr.msra.gmra.mxu1 %v1199_v35  ;;  %1119 = vmatpush3.bf16.msra.mxu0 %v1202_v37 }
  0x25   :  { %578 = vmatprep.mubr.bf16.mxu0 %v1203_v38  ;;  %1158 = vmatpush3.bf16.msra.mxu1 %v1202_v37 }
  0x26   :  { %666 = vmatprep.mubr.bf16.mxu1 %v1205_v39  ;;  %1120 = vmatprep.subr.bf16.mxu0 %v1247_v34 }
  0x27   :  { %1155 = vmatprep.subr.bf16.mxu1 %v1247_v34 }
  0x28   :  { %1121 = vmatpush3.bf16.msra.mxu0 %v1213_v43 }
  0x29   :  { %1159 = vmatpush3.bf16.msra.mxu1 %v1213_v43  ;;  %1122 = vmatprep.subr.bf16.mxu0 %v1247_v34 }
  0x2a   :  { %1156 = vmatprep.subr.bf16.mxu1 %v1247_v34 }
  0x2b   :  { %579 = vmatmul.mubr.bf16.gmra.mxu0 %v1207_v40 }
  0x2c   :  { %667 = vmatmul.mubr.bf16.gmra.mxu1 %v1208_v41  ;;  %586 = vmatprep.mubr.bf16.mxu0 %v1209_v42 }
  0x2d   :  { %674 = vmatprep.mubr.bf16.mxu1 %v1211_v44  ;;  %1123 = vmatpush3.bf16.msra.mxu0 %v1222_v45 }
  0x2e   :  { %1160 = vmatpush3.bf16.msra.mxu1 %v1222_v45  ;;  %1124 = vmatprep.subr.bf16.mxu0 %v1247_v34 }
  0x2f   :  { %1157 = vmatprep.subr.bf16.mxu1 %v1247_v34 }
  0x31   :  { %1125 = vmatpush3.bf16.msra.mxu0 %v1235_v50 }
  0x32   :  { %1161 = vmatpush3.bf16.msra.mxu1 %v1235_v50 }
  0x33   :  { %587 = vmatmul.mubr.bf16.gmra.mxu0 %v1214_v46 }
  0x34   :  { %675 = vmatmul.mubr.bf16.gmra.mxu1 %v1215_v47  ;;  %594 = vmatprep.mubr.bf16.mxu0 %v1216_v48 }
  0x35   :  { %682 = vmatprep.mubr.bf16.mxu1 %v1218_v49 }
  0x3b   :  { %595 = vmatmul.mubr.bf16.gmra.mxu0 %v1220_v51 }
  0x3c   :  { %683 = vmatmul.mubr.bf16.gmra.mxu1 %v1221_v52  ;;  %602 = vmatprep.mubr.bf16.mxu0 %v1223_v53 }
  0x3d   :  { %690 = vmatprep.mubr.bf16.mxu1 %v1225_v54 }
  0x43   :  { %603 = vmatmul.mubr.bf16.gmra.mxu0 %v1227_v55 }
  0x44   :  { %691 = vmatmul.mubr.bf16.gmra.mxu1 %v1228_v56  ;;  %610 = vmatprep.mubr.bf16.mxu0 %v1229_v57 }
  0x45   :  { %698 = vmatprep.mubr.bf16.mxu1 %v1231_v58 }
  0x4b   :  { %611 = vmatmul.mubr.bf16.gmra.mxu0 %v1233_v61 }
  0x4c   :  { %699 = vmatmul.mubr.bf16.gmra.mxu1 %v1234_v62  ;;  %618 = vmatprep.mubr.bf16.mxu0 %v918_v63 }
  0x4d   :  { %706 = vmatprep.mubr.bf16.mxu1 %v920_v0 }
  0x53   :  { %619 = vmatmul.mubr.bf16.gmra.mxu0 %v917_v1 }
  0x54   :  { %707 = vmatmul.mubr.bf16.gmra.mxu1 %v919_v2  ;;  %1126 = vmatprep.mubr.msk.bf16.mxu0 %vm1248_vm0, %v1247_v34 }
  0x55   :  { %1142 = vmatprep.mubr.msk.bf16.mxu1 %vm1248_vm0, %v1247_v34 }
  0x5b   :  { %1127 = vmatmul.mubr.msk.bf16.vlgmr.msra.gmra.mxu0 %vm516_vm1, %v1240_v3 }
  0x5c   :  { %1143 = vmatmul.mubr.msk.bf16.vlgmr.msra.gmra.mxu1 %vm516_vm1, %v1241_v4  ;;  %1130 = vmatprep.mubr.msk.bf16.mxu0 %vm1248_vm0, %v1247_v34 }
  0x5d   :  { %1146 = vmatprep.mubr.msk.bf16.mxu1 %vm1248_vm0, %v1247_v34 }
  0x63   :  { %1131 = vmatmul.mubr.msk.bf16.gmra.mxu0 %vm516_vm1, %v1242_v5 }
  0x64   :  { %1147 = vmatmul.mubr.msk.bf16.gmra.mxu1 %vm516_vm1, %v1243_v6  ;;  %1134 = vmatprep.mubr.msk.bf16.mxu0 %vm1248_vm0, %v1247_v34 }
  0x65   :  { %1150 = vmatprep.mubr.msk.bf16.mxu1 %vm1248_vm0, %v1247_v34 }
  0x6b   :  { %1135 = vmatmul.mubr.msk.bf16.gmra.mxu0 %vm516_vm1, %v1244_v7 }
  0x6c   :  { %1151 = vmatmul.mubr.msk.bf16.gmra.mxu1 %vm516_vm1, %v1245_v8  ;;  %1138 = vmatprep.mubr.msk.bf16.mxu0 %vm1248_vm0, %v1247_v34 }
  0x73   :  { %1139 = vmatmul.mubr.msk.bf16.gmra.mxu0 %vm516_vm1, %v1246_v9 }
  0xe3   :  { %v1007_v10 = vpop.f32.mrf.mxu0 }
  0xe4   :  { %v1065_v11 = vpop.f32.mrf.mxu1 }
  0xe5   :  { %v1008_v12 = vpop.f32.mrf.mxu0 }
  0xe6   :  { %v1066_v13 = vpop.f32.mrf.mxu1  ;;  %v1009_v57 = vadd.f32 %v1008_v12, %v1007_v10 }
  0xe7   :  { %v1010_v14 = vpop.f32.mrf.mxu0  ;;  %v1067_v2 = vadd.f32 %v1066_v13, %v1065_v11 }
  0xe8   :  { %v1068_v15 = vpop.f32.mrf.mxu1  ;;  %v573_v1 = vadd.f32 %v1009_v57, %v1552_v59 }
  0xe9   :  { %v1011_v16 = vpop.f32.mrf.mxu0 }
  0xea   :  { %v1069_v17 = vpop.f32.mrf.mxu1  ;;  %v1012_v63 = vadd.f32 %v1011_v16, %v1010_v14  ;;  %v661_v14 = vadd.f32 %v1067_v2, %v573_v1 }
  0xeb   :  { %v1013_v18 = vpop.f32.mrf.mxu0  ;;  %v1070_v10 = vadd.f32 %v1069_v17, %v1068_v15 }
  0xec   :  { %v1505_v19 = vpop.f32.mrf.mxu1  ;;  %v576_v9 = vadd.f32 %v1012_v63, %v1552_v59 }
  0xed   :  { %v1014_v20 = vpop.f32.mrf.mxu0 }
  0xee   :  { %v1507_v21 = vpop.f32.mrf.mxu1  ;;  %v1015_v12 = vadd.f32 %v1014_v20, %v1013_v18  ;;  %v664_v15 = vadd.f32 %v1070_v10, %v576_v9 }
  0xef   :  { %v1509_v22 = vpop.f32.mrf.mxu0 }
  0xf0   :  { %v1511_v23 = vpop.f32.mrf.mxu1 }
  0xf1   :  { %v1513_v24 = vpop.f32.mrf.mxu0 }
  0xf2   :  { %v1515_v25 = vpop.f32.mrf.mxu1  ;;  %v1018_v17 = vadd.f32 %v1513_v24, %v1509_v22 }
  0xf3   :  { %v1517_v26 = vpop.f32.mrf.mxu0 }
  0xf4   :  { %v1519_v27 = vpop.f32.mrf.mxu1  ;;  %v584_v24 = vadd.f32 %v1018_v17, %v1552_v59 }
  0xf5   :  { %v1521_v28 = vpop.f32.mrf.mxu0 }
  0xf6   :  { %v1523_v29 = vpop.f32.mrf.mxu1 }
  0xf7   :  { %v1525_v30 = vpop.f32.mrf.mxu0 }
  0xf8   :  { %v1527_v31 = vpop.f32.mrf.mxu1 }
  0xf9   :  { %v1529_v32 = vpop.f32.mrf.mxu0 }
  0xfa   :  { %v1531_v33 = vpop.f32.mrf.mxu1 }
  0xfb   :  { %v1533_v34 = vpop.f32.mrf.mxu0 }
  0xfc   :  { %v1535_v35 = vpop.f32.mrf.mxu1 }
  0xfd   :  { %v1537_v36 = vpop.f32.mrf.mxu0 }
  0xfe   :  { %v1539_v37 = vpop.f32.mrf.mxu1 }
  0xff   :  { %v1541_v38 = vpop.f32.mrf.mxu0 }
 0x100   :  { %v1543_v39 = vpop.f32.mrf.mxu1 }
 0x101   :  { %1651 = vst [vmem:[#allocation2_spill] sm:$0xff] %v1543_v39  ;;  %v1545_v40 = vpop.f32.mrf.mxu0 }
 0x102   :  { %1652 = vst [vmem:[#allocation3_spill] sm:$0xff] %v1545_v40  ;;  %v1547_v41 = vpop.f32.mrf.mxu1 }
 0x103   :  { %1653 = vst [vmem:[#allocation4_spill] sm:$0xff] %v1547_v41  ;;  %v1031_v42 = vpop.f32.mrf.mxu0 }
 0x104   :  { %v1089_v43 = vpop.f32.mrf.mxu1 }
 0x105   :  { %v1032_v44 = vpop.f32.mrf.mxu0 }
 0x106   :  { %v1090_v45 = vpop.f32.mrf.mxu1  ;;  %v1033_v60 = vadd.f32 %v1032_v44, %v1031_v42 }
 0x107   :  { %v1034_v46 = vpop.f32.mrf.mxu0  ;;  %v1091_v5 = vadd.f32 %v1090_v45, %v1089_v43  ;;  %v581_v43 = vadd.f32 %v1015_v12, %v1552_v59  ;;  %v1073_v45 = vadd.f32 %v1507_v21, %v1505_v19  ;;  %v1076_v19 = vadd.f32 %v1515_v25, %v1511_v23 }
 0x108   :  { %v1092_v47 = vpop.f32.mrf.mxu1  ;;  %v605_v4 = vadd.f32 %v1033_v60, %v1552_v59 }
 0x109   :  { %v1035_v48 = vpop.f32.mrf.mxu0  ;;  %v669_v22 = vadd.f32 %v1073_v45, %v581_v43 }
 0x10a   :  { %v1093_v49 = vpop.f32.mrf.mxu1  ;;  %v1036_v6 = vadd.f32 %v1035_v48, %v1034_v46  ;;  %v693_v13 = vadd.f32 %v1091_v5, %v605_v4 }
 0x10b   :  { %v1037_v50 = vpop.f32.mrf.mxu0  ;;  %v1094_v57 = vadd.f32 %v1093_v49, %v1092_v47 }
 0x10c   :  { %v1095_v51 = vpop.f32.mrf.mxu1  ;;  %v608_v16 = vadd.f32 %v1036_v6, %v1552_v59 }
 0x10d   :  { %v1038_v52 = vpop.f32.mrf.mxu0 }
 0x10e   :  { %v1096_v53 = vpop.f32.mrf.mxu1  ;;  %v1039_v44 = vadd.f32 %v1038_v52, %v1037_v50  ;;  %v696_v60 = vadd.f32 %v1094_v57, %v608_v16 }
 0x10f   :  { %v1040_v54 = vpop.f32.mrf.mxu0  ;;  %v1097_v20 = vadd.f32 %v1096_v53, %v1095_v51 }
 0x110   :  { %v1098_v55 = vpop.f32.mrf.mxu1  ;;  %v613_v18 = vadd.f32 %v1039_v44, %v1552_v59 }
 0x111   :  { %v1041_v56 = vpop.f32.mrf.mxu0 }
 0x112   :  { %v1099_v58 = vpop.f32.mrf.mxu1  ;;  %v1042_v49 = vadd.f32 %v1041_v56, %v1040_v54  ;;  %v701_v54 = vadd.f32 %v1097_v20, %v613_v18 }
 0x113   :  { %v1043_v61 = vpop.f32.mrf.mxu0  ;;  %v1100_v23 = vadd.f32 %v1099_v58, %v1098_v55  ;;  %v1079_v55 = vadd.f32 %v1523_v29, %v1519_v27 }
 0x114   :  { %v1554_v62 = vpop.f32.mrf.mxu1  ;;  %v616_v56 = vadd.f32 %v1042_v49, %v1552_v59 }
 0x115   :  { %v1044_v0 = vpop.f32.mrf.mxu0 }
 0x116   :  { %v1557_v3 = vpop.f32.mrf.mxu1  ;;  %v1045_v25 = vadd.f32 %v1044_v0, %v1043_v61  ;;  %v672_v0 = vadd.f32 %v1076_v19, %v584_v24  ;;  %v704_v29 = vadd.f32 %v1100_v23, %v616_v56  ;;  %v1655_v24 = vld [vmem:[#allocation2_spill] sm:$0xff] }
 0x117   :  { %v1046_v7 = vpop.f32.mrf.mxu0 }
 0x118   :  { %v1104_v8 = vpop.f32.mrf.mxu1  ;;  %v621_v44 = vadd.f32 %v1045_v25, %v1552_v59 }
 0x119   :  { %v1047_v42 = vpop.f32.mrf.mxu0  ;;  %v1024_v8 = vadd.f32 %v1529_v32, %v1525_v30  ;;  %v1103_v30 = vadd.f32 %v1557_v3, %v1554_v62  ;;  %v1027_v62 = vadd.f32 %v1537_v36, %v1533_v34 }
 0x11a   :  { %v1105_v41 = vpop.f32.mrf.mxu1 }
 0x11b   :  { %v748_v11 = vpop.f32.mrf.mxu0  ;;  %v709_v17 = vadd.f32 %v1103_v30, %v621_v44 }
 0x11c   :  { %v749_v39 = vadd.f32 %v748_v11, %v661_v14  ;;  %v780_v40 = vpop.f32.mrf.mxu1  ;;  %v592_v11 = vadd.f32 %v1024_v8, %v1552_v59 }
 0x11d   :  { %v781_v46 = vadd.f32 %v780_v40, %v693_v13  ;;  %v1128_v48 = vpop.f32.mrf.mxu0  ;;  %v1082_v13 = vadd.f32 %v1531_v33, %v1527_v31 }
 0x11e   :  { %v802_v41 = vmax.f32 %v749_v39, 0.0  ;;  %v1144_v47 = vpop.f32.mrf.mxu1  ;;  %v1021_v39 = vadd.f32 %v1521_v28, %v1517_v26 }
 0x11f   :  { %v810_v50 = vmax.f32 %v781_v46, 0.0  ;;  %v751_v52 = vpop.f32.mrf.mxu0  ;;  %v680_v49 = vadd.f32 %v1082_v13, %v592_v11 }
 0x120   :  { %v978_v63 = vpack.c.bf16 %v802_v41, %v802_v41  ;;  %v752_v1 = vadd.f32 %v751_v52, %v664_v15  ;;  %v783_v2 = vpop.f32.mrf.mxu1  ;;  %v589_v42 = vadd.f32 %v1021_v39, %v1552_v59  ;;  %v1085_v52 = vadd.f32 %v1539_v37, %v1535_v35  ;;  %v1656_v39 = vld [vmem:[#allocation4_spill] sm:$0xff] }
 0x121   :  { %v986_v21 = vpack.c.bf16 %v810_v50, %v810_v50  ;;  %v784_v40 = vadd.f32 %v783_v2, %v696_v60  ;;  %v1129_v4 = vpop.f32.mrf.mxu0  ;;  %v597_v50 = vadd.f32 %v1027_v62, %v1552_v59  ;;  %v1654_v60 = vld [vmem:[#allocation3_spill] sm:$0xff] }
 0x122   :  { %869 = vst.msk [vmem:[%s1650_s3] sm:$0xf] %vm868_vm2, %v978_v63  ;;  %v803_v51 = vmax.f32 %v752_v1, 0.0  ;;  %v1145_v53 = vpop.f32.mrf.mxu1  ;;  %v677_v15 = vadd.f32 %v1079_v55, %v589_v42  ;;  %v1030_v63 = vadd.f32 %v1654_v60, %v1541_v38 }
 0x123   :  { %877 = vst.msk [vmem:[%s1650_s3 + $0x20] sm:$0xf] %vm868_vm2, %v986_v21  ;;  %v811_v5 = vmax.f32 %v784_v40, 0.0  ;;  %v756_v6 = vpop.f32.mrf.mxu0 }
 0x124   :  { %v979_v26 = vpack.c.bf16 %v803_v51, %v803_v51  ;;  %v757_v28 = vadd.f32 %v756_v6, %v669_v22  ;;  %v788_v7 = vpop.f32.mrf.mxu1  ;;  %v600_v38 = vadd.f32 %v1030_v63, %v1552_v59  ;;  %v1088_v51 = vadd.f32 %v1656_v39, %v1655_v24 }
 0x125   :  { %v987_v9 = vpack.c.bf16 %v811_v5, %v811_v5  ;;  %v789_v10 = vadd.f32 %v788_v7, %v701_v54  ;;  %v1132_v12 = vpop.f32.mrf.mxu0  ;;  %v685_v54 = vadd.f32 %v1085_v52, %v597_v50 }
 0x126   :  { %870 = vst.msk [vmem:[%s1650_s3 + $0x4] sm:$0xf] %vm868_vm2, %v979_v26  ;;  %v804_v58 = vmax.f32 %v757_v28, 0.0  ;;  %v1148_v61 = vpop.f32.mrf.mxu1  ;;  %v688_v26 = vadd.f32 %v1088_v51, %v600_v38 }
 0x127   :  { %878 = vst.msk [vmem:[%s1650_s3 + $0x24] sm:$0xf] %vm868_vm2, %v987_v9  ;;  %v812_v32 = vmax.f32 %v789_v10, 0.0  ;;  %v759_v27 = vpop.f32.mrf.mxu0 }
 0x128   :  { %v980_v14 = vpack.c.bf16 %v804_v58, %v804_v58  ;;  %v760_v16 = vadd.f32 %v759_v27, %v672_v0  ;;  %v791_v57 = vpop.f32.mrf.mxu1 }
 0x129   :  { %v988_v43 = vpack.c.bf16 %v812_v32, %v812_v32  ;;  %v792_v45 = vadd.f32 %v791_v57, %v704_v29  ;;  %v1133_v46 = vpop.f32.mrf.mxu0 }
 0x12a   :  { %871 = vst.msk [vmem:[%s1650_s3 + $0x8] sm:$0xf] %vm868_vm2, %v980_v14  ;;  %v805_v3 = vmax.f32 %v760_v16, 0.0  ;;  %v1149_v48 = vpop.f32.mrf.mxu1 }
 0x12b   :  { %879 = vst.msk [vmem:[%s1650_s3 + $0x28] sm:$0xf] %vm868_vm2, %v988_v43  ;;  %v813_v31 = vmax.f32 %v792_v45, 0.0  ;;  %v764_v33 = vpop.f32.mrf.mxu0 }
 0x12c   :  { %v981_v18 = vpack.c.bf16 %v805_v3, %v805_v3  ;;  %v765_v20 = vadd.f32 %v764_v33, %v677_v15  ;;  %v796_v41 = vpop.f32.mrf.mxu1 }
 0x12d   :  { %v989_v34 = vpack.c.bf16 %v813_v31, %v813_v31  ;;  %v797_v36 = vadd.f32 %v796_v41, %v709_v17  ;;  %v1136_v47 = vpop.f32.mrf.mxu0 }
 0x12e   :  { %872 = vst.msk [vmem:[%s1650_s3 + $0xc] sm:$0xf] %vm868_vm2, %v981_v18  ;;  %v806_v1 = vmax.f32 %v765_v20, 0.0  ;;  %v1152_v2 = vpop.f32.mrf.mxu1 }
 0x12f   :  { %880 = vst.msk [vmem:[%s1650_s3 + $0x2c] sm:$0xf] %vm868_vm2, %v989_v34  ;;  %v814_v19 = vmax.f32 %v797_v36, 0.0  ;;  %v767_v21 = vpop.f32.mrf.mxu0 }
 0x130   :  { %v982_v40 = vpack.c.bf16 %v806_v1, %v806_v1  ;;  %v768_v4 = vadd.f32 %v767_v21, %v680_v49  ;;  %v799_v35 = vpop.f32.mrf.mxu1 }
 0x131   :  { %v990_v37 = vpack.c.bf16 %v814_v19, %v814_v19  ;;  %v1137_v22 = vpop.f32.mrf.mxu0 }
 0x132   :  { %873 = vst.msk [vmem:[%s1650_s3 + $0x10] sm:$0xf] %vm868_vm2, %v982_v40  ;;  %v807_v53 = vmax.f32 %v768_v4, 0.0  ;;  %v1153_v56 = vpop.f32.mrf.mxu1 }
 0x133   :  { %881 = vst.msk [vmem:[%s1650_s3 + $0x30] sm:$0xf] %vm868_vm2, %v990_v37  ;;  %v772_v23 = vpop.f32.mrf.mxu0 }
 0x134   :  { %v983_v25 = vpack.c.bf16 %v807_v53, %v807_v53  ;;  %v773_v5 = vadd.f32 %v772_v23, %v685_v54 }
 0x135   :  { %v1140_v59 = vpop.f32.mrf.mxu0 }
 0x136   :  { %874 = vst.msk [vmem:[%s1650_s3 + $0x14] sm:$0xf] %vm868_vm2, %v983_v25  ;;  %v808_v6 = vmax.f32 %v773_v5, 0.0 }
 0x137   :  { %v775_v28 = vpop.f32.mrf.mxu0 }
 0x138   :  { %v984_v7 = vpack.c.bf16 %v808_v6, %v808_v6  ;;  %v776_v8 = vadd.f32 %v775_v28, %v688_v26 }
 0x139   :  { %v1141_v9 = vpop.f32.mrf.mxu0 }
 0x13a   :  { %875 = vst.msk [vmem:[%s1650_s3 + $0x18] sm:$0xf] %vm868_vm2, %v984_v7  ;;  %v809_v10 = vmax.f32 %v776_v8, 0.0 }
 0x13c   :  { %v985_v12 = vpack.c.bf16 %v809_v10, %v809_v10 }
 0x13e   :  { %876 = vst.msk [vmem:[%s1650_s3 + $0x1c] sm:$0xf] %vm868_vm2, %v985_v12 }

// kernel: predictor_forward.7
= control target key start
LH: loop header
LB: loop body
LE: loop exit
PB: predicated region body
PF: predicated region fallthrough
CT: control target
= control target key end

     0   :  { %vm4871_vm0 = vcmask 523264   ;;  %vm8751_vm1 = vmmov 0   ;;  %vm6310_vm2 = vcmask 261120   ;;  %s11612_s2 = inlined_call_operand.vmem [shape: bf16[3136,512], index: 2, kind: input, shape index: {}]   ;;  %s11613_s0 = inlined_call_operand.vmem [shape: bf16[8,3136], index: 0, kind: input, shape index: {}]   ;;  %s11614_s3 = inlined_call_operand.vmem [shape: f32[1,512], index: 3, kind: input, shape index: {}]   ;;  %s11615_s4 = inlined_call_operand.vmem [shape: bf16[512,32], index: 4, kind: input, shape index: {}]   ;;  %s11616_s6 = inlined_call_operand.vmem [shape: f32[32,32], index: 6, kind: input, shape index: {}]   ;;  %s11617_s1 = inlined_call_operand.vmem [shape: f32[8,1], index: 1, kind: input, shape index: {}]   ;;  %s11618_s9 = inlined_call_operand.vmem [shape: f32[32,32], index: 9, kind: input, shape index: {}]   ;;  %s11619_s5 = inlined_call_operand.vmem [shape: f32[1,32], index: 5, kind: input, shape index: {}]   ;;  %s11620_s11 = inlined_call_operand.vmem [shape: f32[32,32], index: 11, kind: input, shape index: {}]   ;;  %s11621_s7 = inlined_call_operand.vmem [shape: f32[1,32], index: 7, kind: input, shape index: {}]   ;;  %s11622_s8 = inlined_call_operand.vmem [shape: f32[1,32], index: 8, kind: input, shape index: {}]   ;;  %s11623_s10 = inlined_call_operand.vmem [shape: f32[1,32], index: 10, kind: input, shape index: {}]   ;;  %s11624_s12 = inlined_call_operand.vmem [shape: f32[1,32], index: 12, kind: input, shape index: {}]   ;;  %s11625_s13 = inlined_call_operand.vmem [shape: f32[8,32], index: 13, kind: output, shape index: {}]  }
   0x1   :  { %v7514_v0 = vld [vmem:[%s11612_s2 + $0xe4] ss:$16 sps:$4 sm:$0xff]   ;;  %v7518_v2 = vld [vmem:[%s11612_s2 + $0xe0] ss:$16 sps:$4 sm:$0xff]   ;;  %v46_v48 = vld [vmem:[%s11613_s0 + $0x8] sm:$0xff] }
   0x2   :  { %v7516_v1 = vld [vmem:[%s11612_s2 + $0x2e4] ss:$16 sps:$4 sm:$0xff]   ;;  %4875 = vmatprep.subr.bf16.mxu0 %v7514_v0  ;;  %v7519_v3 = vld [vmem:[%s11612_s2 + $0x2e0] ss:$16 sps:$4 sm:$0xff]   ;;  %v8974_v51 = vcombine.high %v46_v48, %v46_v48 }
   0x3   :  { %4916 = vmatprep.subr.bf16.mxu1 %v7516_v1  ;;  %v7520_v4 = vld [vmem:[%s11612_s2 + $0xc4] ss:$16 sps:$4 sm:$0xff]   ;;  %4876 = vmatpush1.bf16.msra.mxu0 %v7518_v2  ;;  %v7524_v6 = vld [vmem:[%s11612_s2 + $0xc0] ss:$16 sps:$4 sm:$0xff]  }
   0x4   :  { %4917 = vmatpush1.bf16.msra.mxu1 %v7519_v3  ;;  %v7522_v5 = vld [vmem:[%s11612_s2 + $0x2c4] ss:$16 sps:$4 sm:$0xff]   ;;  %4877 = vmatprep.subr.bf16.mxu0 %v7520_v4  ;;  %v7525_v7 = vld [vmem:[%s11612_s2 + $0x2c0] ss:$16 sps:$4 sm:$0xff]  }
   0x5   :  { %4918 = vmatprep.subr.bf16.mxu1 %v7522_v5  ;;  %v7526_v8 = vld [vmem:[%s11612_s2 + $0xa4] ss:$16 sps:$4 sm:$0xff]   ;;  %v7530_v10 = vld [vmem:[%s11612_s2 + $0xa0] ss:$16 sps:$4 sm:$0xff]   ;;  %4948 = vmatprep.mubr.bf16.mxu1 %v8974_v51 }
   0x6   :  { %v7528_v9 = vld [vmem:[%s11612_s2 + $0x2a4] ss:$16 sps:$4 sm:$0xff]   ;;  %v7531_v11 = vld [vmem:[%s11612_s2 + $0x2a0] ss:$16 sps:$4 sm:$0xff]  }
   0x7   :  { %4878 = vmatpush1.bf16.msra.mxu0 %v7524_v6  ;;  %v7532_v12 = vld [vmem:[%s11612_s2 + $0x84] ss:$16 sps:$4 sm:$0xff]   ;;  %v7536_v14 = vld [vmem:[%s11612_s2 + $0x80] ss:$16 sps:$4 sm:$0xff]  }
   0x8   :  { %4919 = vmatpush1.bf16.msra.mxu1 %v7525_v7  ;;  %4879 = vmatprep.subr.bf16.mxu0 %v7526_v8  ;;  %v7534_v13 = vld [vmem:[%s11612_s2 + $0x284] ss:$16 sps:$4 sm:$0xff]   ;;  %v7537_v15 = vld [vmem:[%s11612_s2 + $0x280] ss:$16 sps:$4 sm:$0xff]   ;;  %v9034_v7 = vcombine.low %v46_v48, %v46_v48 }
   0x9   :  { %4920 = vmatprep.subr.bf16.mxu1 %v7528_v9  ;;  %v7538_v16 = vld [vmem:[%s11612_s2 + $0x64] ss:$16 sps:$4 sm:$0xff]   ;;  %v7542_v18 = vld [vmem:[%s11612_s2 + $0x60] ss:$16 sps:$4 sm:$0xff]  }
   0xa   :  { %v7540_v17 = vld [vmem:[%s11612_s2 + $0x264] ss:$16 sps:$4 sm:$0xff]   ;;  %v7543_v19 = vld [vmem:[%s11612_s2 + $0x260] ss:$16 sps:$4 sm:$0xff]  }
   0xb   :  { %4880 = vmatpush1.bf16.msra.mxu0 %v7530_v10  ;;  %v7544_v20 = vld [vmem:[%s11612_s2 + $0x44] ss:$16 sps:$4 sm:$0xff]   ;;  %v7548_v22 = vld [vmem:[%s11612_s2 + $0x40] ss:$16 sps:$4 sm:$0xff]  }
   0xc   :  { %4921 = vmatpush1.bf16.msra.mxu1 %v7531_v11  ;;  %4881 = vmatprep.subr.bf16.mxu0 %v7532_v12  ;;  %v7546_v21 = vld [vmem:[%s11612_s2 + $0x244] ss:$16 sps:$4 sm:$0xff]   ;;  %v7549_v23 = vld [vmem:[%s11612_s2 + $0x240] ss:$16 sps:$4 sm:$0xff]  }
   0xd   :  { %4922 = vmatprep.subr.bf16.mxu1 %v7534_v13  ;;  %v7550_v24 = vld [vmem:[%s11612_s2 + $0x24] ss:$16 sps:$4 sm:$0xff]   ;;  %v7554_v26 = vld [vmem:[%s11612_s2 + $0x20] ss:$16 sps:$4 sm:$0xff]  }
   0xe   :  { %v7552_v25 = vld [vmem:[%s11612_s2 + $0x224] ss:$16 sps:$4 sm:$0xff]   ;;  %v7555_v27 = vld [vmem:[%s11612_s2 + $0x220] ss:$16 sps:$4 sm:$0xff]  }
   0xf   :  { %4882 = vmatpush1.bf16.msra.mxu0 %v7536_v14  ;;  %v7556_v28 = vld [vmem:[%s11612_s2 + $0x4] ss:$16 sps:$4 sm:$0xff]   ;;  %v7560_v30 = vld [vmem:[%s11612_s2] ss:$16 sps:$4 sm:$0xff]  }
  0x10   :  { %4923 = vmatpush1.bf16.msra.mxu1 %v7537_v15  ;;  %4883 = vmatprep.subr.bf16.mxu0 %v7538_v16  ;;  %v7558_v29 = vld [vmem:[%s11612_s2 + $0x204] ss:$16 sps:$4 sm:$0xff]   ;;  %v7561_v31 = vld [vmem:[%s11612_s2 + $0x200] ss:$16 sps:$4 sm:$0xff]  }
  0x11   :  { %4924 = vmatprep.subr.bf16.mxu1 %v7540_v17  ;;  %v7562_v32 = vld [vmem:[%s11612_s2 + $0x1e4] ss:$16 sps:$4 sm:$0xff]   ;;  %v7566_v34 = vld [vmem:[%s11612_s2 + $0x1e0] ss:$16 sps:$4 sm:$0xff]  }
  0x12   :  { %v7564_v33 = vld [vmem:[%s11612_s2 + $0x3e4] ss:$16 sps:$4 sm:$0xff]   ;;  %v7567_v35 = vld [vmem:[%s11612_s2 + $0x3e0] ss:$16 sps:$4 sm:$0xff]  }
  0x13   :  { %4884 = vmatpush1.bf16.msra.mxu0 %v7542_v18  ;;  %v7568_v36 = vld [vmem:[%s11612_s2 + $0x1c4] ss:$16 sps:$4 sm:$0xff]   ;;  %v7572_v38 = vld [vmem:[%s11612_s2 + $0x1c0] ss:$16 sps:$4 sm:$0xff]  }
  0x14   :  { %4925 = vmatpush1.bf16.msra.mxu1 %v7543_v19  ;;  %4885 = vmatprep.subr.bf16.mxu0 %v7544_v20  ;;  %v7570_v37 = vld [vmem:[%s11612_s2 + $0x3c4] ss:$16 sps:$4 sm:$0xff]   ;;  %v7573_v39 = vld [vmem:[%s11612_s2 + $0x3c0] ss:$16 sps:$4 sm:$0xff]  }
  0x15   :  { %4926 = vmatprep.subr.bf16.mxu1 %v7546_v21  ;;  %v7574_v40 = vld [vmem:[%s11612_s2 + $0x1a4] ss:$16 sps:$4 sm:$0xff]   ;;  %v7578_v42 = vld [vmem:[%s11612_s2 + $0x1a0] ss:$16 sps:$4 sm:$0xff]  }
  0x16   :  { %v7576_v41 = vld [vmem:[%s11612_s2 + $0x3a4] ss:$16 sps:$4 sm:$0xff]   ;;  %v7579_v43 = vld [vmem:[%s11612_s2 + $0x3a0] ss:$16 sps:$4 sm:$0xff]  }
  0x17   :  { %4886 = vmatpush1.bf16.msra.mxu0 %v7548_v22  ;;  %v7580_v44 = vld [vmem:[%s11612_s2 + $0x184] ss:$16 sps:$4 sm:$0xff]   ;;  %v7584_v49 = vld [vmem:[%s11612_s2 + $0x180] ss:$16 sps:$4 sm:$0xff]  }
  0x18   :  { %4927 = vmatpush1.bf16.msra.mxu1 %v7549_v23  ;;  %4887 = vmatprep.subr.bf16.mxu0 %v7550_v24  ;;  %v7582_v45 = vld [vmem:[%s11612_s2 + $0x384] ss:$16 sps:$4 sm:$0xff]   ;;  %v7585_v50 = vld [vmem:[%s11612_s2 + $0x380] ss:$16 sps:$4 sm:$0xff]  }
  0x19   :  { %4928 = vmatprep.subr.bf16.mxu1 %v7552_v25  ;;  %v45_v46 = vld [vmem:[%s11613_s0] sm:$0xff] }
  0x1a   :  { %v8963_v47 = vcombine.high %v45_v46, %v45_v46  ;;  %v7586_v52 = vld [vmem:[%s11612_s2 + $0x164] ss:$16 sps:$4 sm:$0xff]   ;;  %v7590_v54 = vld [vmem:[%s11612_s2 + $0x160] ss:$16 sps:$4 sm:$0xff]   ;;  %v9032_v6 = vcombine.low %v45_v46, %v45_v46 }
  0x1b   :  { %4888 = vmatpush1.bf16.msra.mxu0 %v7554_v26  ;;  %v7588_v53 = vld [vmem:[%s11612_s2 + $0x364] ss:$16 sps:$4 sm:$0xff]   ;;  %v7591_v55 = vld [vmem:[%s11612_s2 + $0x360] ss:$16 sps:$4 sm:$0xff]  }
  0x1c   :  { %4929 = vmatpush1.bf16.msra.mxu1 %v7555_v27  ;;  %4889 = vmatprep.subr.bf16.mxu0 %v7556_v28  ;;  %v7592_v56 = vld [vmem:[%s11612_s2 + $0x144] ss:$16 sps:$4 sm:$0xff]   ;;  %v7596_v58 = vld [vmem:[%s11612_s2 + $0x140] ss:$16 sps:$4 sm:$0xff]  }
  0x1d   :  { %4930 = vmatprep.subr.bf16.mxu1 %v7558_v29  ;;  %4907 = vmatprep.mubr.bf16.mxu0 %v8963_v47  ;;  %v7594_v57 = vld [vmem:[%s11612_s2 + $0x344] ss:$16 sps:$4 sm:$0xff]   ;;  %v7597_v59 = vld [vmem:[%s11612_s2 + $0x340] ss:$16 sps:$4 sm:$0xff]  }
  0x1e   :  { %v7598_v60 = vld [vmem:[%s11612_s2 + $0x124] ss:$16 sps:$4 sm:$0xff]   ;;  %v7602_v62 = vld [vmem:[%s11612_s2 + $0x120] ss:$16 sps:$4 sm:$0xff]  }
  0x1f   :  { %4890 = vmatpush1.bf16.msra.mxu0 %v7560_v30  ;;  %v7600_v61 = vld [vmem:[%s11612_s2 + $0x324] ss:$16 sps:$4 sm:$0xff]   ;;  %v7603_v63 = vld [vmem:[%s11612_s2 + $0x320] ss:$16 sps:$4 sm:$0xff]  }
  0x20   :  { %4931 = vmatpush1.bf16.msra.mxu1 %v7561_v31  ;;  %4891 = vmatprep.subr.bf16.mxu0 %v7562_v32  ;;  %v7604_v0 = vld [vmem:[%s11612_s2 + $0x104] ss:$16 sps:$4 sm:$0xff]   ;;  %v7608_v2 = vld [vmem:[%s11612_s2 + $0x100] ss:$16 sps:$4 sm:$0xff]  }
  0x21   :  { %4932 = vmatprep.subr.bf16.mxu1 %v7564_v33  ;;  %v7606_v1 = vld [vmem:[%s11612_s2 + $0x304] ss:$16 sps:$4 sm:$0xff]   ;;  %v7609_v3 = vld [vmem:[%s11612_s2 + $0x300] ss:$16 sps:$4 sm:$0xff]   ;;  %v9118_v33 = vld [vmem:[%s11613_s0 + $0x18] sm:$0xff] }
  0x22   :  { %v7616_v4 = vld [vmem:[%s11612_s2 + $0x4e4] ss:$16 sps:$4 sm:$0xff]   ;;  %v7614_v8 = vld [vmem:[%s11612_s2 + $0x4e0] ss:$16 sps:$4 sm:$0xff]  }
  0x23   :  { %4892 = vmatpush2.bf16.msra.mxu0 %v7566_v34  ;;  %v7619_v5 = vld [vmem:[%s11612_s2 + $0x6e4] ss:$16 sps:$4 sm:$0xff]   ;;  %v7617_v9 = vld [vmem:[%s11612_s2 + $0x6e0] ss:$16 sps:$4 sm:$0xff]  }
  0x24   :  { %4933 = vmatpush2.bf16.msra.mxu1 %v7567_v35  ;;  %4893 = vmatprep.subr.bf16.mxu0 %v7568_v36  ;;  %v7622_v10 = vld [vmem:[%s11612_s2 + $0x4c4] ss:$16 sps:$4 sm:$0xff]   ;;  %v7620_v12 = vld [vmem:[%s11612_s2 + $0x4c0] ss:$16 sps:$4 sm:$0xff]  }
  0x25   :  { %4934 = vmatprep.subr.bf16.mxu1 %v7570_v37  ;;  %v7625_v11 = vld [vmem:[%s11612_s2 + $0x6c4] ss:$16 sps:$4 sm:$0xff]   ;;  %v7623_v13 = vld [vmem:[%s11612_s2 + $0x6c0] ss:$16 sps:$4 sm:$0xff]   ;;  %v9132_v37 = vcombine.high %v9118_v33, %v9118_v33 }
  0x26   :  { %v7628_v14 = vld [vmem:[%s11612_s2 + $0x4a4] ss:$16 sps:$4 sm:$0xff]   ;;  %v7626_v16 = vld [vmem:[%s11612_s2 + $0x4a0] ss:$16 sps:$4 sm:$0xff]  }
  0x27   :  { %4894 = vmatpush2.bf16.msra.mxu0 %v7572_v38  ;;  %v7631_v15 = vld [vmem:[%s11612_s2 + $0x6a4] ss:$16 sps:$4 sm:$0xff]   ;;  %v7629_v17 = vld [vmem:[%s11612_s2 + $0x6a0] ss:$16 sps:$4 sm:$0xff]  }
  0x28   :  { %4935 = vmatpush2.bf16.msra.mxu1 %v7573_v39  ;;  %4895 = vmatprep.subr.bf16.mxu0 %v7574_v40  ;;  %v7634_v18 = vld [vmem:[%s11612_s2 + $0x484] ss:$16 sps:$4 sm:$0xff]   ;;  %v7632_v20 = vld [vmem:[%s11612_s2 + $0x480] ss:$16 sps:$4 sm:$0xff]  }
  0x29   :  { %4936 = vmatprep.subr.bf16.mxu1 %v7576_v41  ;;  %v7637_v19 = vld [vmem:[%s11612_s2 + $0x684] ss:$16 sps:$4 sm:$0xff]   ;;  %v7635_v21 = vld [vmem:[%s11612_s2 + $0x680] ss:$16 sps:$4 sm:$0xff]  }
  0x2a   :  { %v7640_v22 = vld [vmem:[%s11612_s2 + $0x464] ss:$16 sps:$4 sm:$0xff]   ;;  %v7638_v24 = vld [vmem:[%s11612_s2 + $0x460] ss:$16 sps:$4 sm:$0xff]  }
  0x2b   :  { %4896 = vmatpush2.bf16.msra.mxu0 %v7578_v42  ;;  %v7643_v23 = vld [vmem:[%s11612_s2 + $0x664] ss:$16 sps:$4 sm:$0xff]   ;;  %v7641_v25 = vld [vmem:[%s11612_s2 + $0x660] ss:$16 sps:$4 sm:$0xff]  }
  0x2c   :  { %4937 = vmatpush2.bf16.msra.mxu1 %v7579_v43  ;;  %4897 = vmatprep.subr.bf16.mxu0 %v7580_v44  ;;  %v7646_v26 = vld [vmem:[%s11612_s2 + $0x444] ss:$16 sps:$4 sm:$0xff]   ;;  %v7644_v28 = vld [vmem:[%s11612_s2 + $0x440] ss:$16 sps:$4 sm:$0xff]  }
  0x2d   :  { %4938 = vmatprep.subr.bf16.mxu1 %v7582_v45  ;;  %v7649_v27 = vld [vmem:[%s11612_s2 + $0x644] ss:$16 sps:$4 sm:$0xff]   ;;  %v7647_v29 = vld [vmem:[%s11612_s2 + $0x640] ss:$16 sps:$4 sm:$0xff]  }
  0x2e   :  { %v7652_v30 = vld [vmem:[%s11612_s2 + $0x424] ss:$16 sps:$4 sm:$0xff]   ;;  %v7650_v34 = vld [vmem:[%s11612_s2 + $0x420] ss:$16 sps:$4 sm:$0xff]  }
  0x2f   :  { %4898 = vmatpush2.bf16.msra.mxu0 %v7584_v49  ;;  %v7655_v31 = vld [vmem:[%s11612_s2 + $0x624] ss:$16 sps:$4 sm:$0xff]   ;;  %v7653_v35 = vld [vmem:[%s11612_s2 + $0x620] ss:$16 sps:$4 sm:$0xff]  }
  0x30   :  { %4939 = vmatpush2.bf16.msra.mxu1 %v7585_v50  ;;  %4899 = vmatprep.subr.bf16.mxu0 %v7586_v52  ;;  %v9113_v32 = vld [vmem:[%s11613_s0 + $0x10] sm:$0xff] }
  0x31   :  { %4940 = vmatprep.subr.bf16.mxu1 %v7588_v53  ;;  %v9128_v36 = vcombine.high %v9113_v32, %v9113_v32  ;;  %v7658_v38 = vld [vmem:[%s11612_s2 + $0x404] ss:$16 sps:$4 sm:$0xff]   ;;  %v7656_v40 = vld [vmem:[%s11612_s2 + $0x400] ss:$16 sps:$4 sm:$0xff]  }
  0x32   :  { %v7661_v39 = vld [vmem:[%s11612_s2 + $0x604] ss:$16 sps:$4 sm:$0xff]   ;;  %v7659_v41 = vld [vmem:[%s11612_s2 + $0x600] ss:$16 sps:$4 sm:$0xff]  }
  0x33   :  { %4900 = vmatpush2.bf16.msra.mxu0 %v7590_v54  ;;  %v7664_v42 = vld [vmem:[%s11612_s2 + $0x5e4] ss:$16 sps:$4 sm:$0xff]   ;;  %v7662_v44 = vld [vmem:[%s11612_s2 + $0x5e0] ss:$16 sps:$4 sm:$0xff]  }
  0x34   :  { %4941 = vmatpush2.bf16.msra.mxu1 %v7591_v55  ;;  %4901 = vmatprep.subr.bf16.mxu0 %v7592_v56  ;;  %v7667_v43 = vld [vmem:[%s11612_s2 + $0x7e4] ss:$16 sps:$4 sm:$0xff]   ;;  %v7665_v45 = vld [vmem:[%s11612_s2 + $0x7e0] ss:$16 sps:$4 sm:$0xff]  }
  0x35   :  { %4942 = vmatprep.subr.bf16.mxu1 %v7594_v57  ;;  %v7670_v46 = vld [vmem:[%s11612_s2 + $0x5c4] ss:$16 sps:$4 sm:$0xff]   ;;  %v7668_v49 = vld [vmem:[%s11612_s2 + $0x5c0] ss:$16 sps:$4 sm:$0xff]  }
  0x36   :  { %v7673_v48 = vld [vmem:[%s11612_s2 + $0x7c4] ss:$16 sps:$4 sm:$0xff]   ;;  %v7671_v50 = vld [vmem:[%s11612_s2 + $0x7c0] ss:$16 sps:$4 sm:$0xff]  }
  0x37   :  { %4902 = vmatpush2.bf16.msra.mxu0 %v7596_v58  ;;  %v7676_v52 = vld [vmem:[%s11612_s2 + $0x5a4] ss:$16 sps:$4 sm:$0xff]   ;;  %v7674_v54 = vld [vmem:[%s11612_s2 + $0x5a0] ss:$16 sps:$4 sm:$0xff]  }
  0x38   :  { %4943 = vmatpush2.bf16.msra.mxu1 %v7597_v59  ;;  %4903 = vmatprep.subr.bf16.mxu0 %v7598_v60  ;;  %v7679_v53 = vld [vmem:[%s11612_s2 + $0x7a4] ss:$16 sps:$4 sm:$0xff]   ;;  %v7677_v55 = vld [vmem:[%s11612_s2 + $0x7a0] ss:$16 sps:$4 sm:$0xff]  }
  0x39   :  { %4944 = vmatprep.subr.bf16.mxu1 %v7600_v61  ;;  %v7682_v56 = vld [vmem:[%s11612_s2 + $0x584] ss:$16 sps:$4 sm:$0xff]   ;;  %v7680_v58 = vld [vmem:[%s11612_s2 + $0x580] ss:$16 sps:$4 sm:$0xff]  }
  0x3a   :  { %v7685_v57 = vld [vmem:[%s11612_s2 + $0x784] ss:$16 sps:$4 sm:$0xff]   ;;  %v7683_v59 = vld [vmem:[%s11612_s2 + $0x780] ss:$16 sps:$4 sm:$0xff]  }
  0x3b   :  { %4904 = vmatpush2.bf16.msra.mxu0 %v7602_v62  ;;  %v7688_v60 = vld [vmem:[%s11612_s2 + $0x564] ss:$16 sps:$4 sm:$0xff]   ;;  %v7686_v62 = vld [vmem:[%s11612_s2 + $0x560] ss:$16 sps:$4 sm:$0xff]  }
  0x3c   :  { %4945 = vmatpush2.bf16.msra.mxu1 %v7603_v63  ;;  %4905 = vmatprep.subr.bf16.mxu0 %v7604_v0  ;;  %v7691_v61 = vld [vmem:[%s11612_s2 + $0x764] ss:$16 sps:$4 sm:$0xff]   ;;  %v7689_v63 = vld [vmem:[%s11612_s2 + $0x760] ss:$16 sps:$4 sm:$0xff]  }
  0x3d   :  { %4946 = vmatprep.subr.bf16.mxu1 %v7606_v1  ;;  %v7694_v0 = vld [vmem:[%s11612_s2 + $0x544] ss:$16 sps:$4 sm:$0xff]  }
  0x3e   :  { %v7697_v1 = vld [vmem:[%s11612_s2 + $0x744] ss:$16 sps:$4 sm:$0xff]  }
  0x3f   :  { %4906 = vmatpush2.bf16.msra.mxu0 %v7608_v2  ;;  %v7692_v2 = vld [vmem:[%s11612_s2 + $0x540] ss:$16 sps:$4 sm:$0xff]  }
  0x40   :  { %4947 = vmatpush2.bf16.msra.mxu1 %v7609_v3  ;;  %4957 = vmatprep.subr.bf16.mxu0 %v7616_v4  ;;  %v7695_v3 = vld [vmem:[%s11612_s2 + $0x740] ss:$16 sps:$4 sm:$0xff]   ;;  %v7700_v4 = vld [vmem:[%s11612_s2 + $0x524] ss:$16 sps:$4 sm:$0xff]  }
  0x41   :  { %4998 = vmatprep.subr.bf16.mxu1 %v7619_v5  ;;  %v7703_v5 = vld [vmem:[%s11612_s2 + $0x724] ss:$16 sps:$4 sm:$0xff]  }
  0x42   :  { %4908 = vmatmul.mubr.bf16.vlgmr.msra.gmra.mxu0 %v9032_v6 }
  0x43   :  { %4949 = vmatmul.mubr.bf16.vlgmr.msra.gmra.mxu1 %v9034_v7  ;;  %4958 = vmatpush1.bf16.msra.mxu0 %v7614_v8  ;;  %v7698_v8 = vld [vmem:[%s11612_s2 + $0x520] ss:$16 sps:$4 sm:$0xff]  }
  0x44   :  { %4999 = vmatpush1.bf16.msra.mxu1 %v7617_v9  ;;  %4959 = vmatprep.subr.bf16.mxu0 %v7622_v10  ;;  %v7701_v9 = vld [vmem:[%s11612_s2 + $0x720] ss:$16 sps:$4 sm:$0xff]   ;;  %v7706_v10 = vld [vmem:[%s11612_s2 + $0x504] ss:$16 sps:$4 sm:$0xff]  }
  0x45   :  { %5000 = vmatprep.subr.bf16.mxu1 %v7625_v11  ;;  %4989 = vmatprep.mubr.bf16.mxu0 %v9128_v36  ;;  %v7709_v11 = vld [vmem:[%s11612_s2 + $0x704] ss:$16 sps:$4 sm:$0xff]  }
  0x46   :  { %5030 = vmatprep.mubr.bf16.mxu1 %v9132_v37 }
  0x47   :  { %4960 = vmatpush1.bf16.msra.mxu0 %v7620_v12  ;;  %v7704_v12 = vld [vmem:[%s11612_s2 + $0x500] ss:$16 sps:$4 sm:$0xff]  }
  0x48   :  { %5001 = vmatpush1.bf16.msra.mxu1 %v7623_v13  ;;  %4961 = vmatprep.subr.bf16.mxu0 %v7628_v14  ;;  %v7707_v13 = vld [vmem:[%s11612_s2 + $0x700] ss:$16 sps:$4 sm:$0xff]   ;;  %v7716_v14 = vld [vmem:[%s11612_s2 + $0x8e4] ss:$16 sps:$4 sm:$0xff]  }
  0x49   :  { %5002 = vmatprep.subr.bf16.mxu1 %v7631_v15  ;;  %v7719_v15 = vld [vmem:[%s11612_s2 + $0xae4] ss:$16 sps:$4 sm:$0xff]  }
  0x4b   :  { %4962 = vmatpush1.bf16.msra.mxu0 %v7626_v16  ;;  %v9252_v16 = vcombine.low %v9113_v32, %v9113_v32  ;;  %v7734_v32 = vld [vmem:[%s11612_s2 + $0x884] ss:$16 sps:$4 sm:$0xff]  }
  0x4c   :  { %5003 = vmatpush1.bf16.msra.mxu1 %v7629_v17  ;;  %4963 = vmatprep.subr.bf16.mxu0 %v7634_v18  ;;  %v9256_v17 = vcombine.low %v9118_v33, %v9118_v33  ;;  %v7714_v18 = vld [vmem:[%s11612_s2 + $0x8e0] ss:$16 sps:$4 sm:$0xff]   ;;  %v7737_v33 = vld [vmem:[%s11612_s2 + $0xa84] ss:$16 sps:$4 sm:$0xff]  }
  0x4d   :  { %5004 = vmatprep.subr.bf16.mxu1 %v7637_v19  ;;  %v7717_v19 = vld [vmem:[%s11612_s2 + $0xae0] ss:$16 sps:$4 sm:$0xff]  }
  0x4f   :  { %4964 = vmatpush1.bf16.msra.mxu0 %v7632_v20  ;;  %v7722_v20 = vld [vmem:[%s11612_s2 + $0x8c4] ss:$16 sps:$4 sm:$0xff]  }
  0x50   :  { %5005 = vmatpush1.bf16.msra.mxu1 %v7635_v21  ;;  %4965 = vmatprep.subr.bf16.mxu0 %v7640_v22  ;;  %v7725_v21 = vld [vmem:[%s11612_s2 + $0xac4] ss:$16 sps:$4 sm:$0xff]  }
  0x51   :  { %5006 = vmatprep.subr.bf16.mxu1 %v7643_v23  ;;  %v9273_v22 = vld [vmem:[%s11613_s0 + $0x20] sm:$0xff]  ;;  %v9278_v23 = vld [vmem:[%s11613_s0 + $0x28] sm:$0xff] }
  0x53   :  { %4966 = vmatpush1.bf16.msra.mxu0 %v7638_v24  ;;  %v9282_v24 = vcombine.high %v9273_v22, %v9273_v22 }
  0x54   :  { %5007 = vmatpush1.bf16.msra.mxu1 %v7641_v25  ;;  %4967 = vmatprep.subr.bf16.mxu0 %v7646_v26  ;;  %v9286_v25 = vcombine.high %v9278_v23, %v9278_v23  ;;  %v7720_v26 = vld [vmem:[%s11612_s2 + $0x8c0] ss:$16 sps:$4 sm:$0xff]  }
  0x55   :  { %5008 = vmatprep.subr.bf16.mxu1 %v7649_v27  ;;  %v7723_v27 = vld [vmem:[%s11612_s2 + $0xac0] ss:$16 sps:$4 sm:$0xff]  }
  0x57   :  { %4968 = vmatpush1.bf16.msra.mxu0 %v7644_v28  ;;  %v7728_v28 = vld [vmem:[%s11612_s2 + $0x8a4] ss:$16 sps:$4 sm:$0xff]  }
  0x58   :  { %5009 = vmatpush1.bf16.msra.mxu1 %v7647_v29  ;;  %4969 = vmatprep.subr.bf16.mxu0 %v7652_v30  ;;  %v7731_v29 = vld [vmem:[%s11612_s2 + $0xaa4] ss:$16 sps:$4 sm:$0xff]   ;;  %v7726_v30 = vld [vmem:[%s11612_s2 + $0x8a0] ss:$16 sps:$4 sm:$0xff]  }
  0x59   :  { %5010 = vmatprep.subr.bf16.mxu1 %v7655_v31  ;;  %v7729_v31 = vld [vmem:[%s11612_s2 + $0xaa0] ss:$16 sps:$4 sm:$0xff]  }
  0x5b   :  { %4970 = vmatpush1.bf16.msra.mxu0 %v7650_v34  ;;  %v7732_v34 = vld [vmem:[%s11612_s2 + $0x880] ss:$16 sps:$4 sm:$0xff]  }
  0x5c   :  { %5011 = vmatpush1.bf16.msra.mxu1 %v7653_v35  ;;  %4971 = vmatprep.subr.bf16.mxu0 %v7658_v38  ;;  %v7735_v35 = vld [vmem:[%s11612_s2 + $0xa80] ss:$16 sps:$4 sm:$0xff]   ;;  %v7740_v38 = vld [vmem:[%s11612_s2 + $0x864] ss:$16 sps:$4 sm:$0xff]  }
  0x5d   :  { %5012 = vmatprep.subr.bf16.mxu1 %v7661_v39  ;;  %v7743_v39 = vld [vmem:[%s11612_s2 + $0xa64] ss:$16 sps:$4 sm:$0xff]  }
  0x5f   :  { %4972 = vmatpush1.bf16.msra.mxu0 %v7656_v40  ;;  %v7738_v40 = vld [vmem:[%s11612_s2 + $0x860] ss:$16 sps:$4 sm:$0xff]  }
  0x60   :  { %5013 = vmatpush1.bf16.msra.mxu1 %v7659_v41  ;;  %4973 = vmatprep.subr.bf16.mxu0 %v7664_v42  ;;  %v7741_v41 = vld [vmem:[%s11612_s2 + $0xa60] ss:$16 sps:$4 sm:$0xff]   ;;  %v7746_v42 = vld [vmem:[%s11612_s2 + $0x844] ss:$16 sps:$4 sm:$0xff]  }
  0x61   :  { %5014 = vmatprep.subr.bf16.mxu1 %v7667_v43  ;;  %v7749_v43 = vld [vmem:[%s11612_s2 + $0xa44] ss:$16 sps:$4 sm:$0xff]  }
  0x63   :  { %4974 = vmatpush2.bf16.msra.mxu0 %v7662_v44  ;;  %v7744_v44 = vld [vmem:[%s11612_s2 + $0x840] ss:$16 sps:$4 sm:$0xff]  }
  0x64   :  { %5015 = vmatpush2.bf16.msra.mxu1 %v7665_v45  ;;  %4975 = vmatprep.subr.bf16.mxu0 %v7670_v46  ;;  %v7747_v45 = vld [vmem:[%s11612_s2 + $0xa40] ss:$16 sps:$4 sm:$0xff]   ;;  %v7752_v46 = vld [vmem:[%s11612_s2 + $0x824] ss:$16 sps:$4 sm:$0xff]  }
  0x65   :  { %5016 = vmatprep.subr.bf16.mxu1 %v7673_v48  ;;  %v7755_v48 = vld [vmem:[%s11612_s2 + $0xa24] ss:$16 sps:$4 sm:$0xff]  }
  0x67   :  { %4976 = vmatpush2.bf16.msra.mxu0 %v7668_v49  ;;  %v7750_v49 = vld [vmem:[%s11612_s2 + $0x820] ss:$16 sps:$4 sm:$0xff]  }
  0x68   :  { %5017 = vmatpush2.bf16.msra.mxu1 %v7671_v50  ;;  %4977 = vmatprep.subr.bf16.mxu0 %v7676_v52  ;;  %v7753_v50 = vld [vmem:[%s11612_s2 + $0xa20] ss:$16 sps:$4 sm:$0xff]   ;;  %v7758_v52 = vld [vmem:[%s11612_s2 + $0x804] ss:$16 sps:$4 sm:$0xff]  }
  0x69   :  { %5018 = vmatprep.subr.bf16.mxu1 %v7679_v53  ;;  %v7761_v53 = vld [vmem:[%s11612_s2 + $0xa04] ss:$16 sps:$4 sm:$0xff]  }
  0x6b   :  { %4978 = vmatpush2.bf16.msra.mxu0 %v7674_v54  ;;  %v7756_v54 = vld [vmem:[%s11612_s2 + $0x800] ss:$16 sps:$4 sm:$0xff]  }
  0x6c   :  { %5019 = vmatpush2.bf16.msra.mxu1 %v7677_v55  ;;  %4979 = vmatprep.subr.bf16.mxu0 %v7682_v56  ;;  %v7759_v55 = vld [vmem:[%s11612_s2 + $0xa00] ss:$16 sps:$4 sm:$0xff]   ;;  %v7764_v56 = vld [vmem:[%s11612_s2 + $0x9e4] ss:$16 sps:$4 sm:$0xff]  }
  0x6d   :  { %5020 = vmatprep.subr.bf16.mxu1 %v7685_v57  ;;  %v7767_v57 = vld [vmem:[%s11612_s2 + $0xbe4] ss:$16 sps:$4 sm:$0xff]  }
  0x6f   :  { %4980 = vmatpush2.bf16.msra.mxu0 %v7680_v58  ;;  %v7762_v58 = vld [vmem:[%s11612_s2 + $0x9e0] ss:$16 sps:$4 sm:$0xff]  }
  0x70   :  { %5021 = vmatpush2.bf16.msra.mxu1 %v7683_v59  ;;  %4981 = vmatprep.subr.bf16.mxu0 %v7688_v60  ;;  %v7765_v59 = vld [vmem:[%s11612_s2 + $0xbe0] ss:$16 sps:$4 sm:$0xff]   ;;  %v7770_v60 = vld [vmem:[%s11612_s2 + $0x9c4] ss:$16 sps:$4 sm:$0xff]  }
  0x71   :  { %5022 = vmatprep.subr.bf16.mxu1 %v7691_v61  ;;  %v7773_v61 = vld [vmem:[%s11612_s2 + $0xbc4] ss:$16 sps:$4 sm:$0xff]  }
  0x73   :  { %4982 = vmatpush2.bf16.msra.mxu0 %v7686_v62  ;;  %v7768_v62 = vld [vmem:[%s11612_s2 + $0x9c0] ss:$16 sps:$4 sm:$0xff]  }
  0x74   :  { %5023 = vmatpush2.bf16.msra.mxu1 %v7689_v63  ;;  %4983 = vmatprep.subr.bf16.mxu0 %v7694_v0  ;;  %v7771_v63 = vld [vmem:[%s11612_s2 + $0xbc0] ss:$16 sps:$4 sm:$0xff]   ;;  %v7776_v0 = vld [vmem:[%s11612_s2 + $0x9a4] ss:$16 sps:$4 sm:$0xff]  }
  0x75   :  { %5024 = vmatprep.subr.bf16.mxu1 %v7697_v1  ;;  %v7779_v1 = vld [vmem:[%s11612_s2 + $0xba4] ss:$16 sps:$4 sm:$0xff]  }
  0x77   :  { %4984 = vmatpush2.bf16.msra.mxu0 %v7692_v2  ;;  %v7774_v2 = vld [vmem:[%s11612_s2 + $0x9a0] ss:$16 sps:$4 sm:$0xff]  }
  0x78   :  { %5025 = vmatpush2.bf16.msra.mxu1 %v7695_v3  ;;  %4985 = vmatprep.subr.bf16.mxu0 %v7700_v4  ;;  %v7777_v3 = vld [vmem:[%s11612_s2 + $0xba0] ss:$16 sps:$4 sm:$0xff]   ;;  %v7782_v4 = vld [vmem:[%s11612_s2 + $0x984] ss:$16 sps:$4 sm:$0xff]  }
  0x79   :  { %5026 = vmatprep.subr.bf16.mxu1 %v7703_v5  ;;  %v7785_v5 = vld [vmem:[%s11612_s2 + $0xb84] ss:$16 sps:$4 sm:$0xff]  }
  0x7b   :  { %4986 = vmatpush2.bf16.msra.mxu0 %v7698_v8  ;;  %v7780_v8 = vld [vmem:[%s11612_s2 + $0x980] ss:$16 sps:$4 sm:$0xff]  }
  0x7c   :  { %5027 = vmatpush2.bf16.msra.mxu1 %v7701_v9  ;;  %4987 = vmatprep.subr.bf16.mxu0 %v7706_v10  ;;  %v7783_v9 = vld [vmem:[%s11612_s2 + $0xb80] ss:$16 sps:$4 sm:$0xff]   ;;  %v7788_v10 = vld [vmem:[%s11612_s2 + $0x964] ss:$16 sps:$4 sm:$0xff]  }
  0x7d   :  { %5028 = vmatprep.subr.bf16.mxu1 %v7709_v11  ;;  %v7791_v11 = vld [vmem:[%s11612_s2 + $0xb64] ss:$16 sps:$4 sm:$0xff]  }
  0x7f   :  { %4988 = vmatpush2.bf16.msra.mxu0 %v7704_v12  ;;  %v7786_v12 = vld [vmem:[%s11612_s2 + $0x960] ss:$16 sps:$4 sm:$0xff]  }
  0x80   :  { %5029 = vmatpush2.bf16.msra.mxu1 %v7707_v13  ;;  %5039 = vmatprep.subr.bf16.mxu0 %v7716_v14  ;;  %v7789_v13 = vld [vmem:[%s11612_s2 + $0xb60] ss:$16 sps:$4 sm:$0xff]   ;;  %v7794_v14 = vld [vmem:[%s11612_s2 + $0x944] ss:$16 sps:$4 sm:$0xff]  }
  0x81   :  { %5080 = vmatprep.subr.bf16.mxu1 %v7719_v15  ;;  %v7797_v15 = vld [vmem:[%s11612_s2 + $0xb44] ss:$16 sps:$4 sm:$0xff]  }
  0x82   :  { %4990 = vmatmul.mubr.bf16.vlgmr.msra.gmra.mxu0 %v9252_v16 }
  0x83   :  { %5031 = vmatmul.mubr.bf16.vlgmr.msra.gmra.mxu1 %v9256_v17  ;;  %5040 = vmatpush1.bf16.msra.mxu0 %v7714_v18  ;;  %v7792_v18 = vld [vmem:[%s11612_s2 + $0x940] ss:$16 sps:$4 sm:$0xff]  }
  0x84   :  { %5081 = vmatpush1.bf16.msra.mxu1 %v7717_v19  ;;  %5041 = vmatprep.subr.bf16.mxu0 %v7722_v20  ;;  %v7795_v19 = vld [vmem:[%s11612_s2 + $0xb40] ss:$16 sps:$4 sm:$0xff]   ;;  %v7800_v20 = vld [vmem:[%s11612_s2 + $0x924] ss:$16 sps:$4 sm:$0xff]  }
  0x85   :  { %5082 = vmatprep.subr.bf16.mxu1 %v7725_v21  ;;  %5071 = vmatprep.mubr.bf16.mxu0 %v9282_v24  ;;  %v7803_v21 = vld [vmem:[%s11612_s2 + $0xb24] ss:$16 sps:$4 sm:$0xff]  }
  0x86   :  { %5112 = vmatprep.mubr.bf16.mxu1 %v9286_v25 }
  0x87   :  { %5042 = vmatpush1.bf16.msra.mxu0 %v7720_v26  ;;  %v7798_v26 = vld [vmem:[%s11612_s2 + $0x920] ss:$16 sps:$4 sm:$0xff]  }
  0x88   :  { %5083 = vmatpush1.bf16.msra.mxu1 %v7723_v27  ;;  %5043 = vmatprep.subr.bf16.mxu0 %v7728_v28  ;;  %v7801_v27 = vld [vmem:[%s11612_s2 + $0xb20] ss:$16 sps:$4 sm:$0xff]   ;;  %v7806_v28 = vld [vmem:[%s11612_s2 + $0x904] ss:$16 sps:$4 sm:$0xff]  }
  0x89   :  { %5084 = vmatprep.subr.bf16.mxu1 %v7731_v29  ;;  %v7809_v29 = vld [vmem:[%s11612_s2 + $0xb04] ss:$16 sps:$4 sm:$0xff]  }
  0x8b   :  { %5044 = vmatpush1.bf16.msra.mxu0 %v7726_v30  ;;  %v7804_v30 = vld [vmem:[%s11612_s2 + $0x900] ss:$16 sps:$4 sm:$0xff]  }
  0x8c   :  { %5085 = vmatpush1.bf16.msra.mxu1 %v7729_v31  ;;  %5045 = vmatprep.subr.bf16.mxu0 %v7734_v32  ;;  %v7807_v31 = vld [vmem:[%s11612_s2 + $0xb00] ss:$16 sps:$4 sm:$0xff]   ;;  %v7816_v32 = vld [vmem:[%s11612_s2 + $0xce4] ss:$16 sps:$4 sm:$0xff]  }
  0x8d   :  { %5086 = vmatprep.subr.bf16.mxu1 %v7737_v33  ;;  %v7819_v33 = vld [vmem:[%s11612_s2 + $0xee4] ss:$16 sps:$4 sm:$0xff]  }
  0x8f   :  { %5046 = vmatpush1.bf16.msra.mxu0 %v7732_v34  ;;  %v7814_v34 = vld [vmem:[%s11612_s2 + $0xce0] ss:$16 sps:$4 sm:$0xff]  }
  0x90   :  { %5087 = vmatpush1.bf16.msra.mxu1 %v7735_v35  ;;  %5047 = vmatprep.subr.bf16.mxu0 %v7740_v38  ;;  %v9478_v35 = vld [vmem:[%s11613_s0 + $0x30] sm:$0xff]  ;;  %v9482_v38 = vcombine.low %v9273_v22, %v9273_v22 }
  0x91   :  { %5088 = vmatprep.subr.bf16.mxu1 %v7743_v39  ;;  %v9486_v39 = vcombine.low %v9278_v23, %v9278_v23  ;;  %v7822_v22 = vld [vmem:[%s11612_s2 + $0xcc4] ss:$16 sps:$4 sm:$0xff]  }
  0x92   :  { %v7825_v23 = vld [vmem:[%s11612_s2 + $0xec4] ss:$16 sps:$4 sm:$0xff]  }
  0x93   :  { %5048 = vmatpush1.bf16.msra.mxu0 %v7738_v40  ;;  %v9491_v40 = vld [vmem:[%s11613_s0 + $0x38] sm:$0xff] }
  0x94   :  { %5089 = vmatpush1.bf16.msra.mxu1 %v7741_v41  ;;  %5049 = vmatprep.subr.bf16.mxu0 %v7746_v42  ;;  %v7817_v41 = vld [vmem:[%s11612_s2 + $0xee0] ss:$16 sps:$4 sm:$0xff]   ;;  %v9504_v42 = vcombine.high %v9478_v35, %v9478_v35 }
  0x95   :  { %5090 = vmatprep.subr.bf16.mxu1 %v7749_v43  ;;  %v9508_v43 = vcombine.high %v9491_v40, %v9491_v40 }
  0x97   :  { %5050 = vmatpush1.bf16.msra.mxu0 %v7744_v44  ;;  %v7820_v44 = vld [vmem:[%s11612_s2 + $0xcc0] ss:$16 sps:$4 sm:$0xff]  }
  0x98   :  { %5091 = vmatpush1.bf16.msra.mxu1 %v7747_v45  ;;  %5051 = vmatprep.subr.bf16.mxu0 %v7752_v46  ;;  %v7823_v45 = vld [vmem:[%s11612_s2 + $0xec0] ss:$16 sps:$4 sm:$0xff]   ;;  %v7828_v46 = vld [vmem:[%s11612_s2 + $0xca4] ss:$16 sps:$4 sm:$0xff]  }
  0x99   :  { %5092 = vmatprep.subr.bf16.mxu1 %v7755_v48  ;;  %v7831_v48 = vld [vmem:[%s11612_s2 + $0xea4] ss:$16 sps:$4 sm:$0xff]  }
  0x9b   :  { %5052 = vmatpush1.bf16.msra.mxu0 %v7750_v49  ;;  %v7826_v49 = vld [vmem:[%s11612_s2 + $0xca0] ss:$16 sps:$4 sm:$0xff]  }
  0x9c   :  { %5093 = vmatpush1.bf16.msra.mxu1 %v7753_v50  ;;  %5053 = vmatprep.subr.bf16.mxu0 %v7758_v52  ;;  %v7829_v50 = vld [vmem:[%s11612_s2 + $0xea0] ss:$16 sps:$4 sm:$0xff]   ;;  %v7834_v52 = vld [vmem:[%s11612_s2 + $0xc84] ss:$16 sps:$4 sm:$0xff]  }
  0x9d   :  { %5094 = vmatprep.subr.bf16.mxu1 %v7761_v53  ;;  %v7837_v53 = vld [vmem:[%s11612_s2 + $0xe84] ss:$16 sps:$4 sm:$0xff]  }
  0x9f   :  { %5054 = vmatpush1.bf16.msra.mxu0 %v7756_v54  ;;  %v7832_v54 = vld [vmem:[%s11612_s2 + $0xc80] ss:$16 sps:$4 sm:$0xff]  }
  0xa0   :  { %5095 = vmatpush1.bf16.msra.mxu1 %v7759_v55  ;;  %5055 = vmatprep.subr.bf16.mxu0 %v7764_v56  ;;  %v7835_v55 = vld [vmem:[%s11612_s2 + $0xe80] ss:$16 sps:$4 sm:$0xff]   ;;  %v7840_v56 = vld [vmem:[%s11612_s2 + $0xc64] ss:$16 sps:$4 sm:$0xff]  }
  0xa1   :  { %5096 = vmatprep.subr.bf16.mxu1 %v7767_v57  ;;  %v7843_v57 = vld [vmem:[%s11612_s2 + $0xe64] ss:$16 sps:$4 sm:$0xff]  }
  0xa3   :  { %5056 = vmatpush2.bf16.msra.mxu0 %v7762_v58  ;;  %v7838_v58 = vld [vmem:[%s11612_s2 + $0xc60] ss:$16 sps:$4 sm:$0xff]  }
  0xa4   :  { %5097 = vmatpush2.bf16.msra.mxu1 %v7765_v59  ;;  %5057 = vmatprep.subr.bf16.mxu0 %v7770_v60  ;;  %v7841_v59 = vld [vmem:[%s11612_s2 + $0xe60] ss:$16 sps:$4 sm:$0xff]   ;;  %v7846_v60 = vld [vmem:[%s11612_s2 + $0xc44] ss:$16 sps:$4 sm:$0xff]  }
  0xa5   :  { %5098 = vmatprep.subr.bf16.mxu1 %v7773_v61  ;;  %v7849_v61 = vld [vmem:[%s11612_s2 + $0xe44] ss:$16 sps:$4 sm:$0xff]  }
  0xa7   :  { %5058 = vmatpush2.bf16.msra.mxu0 %v7768_v62  ;;  %v7844_v62 = vld [vmem:[%s11612_s2 + $0xc40] ss:$16 sps:$4 sm:$0xff]  }
  0xa8   :  { %5099 = vmatpush2.bf16.msra.mxu1 %v7771_v63  ;;  %5059 = vmatprep.subr.bf16.mxu0 %v7776_v0  ;;  %v7847_v63 = vld [vmem:[%s11612_s2 + $0xe40] ss:$16 sps:$4 sm:$0xff]   ;;  %v7852_v0 = vld [vmem:[%s11612_s2 + $0xc24] ss:$16 sps:$4 sm:$0xff]  }
  0xa9   :  { %5100 = vmatprep.subr.bf16.mxu1 %v7779_v1  ;;  %v7855_v1 = vld [vmem:[%s11612_s2 + $0xe24] ss:$16 sps:$4 sm:$0xff]  }
  0xab   :  { %5060 = vmatpush2.bf16.msra.mxu0 %v7774_v2  ;;  %v7850_v2 = vld [vmem:[%s11612_s2 + $0xc20] ss:$16 sps:$4 sm:$0xff]  }
  0xac   :  { %5101 = vmatpush2.bf16.msra.mxu1 %v7777_v3  ;;  %5061 = vmatprep.subr.bf16.mxu0 %v7782_v4  ;;  %v7853_v3 = vld [vmem:[%s11612_s2 + $0xe20] ss:$16 sps:$4 sm:$0xff]   ;;  %v7858_v4 = vld [vmem:[%s11612_s2 + $0xc04] ss:$16 sps:$4 sm:$0xff]  }
  0xad   :  { %5102 = vmatprep.subr.bf16.mxu1 %v7785_v5  ;;  %v7861_v5 = vld [vmem:[%s11612_s2 + $0xe04] ss:$16 sps:$4 sm:$0xff]  }
  0xaf   :  { %5062 = vmatpush2.bf16.msra.mxu0 %v7780_v8  ;;  %v7856_v8 = vld [vmem:[%s11612_s2 + $0xc00] ss:$16 sps:$4 sm:$0xff]  }
  0xb0   :  { %5103 = vmatpush2.bf16.msra.mxu1 %v7783_v9  ;;  %5063 = vmatprep.subr.bf16.mxu0 %v7788_v10  ;;  %v7859_v9 = vld [vmem:[%s11612_s2 + $0xe00] ss:$16 sps:$4 sm:$0xff]   ;;  %v7864_v10 = vld [vmem:[%s11612_s2 + $0xde4] ss:$16 sps:$4 sm:$0xff]  }
  0xb1   :  { %5104 = vmatprep.subr.bf16.mxu1 %v7791_v11  ;;  %v7867_v11 = vld [vmem:[%s11612_s2 + $0xfe4] ss:$16 sps:$4 sm:$0xff]  }
  0xb3   :  { %5064 = vmatpush2.bf16.msra.mxu0 %v7786_v12  ;;  %v7862_v12 = vld [vmem:[%s11612_s2 + $0xde0] ss:$16 sps:$4 sm:$0xff]  }
  0xb4   :  { %5105 = vmatpush2.bf16.msra.mxu1 %v7789_v13  ;;  %5065 = vmatprep.subr.bf16.mxu0 %v7794_v14  ;;  %v7865_v13 = vld [vmem:[%s11612_s2 + $0xfe0] ss:$16 sps:$4 sm:$0xff]   ;;  %v7870_v14 = vld [vmem:[%s11612_s2 + $0xdc4] ss:$16 sps:$4 sm:$0xff]  }
  0xb5   :  { %5106 = vmatprep.subr.bf16.mxu1 %v7797_v15  ;;  %v7873_v15 = vld [vmem:[%s11612_s2 + $0xfc4] ss:$16 sps:$4 sm:$0xff]  }
  0xb7   :  { %5066 = vmatpush2.bf16.msra.mxu0 %v7792_v18  ;;  %v7868_v18 = vld [vmem:[%s11612_s2 + $0xdc0] ss:$16 sps:$4 sm:$0xff]  }
  0xb8   :  { %5107 = vmatpush2.bf16.msra.mxu1 %v7795_v19  ;;  %5067 = vmatprep.subr.bf16.mxu0 %v7800_v20  ;;  %v7871_v19 = vld [vmem:[%s11612_s2 + $0xfc0] ss:$16 sps:$4 sm:$0xff]   ;;  %v7876_v20 = vld [vmem:[%s11612_s2 + $0xda4] ss:$16 sps:$4 sm:$0xff]  }
  0xb9   :  { %5108 = vmatprep.subr.bf16.mxu1 %v7803_v21  ;;  %v7879_v21 = vld [vmem:[%s11612_s2 + $0xfa4] ss:$16 sps:$4 sm:$0xff]  }
  0xbb   :  { %5068 = vmatpush2.bf16.msra.mxu0 %v7798_v26  ;;  %v7874_v26 = vld [vmem:[%s11612_s2 + $0xda0] ss:$16 sps:$4 sm:$0xff]  }
  0xbc   :  { %5109 = vmatpush2.bf16.msra.mxu1 %v7801_v27  ;;  %5069 = vmatprep.subr.bf16.mxu0 %v7806_v28  ;;  %v7877_v27 = vld [vmem:[%s11612_s2 + $0xfa0] ss:$16 sps:$4 sm:$0xff]   ;;  %v7882_v28 = vld [vmem:[%s11612_s2 + $0xd84] ss:$16 sps:$4 sm:$0xff]  }
  0xbd   :  { %5110 = vmatprep.subr.bf16.mxu1 %v7809_v29  ;;  %v7885_v29 = vld [vmem:[%s11612_s2 + $0xf84] ss:$16 sps:$4 sm:$0xff]  }
  0xbf   :  { %5070 = vmatpush2.bf16.msra.mxu0 %v7804_v30  ;;  %v7880_v30 = vld [vmem:[%s11612_s2 + $0xd80] ss:$16 sps:$4 sm:$0xff]  }
  0xc0   :  { %5111 = vmatpush2.bf16.msra.mxu1 %v7807_v31  ;;  %5121 = vmatprep.subr.bf16.mxu0 %v7816_v32  ;;  %v7883_v31 = vld [vmem:[%s11612_s2 + $0xf80] ss:$16 sps:$4 sm:$0xff]   ;;  %v7888_v32 = vld [vmem:[%s11612_s2 + $0xd64] ss:$16 sps:$4 sm:$0xff]  }
  0xc1   :  { %5162 = vmatprep.subr.bf16.mxu1 %v7819_v33  ;;  %v7891_v33 = vld [vmem:[%s11612_s2 + $0xf64] ss:$16 sps:$4 sm:$0xff]  }
  0xc2   :  { %5072 = vmatmul.mubr.bf16.vlgmr.msra.gmra.mxu0 %v9482_v38 }
  0xc3   :  { %5113 = vmatmul.mubr.bf16.vlgmr.msra.gmra.mxu1 %v9486_v39  ;;  %5122 = vmatpush1.bf16.msra.mxu0 %v7814_v34  ;;  %v7886_v34 = vld [vmem:[%s11612_s2 + $0xd60] ss:$16 sps:$4 sm:$0xff]  }
  0xc4   :  { %5163 = vmatpush1.bf16.msra.mxu1 %v7817_v41  ;;  %5123 = vmatprep.subr.bf16.mxu0 %v7822_v22  ;;  %v7889_v41 = vld [vmem:[%s11612_s2 + $0xf60] ss:$16 sps:$4 sm:$0xff]   ;;  %v7894_v22 = vld [vmem:[%s11612_s2 + $0xd44] ss:$16 sps:$4 sm:$0xff]  }
  0xc5   :  { %5164 = vmatprep.subr.bf16.mxu1 %v7825_v23  ;;  %5153 = vmatprep.mubr.bf16.mxu0 %v9504_v42  ;;  %v7897_v23 = vld [vmem:[%s11612_s2 + $0xf44] ss:$16 sps:$4 sm:$0xff]  }
  0xc6   :  { %5194 = vmatprep.mubr.bf16.mxu1 %v9508_v43 }
  0xc7   :  { %5124 = vmatpush1.bf16.msra.mxu0 %v7820_v44  ;;  %v7892_v44 = vld [vmem:[%s11612_s2 + $0xd40] ss:$16 sps:$4 sm:$0xff]  }
  0xc8   :  { %5165 = vmatpush1.bf16.msra.mxu1 %v7823_v45  ;;  %5125 = vmatprep.subr.bf16.mxu0 %v7828_v46  ;;  %v7895_v45 = vld [vmem:[%s11612_s2 + $0xf40] ss:$16 sps:$4 sm:$0xff]   ;;  %v7900_v46 = vld [vmem:[%s11612_s2 + $0xd24] ss:$16 sps:$4 sm:$0xff]  }
  0xc9   :  { %5166 = vmatprep.subr.bf16.mxu1 %v7831_v48  ;;  %v844_v48 = vlaneseq }
  0xcb   :  { %5126 = vmatpush1.bf16.msra.mxu0 %v7826_v49  ;;  %v7903_v49 = vld [vmem:[%s11612_s2 + $0xf24] ss:$16 sps:$4 sm:$0xff]  }
  0xcc   :  { %5167 = vmatpush1.bf16.msra.mxu1 %v7829_v50  ;;  %5127 = vmatprep.subr.bf16.mxu0 %v7834_v52  ;;  %v7898_v50 = vld [vmem:[%s11612_s2 + $0xd20] ss:$16 sps:$4 sm:$0xff]  }
  0xcd   :  { %5168 = vmatprep.subr.bf16.mxu1 %v7837_v53  ;;  %v7901_v52 = vld [vmem:[%s11612_s2 + $0xf20] ss:$16 sps:$4 sm:$0xff]   ;;  %v7906_v53 = vld [vmem:[%s11612_s2 + $0xd04] ss:$16 sps:$4 sm:$0xff]  }
  0xcf   :  { %5128 = vmatpush1.bf16.msra.mxu0 %v7832_v54  ;;  %v9679_v54 = vshrl.u32 %v844_v48, 7  ;;  %v7938_v48 = vld [vmem:[%s11612_s2 + $0x1060] ss:$16 sps:$4 sm:$0xff]  }
  0xd0   :  { %5169 = vmatpush1.bf16.msra.mxu1 %v7835_v55  ;;  %5129 = vmatprep.subr.bf16.mxu0 %v7840_v56  ;;  %v7909_v55 = vld [vmem:[%s11612_s2 + $0xf04] ss:$16 sps:$4 sm:$0xff]   ;;  %v7904_v56 = vld [vmem:[%s11612_s2 + $0xd00] ss:$16 sps:$4 sm:$0xff]  }
  0xd1   :  { %5170 = vmatprep.subr.bf16.mxu1 %v7843_v57  ;;  %v7907_v57 = vld [vmem:[%s11612_s2 + $0xf00] ss:$16 sps:$4 sm:$0xff]  }
  0xd3   :  { %5130 = vmatpush1.bf16.msra.mxu0 %v7838_v58  ;;  %v842_v58 = vld [vmem:[%s11614_s3] sm:$0xf] }
  0xd4   :  { %5171 = vmatpush1.bf16.msra.mxu1 %v7841_v59  ;;  %5131 = vmatprep.subr.bf16.mxu0 %v7846_v60  ;;  %v846_v59 = vsub.s32 0, %v9679_v54  ;;  %v7916_v60 = vld [vmem:[%s11612_s2 + $0x10e4] ss:$16 sps:$4 sm:$0xff]  }
  0xd5   :  { %5172 = vmatprep.subr.bf16.mxu1 %v7849_v61  ;;  %v7919_v61 = vld [vmem:[%s11612_s2 + $0x12e4] ss:$16 sps:$4 sm:$0xff]  }
  0xd7   :  { %5132 = vmatpush1.bf16.msra.mxu0 %v7844_v62  ;;  %v7914_v62 = vld [vmem:[%s11612_s2 + $0x10e0] ss:$16 sps:$4 sm:$0xff]  }
  0xd8   :  { %5173 = vmatpush1.bf16.msra.mxu1 %v7847_v63  ;;  %5133 = vmatprep.subr.bf16.mxu0 %v7852_v0  ;;  %v850_v63 = vsub.s32 1, %v9679_v54  ;;  %v9706_v0 = vcombine.low %v9478_v35, %v9478_v35  ;;  %v7917_v35 = vld [vmem:[%s11612_s2 + $0x12e0] ss:$16 sps:$4 sm:$0xff]  }
  0xd9   :  { %5174 = vmatprep.subr.bf16.mxu1 %v7855_v1  ;;  %v9710_v1 = vcombine.low %v9491_v40, %v9491_v40  ;;  %v7922_v40 = vld [vmem:[%s11612_s2 + $0x10c4] ss:$16 sps:$4 sm:$0xff]  }
  0xdb   :  { %5134 = vmatpush1.bf16.msra.mxu0 %v7850_v2  ;;  %v9715_v2 = vld [vmem:[%s11613_s0 + $0x40] sm:$0xff] }
  0xdc   :  { %5175 = vmatpush1.bf16.msra.mxu1 %v7853_v3  ;;  %5135 = vmatprep.subr.bf16.mxu0 %v7858_v4  ;;  %v9720_v3 = vld [vmem:[%s11613_s0 + $0x48] sm:$0xff]  ;;  %v847_v4 = vrot.slane %v842_v58, %v846_v59  ;;  %v7950_v59 = vld [vmem:[%s11612_s2 + $0x1020] ss:$16 sps:$4 sm:$0xff]  }
  0xdd   :  { %5176 = vmatprep.subr.bf16.mxu1 %v7861_v5  ;;  %v7925_v5 = vld [vmem:[%s11612_s2 + $0x12c4] ss:$16 sps:$4 sm:$0xff]  }
  0xdf   :  { %5136 = vmatpush1.bf16.msra.mxu0 %v7856_v8  ;;  %v851_v8 = vrot.slane %v842_v58, %v850_v63  ;;  %v7955_v58 = vld [vmem:[%s11612_s2 + $0x1224] ss:$16 sps:$4 sm:$0xff]   ;;  %v7956_v63 = vld [vmem:[%s11612_s2 + $0x1000] ss:$16 sps:$4 sm:$0xff]  }
  0xe0   :  { %5177 = vmatpush1.bf16.msra.mxu1 %v7859_v9  ;;  %5137 = vmatprep.subr.bf16.mxu0 %v7864_v10  ;;  %v9733_v9 = vcombine.high %v9715_v2, %v9715_v2  ;;  %v9737_v10 = vcombine.high %v9720_v3, %v9720_v3 }
  0xe1   :  { %5178 = vmatprep.subr.bf16.mxu1 %v7867_v11 }
  0xe3   :  { %5138 = vmatpush2.bf16.msra.mxu0 %v7862_v12 }
  0xe4   :  { %5179 = vmatpush2.bf16.msra.mxu1 %v7865_v13  ;;  %5139 = vmatprep.subr.bf16.mxu0 %v7870_v14  ;;  %v7920_v13 = vld [vmem:[%s11612_s2 + $0x10c0] ss:$16 sps:$4 sm:$0xff]  }
  0xe5   :  { %5180 = vmatprep.subr.bf16.mxu1 %v7873_v15  ;;  %v7923_v15 = vld [vmem:[%s11612_s2 + $0x12c0] ss:$16 sps:$4 sm:$0xff]  }
  0xe7   :  { %5140 = vmatpush2.bf16.msra.mxu0 %v7868_v18 }
  0xe8   :  { %5181 = vmatpush2.bf16.msra.mxu1 %v7871_v19  ;;  %5141 = vmatprep.subr.bf16.mxu0 %v7876_v20  ;;  %v7928_v20 = vld [vmem:[%s11612_s2 + $0x10a4] ss:$16 sps:$4 sm:$0xff]  }
  0xe9   :  { %5182 = vmatprep.subr.bf16.mxu1 %v7879_v21  ;;  %v7931_v21 = vld [vmem:[%s11612_s2 + $0x12a4] ss:$16 sps:$4 sm:$0xff]  }
  0xeb   :  { %5142 = vmatpush2.bf16.msra.mxu0 %v7874_v26 }
  0xec   :  { %5183 = vmatpush2.bf16.msra.mxu1 %v7877_v27  ;;  %5143 = vmatprep.subr.bf16.mxu0 %v7882_v28 }
  0xed   :  { %5184 = vmatprep.subr.bf16.mxu1 %v7885_v29 }
  0xef   :  { %5144 = vmatpush2.bf16.msra.mxu0 %v7880_v30  ;;  %v7926_v30 = vld [vmem:[%s11612_s2 + $0x10a0] ss:$16 sps:$4 sm:$0xff]  }
  0xf0   :  { %5185 = vmatpush2.bf16.msra.mxu1 %v7883_v31  ;;  %5145 = vmatprep.subr.bf16.mxu0 %v7888_v32  ;;  %v7929_v32 = vld [vmem:[%s11612_s2 + $0x12a0] ss:$16 sps:$4 sm:$0xff]  }
  0xf1   :  { %5186 = vmatprep.subr.bf16.mxu1 %v7891_v33 }
  0xf3   :  { %5146 = vmatpush2.bf16.msra.mxu0 %v7886_v34 }
  0xf4   :  { %5187 = vmatpush2.bf16.msra.mxu1 %v7889_v41  ;;  %5147 = vmatprep.subr.bf16.mxu0 %v7894_v22  ;;  %v7934_v41 = vld [vmem:[%s11612_s2 + $0x1084] ss:$16 sps:$4 sm:$0xff]  }
  0xf5   :  { %5188 = vmatprep.subr.bf16.mxu1 %v7897_v23  ;;  %v7937_v22 = vld [vmem:[%s11612_s2 + $0x1284] ss:$16 sps:$4 sm:$0xff]   ;;  %v7932_v23 = vld [vmem:[%s11612_s2 + $0x1080] ss:$16 sps:$4 sm:$0xff]  }
  0xf7   :  { %5148 = vmatpush2.bf16.msra.mxu0 %v7892_v44  ;;  %v7935_v44 = vld [vmem:[%s11612_s2 + $0x1280] ss:$16 sps:$4 sm:$0xff]  }
  0xf8   :  { %5189 = vmatpush2.bf16.msra.mxu1 %v7895_v45  ;;  %5149 = vmatprep.subr.bf16.mxu0 %v7900_v46  ;;  %v7940_v45 = vld [vmem:[%s11612_s2 + $0x1064] ss:$16 sps:$4 sm:$0xff]  }
  0xf9   :  { %5190 = vmatprep.subr.bf16.mxu1 %v7903_v49  ;;  %v7943_v46 = vld [vmem:[%s11612_s2 + $0x1264] ss:$16 sps:$4 sm:$0xff]   ;;  %v7941_v49 = vld [vmem:[%s11612_s2 + $0x1260] ss:$16 sps:$4 sm:$0xff]  }
  0xfb   :  { %5150 = vmatpush2.bf16.msra.mxu0 %v7898_v50  ;;  %v7946_v50 = vld [vmem:[%s11612_s2 + $0x1044] ss:$16 sps:$4 sm:$0xff]  }
  0xfc   :  { %5191 = vmatpush2.bf16.msra.mxu1 %v7901_v52  ;;  %5151 = vmatprep.subr.bf16.mxu0 %v7906_v53  ;;  %v7949_v52 = vld [vmem:[%s11612_s2 + $0x1244] ss:$16 sps:$4 sm:$0xff]   ;;  %v8749_v53 = vmov 0  }
  0xfd   :  { %5192 = vmatprep.subr.bf16.mxu1 %v7909_v55  ;;  %7513 = vset.pattern.permute.xlu0 %v8749_v53  ;;  %v7944_v55 = vld [vmem:[%s11612_s2 + $0x1040] ss:$16 sps:$4 sm:$0xff]  }
  0xff   :  { %5152 = vmatpush2.bf16.msra.mxu0 %v7904_v56  ;;  %v7947_v56 = vld [vmem:[%s11612_s2 + $0x1240] ss:$16 sps:$4 sm:$0xff]  }
 0x100   :  { %5193 = vmatpush2.bf16.msra.mxu1 %v7907_v57  ;;  %5203 = vmatprep.subr.bf16.mxu0 %v7916_v60  ;;  %v7952_v57 = vld [vmem:[%s11612_s2 + $0x1024] ss:$16 sps:$4 sm:$0xff]   ;;  %v7953_v60 = vld [vmem:[%s11612_s2 + $0x1220] ss:$16 sps:$4 sm:$0xff]  }
 0x101   :  { %5244 = vmatprep.subr.bf16.mxu1 %v7919_v61  ;;  %v7958_v61 = vld [vmem:[%s11612_s2 + $0x1004] ss:$16 sps:$4 sm:$0xff]  }
 0x102   :  { %v4909_v11 = vpop.f32.mrf.mxu0  ;;  %5154 = vmatmul.mubr.bf16.vlgmr.msra.gmra.mxu0 %v9706_v0 }
 0x103   :  { %v4950_v12 = vpop.f32.mrf.mxu1  ;;  %5195 = vmatmul.mubr.bf16.vlgmr.msra.gmra.mxu1 %v9710_v1  ;;  %v4910_v14 = vadd.f32 %v4909_v11, %v847_v4  ;;  %5204 = vmatpush1.bf16.msra.mxu0 %v7914_v62  ;;  %v7961_v62 = vld [vmem:[%s11612_s2 + $0x1204] ss:$16 sps:$4 sm:$0xff]   ;;  %v7959_v4 = vld [vmem:[%s11612_s2 + $0x1200] ss:$16 sps:$4 sm:$0xff]  }
 0x104   :  { %5245 = vmatpush1.bf16.msra.mxu1 %v7917_v35  ;;  %v4911_v18 = vpop.f32.mrf.mxu0  ;;  %5205 = vmatprep.subr.bf16.mxu0 %v7922_v40  ;;  %v7964_v35 = vld [vmem:[%s11612_s2 + $0x11e4] ss:$16 sps:$4 sm:$0xff]  }
 0x105   :  { %v4952_v19 = vpop.f32.mrf.mxu1  ;;  %5246 = vmatprep.subr.bf16.mxu1 %v7925_v5  ;;  %v9753_v26 = vadd.f32 %v4950_v12, %v4910_v14  ;;  %v4912_v27 = vadd.f32 %v4911_v18, %v851_v8  ;;  %5235 = vmatprep.mubr.bf16.mxu0 %v9733_v9  ;;  %v7967_v40 = vld [vmem:[%s11612_s2 + $0x13e4] ss:$16 sps:$4 sm:$0xff]   ;;  %v7962_v5 = vld [vmem:[%s11612_s2 + $0x11e0] ss:$16 sps:$4 sm:$0xff]  }
 0x106   :  { %5276 = vmatprep.mubr.bf16.mxu1 %v9737_v10  ;;  %v4913_v28 = vpop.f32.mrf.mxu0  ;;  %v7965_v8 = vld [vmem:[%s11612_s2 + $0x13e0] ss:$16 sps:$4 sm:$0xff]   ;;  %v7970_v11 = vld [vmem:[%s11612_s2 + $0x11c4] ss:$16 sps:$4 sm:$0xff]  }
 0x107   :  { %v4954_v29 = vpop.f32.mrf.mxu1  ;;  %v9760_v31 = vadd.f32 %v4952_v19, %v4912_v27  ;;  %5206 = vmatpush1.bf16.msra.mxu0 %v7920_v13  ;;  %v7973_v12 = vld [vmem:[%s11612_s2 + $0x13c4] ss:$16 sps:$4 sm:$0xff]   ;;  %v7968_v13 = vld [vmem:[%s11612_s2 + $0x11c0] ss:$16 sps:$4 sm:$0xff]  }
 0x108   :  { %5247 = vmatpush1.bf16.msra.mxu1 %v7923_v15  ;;  %v4914_v33 = vpop.f32.mrf.mxu0  ;;  %5207 = vmatprep.subr.bf16.mxu0 %v7928_v20  ;;  %v7971_v14 = vld [vmem:[%s11612_s2 + $0x13c0] ss:$16 sps:$4 sm:$0xff]   ;;  %v7976_v15 = vld [vmem:[%s11612_s2 + $0x11a4] ss:$16 sps:$4 sm:$0xff]  }
 0x109   :  { %v4955_v34 = vpop.f32.mrf.mxu1  ;;  %5248 = vmatprep.subr.bf16.mxu1 %v7931_v21  ;;  %v7979_v18 = vld [vmem:[%s11612_s2 + $0x13a4] ss:$16 sps:$4 sm:$0xff]   ;;  %v7974_v19 = vld [vmem:[%s11612_s2 + $0x11a0] ss:$16 sps:$4 sm:$0xff]  }
 0x10a   :  { %v7977_v20 = vld [vmem:[%s11612_s2 + $0x13a0] ss:$16 sps:$4 sm:$0xff]   ;;  %v7982_v21 = vld [vmem:[%s11612_s2 + $0x1184] ss:$16 sps:$4 sm:$0xff]  }
 0x10b   :  { %5208 = vmatpush1.bf16.msra.mxu0 %v7926_v30  ;;  %v7985_v27 = vld [vmem:[%s11612_s2 + $0x1384] ss:$16 sps:$4 sm:$0xff]   ;;  %v7980_v28 = vld [vmem:[%s11612_s2 + $0x1180] ss:$16 sps:$4 sm:$0xff]  }
 0x10c   :  { %5249 = vmatpush1.bf16.msra.mxu1 %v7929_v32  ;;  %5209 = vmatprep.subr.bf16.mxu0 %v7934_v41  ;;  %v7983_v29 = vld [vmem:[%s11612_s2 + $0x1380] ss:$16 sps:$4 sm:$0xff]   ;;  %v7988_v30 = vld [vmem:[%s11612_s2 + $0x1164] ss:$16 sps:$4 sm:$0xff]  }
 0x10d   :  { %5250 = vmatprep.subr.bf16.mxu1 %v7937_v22  ;;  %v7991_v32 = vld [vmem:[%s11612_s2 + $0x1364] ss:$16 sps:$4 sm:$0xff]   ;;  %v7986_v33 = vld [vmem:[%s11612_s2 + $0x1160] ss:$16 sps:$4 sm:$0xff]  }
 0x10e   :  { %v7989_v34 = vld [vmem:[%s11612_s2 + $0x1360] ss:$16 sps:$4 sm:$0xff]   ;;  %v7994_v41 = vld [vmem:[%s11612_s2 + $0x1144] ss:$16 sps:$4 sm:$0xff]  }
 0x10f   :  { %5210 = vmatpush1.bf16.msra.mxu0 %v7932_v23  ;;  %v7997_v22 = vld [vmem:[%s11612_s2 + $0x1344] ss:$16 sps:$4 sm:$0xff]   ;;  %v7992_v23 = vld [vmem:[%s11612_s2 + $0x1140] ss:$16 sps:$4 sm:$0xff]  }
 0x110   :  { %5251 = vmatpush1.bf16.msra.mxu1 %v7935_v44  ;;  %5211 = vmatprep.subr.bf16.mxu0 %v7940_v45  ;;  %v7995_v44 = vld [vmem:[%s11612_s2 + $0x1340] ss:$16 sps:$4 sm:$0xff]   ;;  %v8000_v45 = vld [vmem:[%s11612_s2 + $0x1124] ss:$16 sps:$4 sm:$0xff]  }
 0x111   :  { %5252 = vmatprep.subr.bf16.mxu1 %v7943_v46  ;;  %v8003_v46 = vld [vmem:[%s11612_s2 + $0x1324] ss:$16 sps:$4 sm:$0xff]  }
 0x113   :  { %5212 = vmatpush1.bf16.msra.mxu0 %v7938_v48  ;;  %v7998_v48 = vld [vmem:[%s11612_s2 + $0x1120] ss:$16 sps:$4 sm:$0xff]  }
 0x114   :  { %5253 = vmatpush1.bf16.msra.mxu1 %v7941_v49  ;;  %5213 = vmatprep.subr.bf16.mxu0 %v7946_v50  ;;  %v8001_v49 = vld [vmem:[%s11612_s2 + $0x1320] ss:$16 sps:$4 sm:$0xff]   ;;  %v8006_v50 = vld [vmem:[%s11612_s2 + $0x1104] ss:$16 sps:$4 sm:$0xff]  }
 0x115   :  { %5254 = vmatprep.subr.bf16.mxu1 %v7949_v52  ;;  %v8009_v52 = vld [vmem:[%s11612_s2 + $0x1304] ss:$16 sps:$4 sm:$0xff]  }
 0x117   :  { %5214 = vmatpush1.bf16.msra.mxu0 %v7944_v55  ;;  %v8004_v55 = vld [vmem:[%s11612_s2 + $0x1100] ss:$16 sps:$4 sm:$0xff]  }
 0x118   :  { %5255 = vmatpush1.bf16.msra.mxu1 %v7947_v56  ;;  %5215 = vmatprep.subr.bf16.mxu0 %v7952_v57  ;;  %v8007_v56 = vld [vmem:[%s11612_s2 + $0x1300] ss:$16 sps:$4 sm:$0xff]   ;;  %v8016_v57 = vld [vmem:[%s11612_s2 + $0x14e4] ss:$16 sps:$4 sm:$0xff]  }
 0x119   :  { %5256 = vmatprep.subr.bf16.mxu1 %v7955_v58  ;;  %v8019_v58 = vld [vmem:[%s11612_s2 + $0x16e4] ss:$16 sps:$4 sm:$0xff]  }
 0x11b   :  { %5216 = vmatpush1.bf16.msra.mxu0 %v7950_v59  ;;  %v9931_v59 = vld [vmem:[%s11613_s0 + $0x50] sm:$0xff] }
 0x11c   :  { %5257 = vmatpush1.bf16.msra.mxu1 %v7953_v60  ;;  %5217 = vmatprep.subr.bf16.mxu0 %v7958_v61  ;;  %v9936_v60 = vld [vmem:[%s11613_s0 + $0x58] sm:$0xff]  ;;  %v8014_v61 = vld [vmem:[%s11612_s2 + $0x14e0] ss:$16 sps:$4 sm:$0xff]  }
 0x11d   :  { %5258 = vmatprep.subr.bf16.mxu1 %v7961_v62  ;;  %v8017_v62 = vld [vmem:[%s11612_s2 + $0x16e0] ss:$16 sps:$4 sm:$0xff]  }
 0x11f   :  { %5218 = vmatpush1.bf16.msra.mxu0 %v7956_v63  ;;  %v9946_v63 = vcombine.low %v9715_v2, %v9715_v2  ;;  %v8020_v2 = vld [vmem:[%s11612_s2 + $0x14c0] ss:$16 sps:$4 sm:$0xff]  }
 0x120   :  { %5259 = vmatpush1.bf16.msra.mxu1 %v7959_v4  ;;  %5219 = vmatprep.subr.bf16.mxu0 %v7964_v35  ;;  %v9950_v4 = vcombine.low %v9720_v3, %v9720_v3  ;;  %v8022_v35 = vld [vmem:[%s11612_s2 + $0x14c4] ss:$16 sps:$4 sm:$0xff]   ;;  %v8023_v3 = vld [vmem:[%s11612_s2 + $0x16c0] ss:$16 sps:$4 sm:$0xff]  }
 0x121   :  { %5260 = vmatprep.subr.bf16.mxu1 %v7967_v40  ;;  %v8025_v40 = vld [vmem:[%s11612_s2 + $0x16c4] ss:$16 sps:$4 sm:$0xff]  }
 0x123   :  { %5220 = vmatpush2.bf16.msra.mxu0 %v7962_v5  ;;  %v9966_v5 = vcombine.high %v9931_v59, %v9931_v59 }
 0x124   :  { %5261 = vmatpush2.bf16.msra.mxu1 %v7965_v8  ;;  %5221 = vmatprep.subr.bf16.mxu0 %v7970_v11  ;;  %v9970_v8 = vcombine.high %v9936_v60, %v9936_v60 }
 0x125   :  { %5262 = vmatprep.subr.bf16.mxu1 %v7973_v12 }
 0x127   :  { %5222 = vmatpush2.bf16.msra.mxu0 %v7968_v13 }
 0x128   :  { %5263 = vmatpush2.bf16.msra.mxu1 %v7971_v14  ;;  %5223 = vmatprep.subr.bf16.mxu0 %v7976_v15 }
 0x129   :  { %5264 = vmatprep.subr.bf16.mxu1 %v7979_v18  ;;  %v8028_v18 = vld [vmem:[%s11612_s2 + $0x14a4] ss:$16 sps:$4 sm:$0xff]  }
 0x12b   :  { %5224 = vmatpush2.bf16.msra.mxu0 %v7974_v19  ;;  %v8031_v19 = vld [vmem:[%s11612_s2 + $0x16a4] ss:$16 sps:$4 sm:$0xff]  }
 0x12c   :  { %5265 = vmatpush2.bf16.msra.mxu1 %v7977_v20  ;;  %5225 = vmatprep.subr.bf16.mxu0 %v7982_v21 }
 0x12d   :  { %5266 = vmatprep.subr.bf16.mxu1 %v7985_v27  ;;  %v8029_v27 = vld [vmem:[%s11612_s2 + $0x16a0] ss:$16 sps:$4 sm:$0xff]  }
 0x12f   :  { %5226 = vmatpush2.bf16.msra.mxu0 %v7980_v28 }
 0x130   :  { %5267 = vmatpush2.bf16.msra.mxu1 %v7983_v29  ;;  %5227 = vmatprep.subr.bf16.mxu0 %v7988_v30 }
 0x131   :  { %5268 = vmatprep.subr.bf16.mxu1 %v7991_v32 }
 0x133   :  { %5228 = vmatpush2.bf16.msra.mxu0 %v7986_v33  ;;  %v8034_v33 = vld [vmem:[%s11612_s2 + $0x1484] ss:$16 sps:$4 sm:$0xff]  }
 0x134   :  { %5269 = vmatpush2.bf16.msra.mxu1 %v7989_v34  ;;  %5229 = vmatprep.subr.bf16.mxu0 %v7994_v41  ;;  %v8037_v34 = vld [vmem:[%s11612_s2 + $0x1684] ss:$16 sps:$4 sm:$0xff]   ;;  %v8032_v41 = vld [vmem:[%s11612_s2 + $0x1480] ss:$16 sps:$4 sm:$0xff]  }
 0x135   :  { %5270 = vmatprep.subr.bf16.mxu1 %v7997_v22  ;;  %v8035_v22 = vld [vmem:[%s11612_s2 + $0x1680] ss:$16 sps:$4 sm:$0xff]  }
 0x137   :  { %5230 = vmatpush2.bf16.msra.mxu0 %v7992_v23  ;;  %v8040_v23 = vld [vmem:[%s11612_s2 + $0x1464] ss:$16 sps:$4 sm:$0xff]  }
 0x138   :  { %5271 = vmatpush2.bf16.msra.mxu1 %v7995_v44  ;;  %5231 = vmatprep.subr.bf16.mxu0 %v8000_v45  ;;  %v8043_v44 = vld [vmem:[%s11612_s2 + $0x1664] ss:$16 sps:$4 sm:$0xff]   ;;  %v8038_v45 = vld [vmem:[%s11612_s2 + $0x1460] ss:$16 sps:$4 sm:$0xff]  }
 0x139   :  { %5272 = vmatprep.subr.bf16.mxu1 %v8003_v46  ;;  %v8041_v46 = vld [vmem:[%s11612_s2 + $0x1660] ss:$16 sps:$4 sm:$0xff]  }
 0x13b   :  { %5232 = vmatpush2.bf16.msra.mxu0 %v7998_v48  ;;  %v8046_v48 = vld [vmem:[%s11612_s2 + $0x1444] ss:$16 sps:$4 sm:$0xff]  }
 0x13c   :  { %5273 = vmatpush2.bf16.msra.mxu1 %v8001_v49  ;;  %5233 = vmatprep.subr.bf16.mxu0 %v8006_v50  ;;  %v8049_v49 = vld [vmem:[%s11612_s2 + $0x1644] ss:$16 sps:$4 sm:$0xff]   ;;  %v8044_v50 = vld [vmem:[%s11612_s2 + $0x1440] ss:$16 sps:$4 sm:$0xff]  }
 0x13d   :  { %5274 = vmatprep.subr.bf16.mxu1 %v8009_v52  ;;  %v8047_v52 = vld [vmem:[%s11612_s2 + $0x1640] ss:$16 sps:$4 sm:$0xff]  }
 0x13f   :  { %5234 = vmatpush2.bf16.msra.mxu0 %v8004_v55  ;;  %v8052_v55 = vld [vmem:[%s11612_s2 + $0x1424] ss:$16 sps:$4 sm:$0xff]  }
 0x140   :  { %5275 = vmatpush2.bf16.msra.mxu1 %v8007_v56  ;;  %5285 = vmatprep.subr.bf16.mxu0 %v8016_v57  ;;  %v8055_v56 = vld [vmem:[%s11612_s2 + $0x1624] ss:$16 sps:$4 sm:$0xff]   ;;  %v8050_v57 = vld [vmem:[%s11612_s2 + $0x1420] ss:$16 sps:$4 sm:$0xff]  }
 0x141   :  { %5326 = vmatprep.subr.bf16.mxu1 %v8019_v58  ;;  %v8053_v58 = vld [vmem:[%s11612_s2 + $0x1620] ss:$16 sps:$4 sm:$0xff]  }
 0x142   :  { %v4991_v11 = vpop.f32.mrf.mxu0  ;;  %5236 = vmatmul.mubr.bf16.vlgmr.msra.gmra.mxu0 %v9946_v63 }
 0x143   :  { %v5032_v12 = vpop.f32.mrf.mxu1  ;;  %5277 = vmatmul.mubr.bf16.vlgmr.msra.gmra.mxu1 %v9950_v4  ;;  %v4992_v13 = vadd.f32 %v4991_v11, %v9753_v26  ;;  %5286 = vmatpush1.bf16.msra.mxu0 %v8014_v61  ;;  %v8026_v26 = vld [vmem:[%s11612_s2 + $0x14a0] ss:$16 sps:$4 sm:$0xff]   ;;  %v8058_v61 = vld [vmem:[%s11612_s2 + $0x1404] ss:$16 sps:$4 sm:$0xff]  }
 0x144   :  { %5327 = vmatpush1.bf16.msra.mxu1 %v8017_v62  ;;  %v4993_v14 = vpop.f32.mrf.mxu0  ;;  %5287 = vmatprep.subr.bf16.mxu0 %v8022_v35  ;;  %v8061_v62 = vld [vmem:[%s11612_s2 + $0x1604] ss:$16 sps:$4 sm:$0xff]   ;;  %v8056_v35 = vld [vmem:[%s11612_s2 + $0x1400] ss:$16 sps:$4 sm:$0xff]  }
 0x145   :  { %v5034_v15 = vpop.f32.mrf.mxu1  ;;  %5328 = vmatprep.subr.bf16.mxu1 %v8025_v40  ;;  %v9981_v20 = vadd.f32 %v5032_v12, %v4992_v13  ;;  %v4994_v21 = vadd.f32 %v4993_v14, %v9760_v31  ;;  %5317 = vmatprep.mubr.bf16.mxu0 %v9966_v5  ;;  %v8059_v40 = vld [vmem:[%s11612_s2 + $0x1600] ss:$16 sps:$4 sm:$0xff]   ;;  %v8070_v13 = vld [vmem:[%s11612_s2 + $0x15c4] ss:$16 sps:$4 sm:$0xff]  }
 0x146   :  { %5358 = vmatprep.mubr.bf16.mxu1 %v9970_v8  ;;  %v4995_v28 = vpop.f32.mrf.mxu0  ;;  %v8062_v11 = vld [vmem:[%s11612_s2 + $0x15e0] ss:$16 sps:$4 sm:$0xff]   ;;  %v8073_v14 = vld [vmem:[%s11612_s2 + $0x17c4] ss:$16 sps:$4 sm:$0xff]  }
 0x147   :  { %v5036_v29 = vpop.f32.mrf.mxu1  ;;  %v9992_v30 = vadd.f32 %v5034_v15, %v4994_v21  ;;  %5288 = vmatpush1.bf16.msra.mxu0 %v8020_v2  ;;  %v8064_v2 = vld [vmem:[%s11612_s2 + $0x15e4] ss:$16 sps:$4 sm:$0xff]   ;;  %v8065_v12 = vld [vmem:[%s11612_s2 + $0x17e0] ss:$16 sps:$4 sm:$0xff]  }
 0x148   :  { %5329 = vmatpush1.bf16.msra.mxu1 %v8023_v3  ;;  %v4996_v32 = vpop.f32.mrf.mxu0  ;;  %5289 = vmatprep.subr.bf16.mxu0 %v8028_v18  ;;  %v8067_v3 = vld [vmem:[%s11612_s2 + $0x17e4] ss:$16 sps:$4 sm:$0xff]   ;;  %v8068_v15 = vld [vmem:[%s11612_s2 + $0x15c0] ss:$16 sps:$4 sm:$0xff]  }
 0x149   :  { %v5037_v31 = vpop.f32.mrf.mxu1  ;;  %5330 = vmatprep.subr.bf16.mxu1 %v8031_v19  ;;  %v8071_v18 = vld [vmem:[%s11612_s2 + $0x17c0] ss:$16 sps:$4 sm:$0xff]   ;;  %v8076_v19 = vld [vmem:[%s11612_s2 + $0x15a4] ss:$16 sps:$4 sm:$0xff]  }
 0x14a   :  { %v8079_v21 = vld [vmem:[%s11612_s2 + $0x17a4] ss:$16 sps:$4 sm:$0xff]   ;;  %v8080_v32 = vld [vmem:[%s11612_s2 + $0x1580] ss:$16 sps:$4 sm:$0xff]  }
 0x14b   :  { %5290 = vmatpush1.bf16.msra.mxu0 %v8026_v26  ;;  %v8074_v26 = vld [vmem:[%s11612_s2 + $0x15a0] ss:$16 sps:$4 sm:$0xff]   ;;  %v8082_v28 = vld [vmem:[%s11612_s2 + $0x1584] ss:$16 sps:$4 sm:$0xff]  }
 0x14c   :  { %5331 = vmatpush1.bf16.msra.mxu1 %v8029_v27  ;;  %5291 = vmatprep.subr.bf16.mxu0 %v8034_v33  ;;  %v8077_v27 = vld [vmem:[%s11612_s2 + $0x17a0] ss:$16 sps:$4 sm:$0xff]   ;;  %v8085_v29 = vld [vmem:[%s11612_s2 + $0x1784] ss:$16 sps:$4 sm:$0xff]  }
 0x14d   :  { %5332 = vmatprep.subr.bf16.mxu1 %v8037_v34  ;;  %v8083_v31 = vld [vmem:[%s11612_s2 + $0x1780] ss:$16 sps:$4 sm:$0xff]   ;;  %v8088_v33 = vld [vmem:[%s11612_s2 + $0x1564] ss:$16 sps:$4 sm:$0xff]  }
 0x14e   :  { %v8091_v34 = vld [vmem:[%s11612_s2 + $0x1764] ss:$16 sps:$4 sm:$0xff]  }
 0x14f   :  { %5292 = vmatpush1.bf16.msra.mxu0 %v8032_v41  ;;  %v8086_v41 = vld [vmem:[%s11612_s2 + $0x1560] ss:$16 sps:$4 sm:$0xff]  }
 0x150   :  { %5333 = vmatpush1.bf16.msra.mxu1 %v8035_v22  ;;  %5293 = vmatprep.subr.bf16.mxu0 %v8040_v23  ;;  %v8089_v22 = vld [vmem:[%s11612_s2 + $0x1760] ss:$16 sps:$4 sm:$0xff]   ;;  %v8094_v23 = vld [vmem:[%s11612_s2 + $0x1544] ss:$16 sps:$4 sm:$0xff]  }
 0x151   :  { %5334 = vmatprep.subr.bf16.mxu1 %v8043_v44  ;;  %v8097_v44 = vld [vmem:[%s11612_s2 + $0x1744] ss:$16 sps:$4 sm:$0xff]  }
 0x153   :  { %5294 = vmatpush1.bf16.msra.mxu0 %v8038_v45  ;;  %v8092_v45 = vld [vmem:[%s11612_s2 + $0x1540] ss:$16 sps:$4 sm:$0xff]  }
 0x154   :  { %5335 = vmatpush1.bf16.msra.mxu1 %v8041_v46  ;;  %5295 = vmatprep.subr.bf16.mxu0 %v8046_v48  ;;  %v8095_v46 = vld [vmem:[%s11612_s2 + $0x1740] ss:$16 sps:$4 sm:$0xff]   ;;  %v8100_v48 = vld [vmem:[%s11612_s2 + $0x1524] ss:$16 sps:$4 sm:$0xff]  }
 0x155   :  { %5336 = vmatprep.subr.bf16.mxu1 %v8049_v49  ;;  %v8103_v49 = vld [vmem:[%s11612_s2 + $0x1724] ss:$16 sps:$4 sm:$0xff]  }
 0x157   :  { %5296 = vmatpush1.bf16.msra.mxu0 %v8044_v50  ;;  %v8098_v50 = vld [vmem:[%s11612_s2 + $0x1520] ss:$16 sps:$4 sm:$0xff]  }
 0x158   :  { %5337 = vmatpush1.bf16.msra.mxu1 %v8047_v52  ;;  %5297 = vmatprep.subr.bf16.mxu0 %v8052_v55  ;;  %v8101_v52 = vld [vmem:[%s11612_s2 + $0x1720] ss:$16 sps:$4 sm:$0xff]   ;;  %v8106_v55 = vld [vmem:[%s11612_s2 + $0x1504] ss:$16 sps:$4 sm:$0xff]  }
 0x159   :  { %5338 = vmatprep.subr.bf16.mxu1 %v8055_v56  ;;  %v8109_v56 = vld [vmem:[%s11612_s2 + $0x1704] ss:$16 sps:$4 sm:$0xff]  }
 0x15b   :  { %5298 = vmatpush1.bf16.msra.mxu0 %v8050_v57  ;;  %v8104_v57 = vld [vmem:[%s11612_s2 + $0x1500] ss:$16 sps:$4 sm:$0xff]  }
 0x15c   :  { %5339 = vmatpush1.bf16.msra.mxu1 %v8053_v58  ;;  %5299 = vmatprep.subr.bf16.mxu0 %v8058_v61  ;;  %v8107_v58 = vld [vmem:[%s11612_s2 + $0x1700] ss:$16 sps:$4 sm:$0xff]   ;;  %v8116_v61 = vld [vmem:[%s11612_s2 + $0x1864] ss:$16 sps:$4 sm:$0xff]  }
 0x15d   :  { %5340 = vmatprep.subr.bf16.mxu1 %v8061_v62  ;;  %v8119_v62 = vld [vmem:[%s11612_s2 + $0xec] ss:$16 sps:$4 sm:$0xff]  }
 0x15f   :  { %5300 = vmatpush1.bf16.msra.mxu0 %v8056_v35  ;;  %v8114_v35 = vld [vmem:[%s11612_s2 + $0x1860] ss:$16 sps:$4 sm:$0xff]  }
 0x160   :  { %5341 = vmatpush1.bf16.msra.mxu1 %v8059_v40  ;;  %5301 = vmatprep.subr.bf16.mxu0 %v8064_v2  ;;  %v8117_v40 = vld [vmem:[%s11612_s2 + $0xe8] ss:$16 sps:$4 sm:$0xff]   ;;  %v10164_v2 = vcombine.low %v9931_v59, %v9931_v59  ;;  %v8120_v59 = vld [vmem:[%s11612_s2 + $0x1840] ss:$16 sps:$4 sm:$0xff]  }
 0x161   :  { %5342 = vmatprep.subr.bf16.mxu1 %v8067_v3  ;;  %v10168_v3 = vcombine.low %v9936_v60, %v9936_v60  ;;  %v8123_v60 = vld [vmem:[%s11612_s2 + $0xc8] ss:$16 sps:$4 sm:$0xff]  }
 0x163   :  { %5302 = vmatpush2.bf16.msra.mxu0 %v8062_v11  ;;  %v8122_v11 = vld [vmem:[%s11612_s2 + $0x1844] ss:$16 sps:$4 sm:$0xff]  }
 0x164   :  { %5343 = vmatpush2.bf16.msra.mxu1 %v8065_v12  ;;  %5303 = vmatprep.subr.bf16.mxu0 %v8070_v13  ;;  %v8125_v12 = vld [vmem:[%s11612_s2 + $0xcc] ss:$16 sps:$4 sm:$0xff]  }
 0x165   :  { %5344 = vmatprep.subr.bf16.mxu1 %v8073_v14 }
 0x167   :  { %5304 = vmatpush2.bf16.msra.mxu0 %v8068_v15 }
 0x168   :  { %5345 = vmatpush2.bf16.msra.mxu1 %v8071_v18  ;;  %5305 = vmatprep.subr.bf16.mxu0 %v8076_v19 }
 0x169   :  { %5346 = vmatprep.subr.bf16.mxu1 %v8079_v21  ;;  %v8128_v21 = vld [vmem:[%s11612_s2 + $0x1824] ss:$16 sps:$4 sm:$0xff]  }
 0x16b   :  { %5306 = vmatpush2.bf16.msra.mxu0 %v8074_v26  ;;  %v8131_v26 = vld [vmem:[%s11612_s2 + $0xac] ss:$16 sps:$4 sm:$0xff]  }
 0x16c   :  { %5347 = vmatpush2.bf16.msra.mxu1 %v8077_v27  ;;  %5307 = vmatprep.subr.bf16.mxu0 %v8082_v28 }
 0x16d   :  { %5348 = vmatprep.subr.bf16.mxu1 %v8085_v29  ;;  %v8129_v29 = vld [vmem:[%s11612_s2 + $0xa8] ss:$16 sps:$4 sm:$0xff]  }
 0x16f   :  { %5308 = vmatpush2.bf16.msra.mxu0 %v8080_v32 }
 0x170   :  { %5349 = vmatpush2.bf16.msra.mxu1 %v8083_v31  ;;  %5309 = vmatprep.subr.bf16.mxu0 %v8088_v33 }
 0x171   :  { %5350 = vmatprep.subr.bf16.mxu1 %v8091_v34 }
 0x173   :  { %5310 = vmatpush2.bf16.msra.mxu0 %v8086_v41  ;;  %v8134_v41 = vld [vmem:[%s11612_s2 + $0x1804] ss:$16 sps:$4 sm:$0xff]  }
 0x174   :  { %5351 = vmatpush2.bf16.msra.mxu1 %v8089_v22  ;;  %5311 = vmatprep.subr.bf16.mxu0 %v8094_v23  ;;  %v8137_v22 = vld [vmem:[%s11612_s2 + $0x8c] ss:$16 sps:$4 sm:$0xff]   ;;  %v8135_v23 = vld [vmem:[%s11612_s2 + $0x88] ss:$16 sps:$4 sm:$0xff]  }
 0x175   :  { %5352 = vmatprep.subr.bf16.mxu1 %v8097_v44  ;;  %v8138_v44 = vld [vmem:[%s11613_s0 + $0x60] ss:$0 sps:$4 sm:$0xff]  }
 0x177   :  { %5312 = vmatpush2.bf16.msra.mxu0 %v8092_v45  ;;  %v8141_v45 = vld [vmem:[%s11612_s2 + $0x6c] ss:$16 sps:$4 sm:$0xff]  }
 0x178   :  { %5353 = vmatpush2.bf16.msra.mxu1 %v8095_v46  ;;  %5313 = vmatprep.subr.bf16.mxu0 %v8100_v48  ;;  %v8144_v46 = vld [vmem:[%s11612_s2 + $0x2ec] ss:$16 sps:$4 sm:$0xff]   ;;  %v8139_v48 = vld [vmem:[%s11612_s2 + $0x68] ss:$16 sps:$4 sm:$0xff]  }
 0x179   :  { %5354 = vmatprep.subr.bf16.mxu1 %v8103_v49  ;;  %v8142_v49 = vld [vmem:[%s11612_s2 + $0x2e8] ss:$16 sps:$4 sm:$0xff]  }
 0x17b   :  { %5314 = vmatpush2.bf16.msra.mxu0 %v8098_v50  ;;  %v8147_v50 = vld [vmem:[%s11612_s2 + $0x4c] ss:$16 sps:$4 sm:$0xff]  }
 0x17c   :  { %5355 = vmatpush2.bf16.msra.mxu1 %v8101_v52  ;;  %5315 = vmatprep.subr.bf16.mxu0 %v8106_v55  ;;  %v8150_v52 = vld [vmem:[%s11612_s2 + $0x2cc] ss:$16 sps:$4 sm:$0xff]   ;;  %v8145_v55 = vld [vmem:[%s11612_s2 + $0x48] ss:$16 sps:$4 sm:$0xff]  }
 0x17d   :  { %5356 = vmatprep.subr.bf16.mxu1 %v8109_v56  ;;  %v8148_v56 = vld [vmem:[%s11612_s2 + $0x2c8] ss:$16 sps:$4 sm:$0xff]  }
 0x17f   :  { %5316 = vmatpush2.bf16.msra.mxu0 %v8104_v57  ;;  %v8153_v57 = vld [vmem:[%s11612_s2 + $0x2c] ss:$16 sps:$4 sm:$0xff]  }
 0x180   :  { %5357 = vmatpush2.bf16.msra.mxu1 %v8107_v58  ;;  %5375 = vmatprep.subr.bf16.mxu0 %v8116_v61  ;;  %v8156_v58 = vld [vmem:[%s11612_s2 + $0x2ac] ss:$16 sps:$4 sm:$0xff]   ;;  %v8151_v61 = vld [vmem:[%s11612_s2 + $0x28] ss:$16 sps:$4 sm:$0xff]  }
 0x181   :  { %5408 = vmatprep.subr.bf16.mxu1 %v8119_v62  ;;  %v8154_v62 = vld [vmem:[%s11612_s2 + $0x2a8] ss:$16 sps:$4 sm:$0xff]  }
 0x182   :  { %v5073_v13 = vpop.f32.mrf.mxu0  ;;  %5318 = vmatmul.mubr.bf16.vlgmr.msra.gmra.mxu0 %v10164_v2 }
 0x183   :  { %v5114_v14 = vpop.f32.mrf.mxu1  ;;  %5359 = vmatmul.mubr.bf16.vlgmr.msra.gmra.mxu1 %v10168_v3  ;;  %v5074_v15 = vadd.f32 %v5073_v13, %v9981_v20  ;;  %5376 = vmatpush1.bf16.msra.mxu0 %v8114_v35  ;;  %v8126_v20 = vld [vmem:[%s11612_s2 + $0x1820] ss:$16 sps:$4 sm:$0xff]   ;;  %v8159_v35 = vld [vmem:[%s11612_s2 + $0xc] ss:$16 sps:$4 sm:$0xff]   ;;  %v8166_v13 = vld [vmem:[%s11612_s2 + $0x268] ss:$16 sps:$4 sm:$0xff]  }
 0x184   :  { %5409 = vmatpush1.bf16.msra.mxu1 %v8117_v40  ;;  %v5075_v18 = vpop.f32.mrf.mxu0  ;;  %5377 = vmatprep.subr.bf16.mxu0 %v8122_v11  ;;  %v8157_v40 = vld [vmem:[%s11612_s2 + $0x8] ss:$16 sps:$4 sm:$0xff]  }
 0x185   :  { %v5116_v19 = vpop.f32.mrf.mxu1  ;;  %5410 = vmatprep.subr.bf16.mxu1 %v8125_v12  ;;  %v10191_v27 = vadd.f32 %v5114_v14, %v5074_v15  ;;  %v5076_v28 = vadd.f32 %v5075_v18, %v9992_v30  ;;  %5399 = vmatprep.mubr.bf16.mxu0 %v8749_v53  ;;  %v8160_v11 = vld [vmem:[%s11612_s2 + $0x288] ss:$16 sps:$4 sm:$0xff]   ;;  %v8165_v12 = vld [vmem:[%s11612_s2 + $0x1ec] ss:$16 sps:$4 sm:$0xff]  }
 0x186   :  { %5440 = vmatprep.mubr.bf16.mxu1 %v8963_v47  ;;  %v5077_v32 = vpop.f32.mrf.mxu0  ;;  %v8132_v47 = vld [vmem:[%s11612_s2 + $0x1800] ss:$16 sps:$4 sm:$0xff]   ;;  %v8171_v14 = vld [vmem:[%s11612_s2 + $0x1cc] ss:$16 sps:$4 sm:$0xff]   ;;  %v8169_v18 = vld [vmem:[%s11612_s2 + $0x1c8] ss:$16 sps:$4 sm:$0xff]  }
 0x187   :  { %v5118_v31 = vpop.f32.mrf.mxu1  ;;  %v10202_v33 = vadd.f32 %v5116_v19, %v5076_v28  ;;  %5378 = vmatpush1.bf16.msra.mxu0 %v8120_v59  ;;  %v8168_v59 = vld [vmem:[%s11612_s2 + $0x26c] ss:$16 sps:$4 sm:$0xff]   ;;  %v8172_v19 = vld [vmem:[%s11612_s2 + $0x248] ss:$16 sps:$4 sm:$0xff]  }
 0x188   :  { %5411 = vmatpush1.bf16.msra.mxu1 %v8123_v60  ;;  %v5078_v34 = vpop.f32.mrf.mxu0  ;;  %5379 = vmatprep.subr.bf16.mxu0 %v8128_v21  ;;  %v8163_v60 = vld [vmem:[%s11612_s2 + $0x1e8] ss:$16 sps:$4 sm:$0xff]   ;;  %v8174_v15 = vld [vmem:[%s11612_s2 + $0x24c] ss:$16 sps:$4 sm:$0xff]  }
 0x189   :  { %v5119_v30 = vpop.f32.mrf.mxu1  ;;  %5412 = vmatprep.subr.bf16.mxu1 %v8131_v26  ;;  %v8177_v21 = vld [vmem:[%s11612_s2 + $0x1ac] ss:$16 sps:$4 sm:$0xff]   ;;  %v8175_v28 = vld [vmem:[%s11612_s2 + $0x1a8] ss:$16 sps:$4 sm:$0xff]  }
 0x18a   :  { %v8180_v26 = vld [vmem:[%s11612_s2 + $0x22c] ss:$16 sps:$4 sm:$0xff]   ;;  %v8181_v31 = vld [vmem:[%s11612_s2 + $0x188] ss:$16 sps:$4 sm:$0xff]  }
 0x18b   :  { %5380 = vmatpush1.bf16.msra.mxu0 %v8126_v20  ;;  %v8178_v20 = vld [vmem:[%s11612_s2 + $0x228] ss:$16 sps:$4 sm:$0xff]   ;;  %v8186_v32 = vld [vmem:[%s11612_s2 + $0x20c] ss:$16 sps:$4 sm:$0xff]  }
 0x18c   :  { %5413 = vmatpush1.bf16.msra.mxu1 %v8129_v29  ;;  %5381 = vmatprep.subr.bf16.mxu0 %v8134_v41  ;;  %v8183_v29 = vld [vmem:[%s11612_s2 + $0x18c] ss:$16 sps:$4 sm:$0xff]   ;;  %v8184_v34 = vld [vmem:[%s11612_s2 + $0x208] ss:$16 sps:$4 sm:$0xff]  }
 0x18d   :  { %5414 = vmatprep.subr.bf16.mxu1 %v8137_v22  ;;  %v8189_v30 = vld [vmem:[%s11612_s2 + $0x16c] ss:$16 sps:$4 sm:$0xff]   ;;  %v8187_v22 = vld [vmem:[%s11612_s2 + $0x168] ss:$16 sps:$4 sm:$0xff]  }
 0x18e   :  { %v8192_v41 = vld [vmem:[%s11612_s2 + $0x3ec] ss:$16 sps:$4 sm:$0xff]  }
 0x18f   :  { %5382 = vmatpush1.bf16.msra.mxu0 %v8132_v47  ;;  %v8190_v47 = vld [vmem:[%s11612_s2 + $0x3e8] ss:$16 sps:$4 sm:$0xff]  }
 0x190   :  { %5415 = vmatpush1.bf16.msra.mxu1 %v8135_v23  ;;  %5449 = vmatprep.subr.bf16.mxu0 %v8144_v46  ;;  %v8195_v23 = vld [vmem:[%s11612_s2 + $0x14c] ss:$16 sps:$4 sm:$0xff]   ;;  %v8196_v46 = vld [vmem:[%s11612_s2 + $0x3c8] ss:$16 sps:$4 sm:$0xff]  }
 0x191   :  { %5416 = vmatprep.subr.bf16.mxu1 %v8141_v45  ;;  %v8193_v45 = vld [vmem:[%s11612_s2 + $0x148] ss:$16 sps:$4 sm:$0xff]  }
 0x192   :  { %7376 = vmatmul.mubr.msk.bf16.vlgmr.msra.gmra.mxu0 %vm4871_vm0, %v8138_v44  ;;  %v8198_v44 = vld [vmem:[%s11612_s2 + $0x3cc] ss:$16 sps:$4 sm:$0xff]  }
 0x193   :  { %5450 = vmatpush1.bf16.msra.mxu0 %v8142_v49  ;;  %5481 = vmatprep.mubr.bf16.mxu0 %v8974_v51  ;;  %v8162_v51 = vld [vmem:[%s11612_s2 + $0x28c] ss:$16 sps:$4 sm:$0xff]  }
 0x194   :  { %5417 = vmatpush1.bf16.msra.mxu1 %v8139_v48  ;;  %5451 = vmatprep.subr.bf16.mxu0 %v8150_v52  ;;  %v8201_v48 = vld [vmem:[%s11612_s2 + $0x12c] ss:$16 sps:$4 sm:$0xff]   ;;  %v8202_v52 = vld [vmem:[%s11612_s2 + $0x3a8] ss:$16 sps:$4 sm:$0xff]  }
 0x195   :  { %5418 = vmatprep.subr.bf16.mxu1 %v8147_v50  ;;  %v8204_v49 = vld [vmem:[%s11612_s2 + $0x3ac] ss:$16 sps:$4 sm:$0xff]   ;;  %v8199_v50 = vld [vmem:[%s11612_s2 + $0x128] ss:$16 sps:$4 sm:$0xff]  }
 0x197   :  { %5452 = vmatpush1.bf16.msra.mxu0 %v8148_v56  ;;  %v8210_v56 = vld [vmem:[%s11612_s2 + $0x38c] ss:$16 sps:$4 sm:$0xff]  }
 0x198   :  { %5419 = vmatpush1.bf16.msra.mxu1 %v8145_v55  ;;  %5453 = vmatprep.subr.bf16.mxu0 %v8156_v58  ;;  %v8207_v55 = vld [vmem:[%s11612_s2 + $0x10c] ss:$16 sps:$4 sm:$0xff]   ;;  %v8208_v58 = vld [vmem:[%s11612_s2 + $0x388] ss:$16 sps:$4 sm:$0xff]  }
 0x199   :  { %5420 = vmatprep.subr.bf16.mxu1 %v8153_v57  ;;  %v8205_v57 = vld [vmem:[%s11612_s2 + $0x108] ss:$16 sps:$4 sm:$0xff]  }
 0x19b   :  { %5454 = vmatpush1.bf16.msra.mxu0 %v8154_v62  ;;  %v8216_v62 = vld [vmem:[%s11612_s2 + $0x4ec] ss:$16 sps:$4 sm:$0xff]  }
 0x19c   :  { %5421 = vmatpush1.bf16.msra.mxu1 %v8151_v61  ;;  %5455 = vmatprep.subr.bf16.mxu0 %v8162_v51  ;;  %v8213_v61 = vld [vmem:[%s11612_s2 + $0x36c] ss:$16 sps:$4 sm:$0xff]   ;;  %v8214_v51 = vld [vmem:[%s11612_s2 + $0x4e8] ss:$16 sps:$4 sm:$0xff]  }
 0x19d   :  { %5422 = vmatprep.subr.bf16.mxu1 %v8159_v35  ;;  %v8211_v35 = vld [vmem:[%s11612_s2 + $0x368] ss:$16 sps:$4 sm:$0xff]  }
 0x19f   :  { %5456 = vmatpush1.bf16.msra.mxu0 %v8160_v11  ;;  %v8222_v11 = vld [vmem:[%s11612_s2 + $0x4cc] ss:$16 sps:$4 sm:$0xff]  }
 0x1a0   :  { %5423 = vmatpush1.bf16.msra.mxu1 %v8157_v40  ;;  %5457 = vmatprep.subr.bf16.mxu0 %v8168_v59  ;;  %v8219_v40 = vld [vmem:[%s11612_s2 + $0x34c] ss:$16 sps:$4 sm:$0xff]   ;;  %v8220_v59 = vld [vmem:[%s11612_s2 + $0x4c8] ss:$16 sps:$4 sm:$0xff]  }
 0x1a1   :  { %5424 = vmatprep.subr.bf16.mxu1 %v8165_v12  ;;  %v8217_v12 = vld [vmem:[%s11612_s2 + $0x348] ss:$16 sps:$4 sm:$0xff]  }
 0x1a3   :  { %5458 = vmatpush1.bf16.msra.mxu0 %v8166_v13 }
 0x1a4   :  { %5425 = vmatpush2.bf16.msra.mxu1 %v8163_v60  ;;  %5459 = vmatprep.subr.bf16.mxu0 %v8174_v15 }
 0x1a5   :  { %5426 = vmatprep.subr.bf16.mxu1 %v8171_v14 }
 0x1a7   :  { %5460 = vmatpush1.bf16.msra.mxu0 %v8172_v19  ;;  %v8225_v19 = vld [vmem:[%s11612_s2 + $0x32c] ss:$16 sps:$4 sm:$0xff]  }
 0x1a8   :  { %5427 = vmatpush2.bf16.msra.mxu1 %v8169_v18  ;;  %5461 = vmatprep.subr.bf16.mxu0 %v8180_v26 }
 0x1a9   :  { %5428 = vmatprep.subr.bf16.mxu1 %v8177_v21  ;;  %v8228_v21 = vld [vmem:[%s11612_s2 + $0x4ac] ss:$16 sps:$4 sm:$0xff]  }
 0x1ab   :  { %5462 = vmatpush1.bf16.msra.mxu0 %v8178_v20 }
 0x1ac   :  { %5429 = vmatpush2.bf16.msra.mxu1 %v8175_v28  ;;  %5463 = vmatprep.subr.bf16.mxu0 %v8186_v32  ;;  %v8226_v28 = vld [vmem:[%s11612_s2 + $0x4a8] ss:$16 sps:$4 sm:$0xff]  }
 0x1ad   :  { %5430 = vmatprep.subr.bf16.mxu1 %v8183_v29 }
 0x1af   :  { %5464 = vmatpush1.bf16.msra.mxu0 %v8184_v34 }
 0x1b0   :  { %5431 = vmatpush2.bf16.msra.mxu1 %v8181_v31  ;;  %5465 = vmatprep.subr.bf16.mxu0 %v8192_v41  ;;  %v8232_v41 = vld [vmem:[%s11612_s2 + $0x488] ss:$16 sps:$4 sm:$0xff]  }
 0x1b1   :  { %5432 = vmatprep.subr.bf16.mxu1 %v8189_v30  ;;  %v8234_v30 = vld [vmem:[%s11612_s2 + $0x48c] ss:$16 sps:$4 sm:$0xff]  }
 0x1b3   :  { %5466 = vmatpush2.bf16.msra.mxu0 %v8190_v47  ;;  %v8240_v47 = vld [vmem:[%s11612_s2 + $0x6ec] ss:$16 sps:$4 sm:$0xff]  }
 0x1b4   :  { %5433 = vmatpush2.bf16.msra.mxu1 %v8187_v22  ;;  %5467 = vmatprep.subr.bf16.mxu0 %v8198_v44  ;;  %v8237_v22 = vld [vmem:[%s11612_s2 + $0x46c] ss:$16 sps:$4 sm:$0xff]   ;;  %v8238_v44 = vld [vmem:[%s11612_s2 + $0x6e8] ss:$16 sps:$4 sm:$0xff]  }
 0x1b5   :  { %5434 = vmatprep.subr.bf16.mxu1 %v8195_v23  ;;  %v8235_v23 = vld [vmem:[%s11612_s2 + $0x468] ss:$16 sps:$4 sm:$0xff]  }
 0x1b7   :  { %5468 = vmatpush2.bf16.msra.mxu0 %v8196_v46  ;;  %v8246_v46 = vld [vmem:[%s11612_s2 + $0x6cc] ss:$16 sps:$4 sm:$0xff]  }
 0x1b8   :  { %5435 = vmatpush2.bf16.msra.mxu1 %v8193_v45  ;;  %5469 = vmatprep.subr.bf16.mxu0 %v8204_v49  ;;  %v8243_v45 = vld [vmem:[%s11612_s2 + $0x44c] ss:$16 sps:$4 sm:$0xff]   ;;  %v8244_v49 = vld [vmem:[%s11612_s2 + $0x6c8] ss:$16 sps:$4 sm:$0xff]  }
 0x1b9   :  { %5436 = vmatprep.subr.bf16.mxu1 %v8201_v48  ;;  %v8241_v48 = vld [vmem:[%s11612_s2 + $0x448] ss:$16 sps:$4 sm:$0xff]  }
 0x1bb   :  { %5470 = vmatpush2.bf16.msra.mxu0 %v8202_v52  ;;  %v8247_v52 = vld [vmem:[%s11612_s2 + $0x428] ss:$16 sps:$4 sm:$0xff]  }
 0x1bc   :  { %5437 = vmatpush2.bf16.msra.mxu1 %v8199_v50  ;;  %5471 = vmatprep.subr.bf16.mxu0 %v8210_v56  ;;  %v8249_v50 = vld [vmem:[%s11612_s2 + $0x42c] ss:$16 sps:$4 sm:$0xff]  }
 0x1bd   :  { %5438 = vmatprep.subr.bf16.mxu1 %v8207_v55  ;;  %v8250_v55 = vld [vmem:[%s11612_s2 + $0x6a8] ss:$16 sps:$4 sm:$0xff]   ;;  %v8255_v56 = vld [vmem:[%s11612_s2 + $0x40c] ss:$16 sps:$4 sm:$0xff]  }
 0x1bf   :  { %5472 = vmatpush2.bf16.msra.mxu0 %v8208_v58  ;;  %v8256_v58 = vld [vmem:[%s11612_s2 + $0x688] ss:$16 sps:$4 sm:$0xff]  }
 0x1c0   :  { %5439 = vmatpush2.bf16.msra.mxu1 %v8205_v57  ;;  %5473 = vmatprep.subr.bf16.mxu0 %v8213_v61  ;;  %v8253_v57 = vld [vmem:[%s11612_s2 + $0x408] ss:$16 sps:$4 sm:$0xff]   ;;  %v8261_v61 = vld [vmem:[%s11612_s2 + $0x5ec] ss:$16 sps:$4 sm:$0xff]  }
 0x1c1   :  { %5490 = vmatprep.subr.bf16.mxu1 %v8216_v62  ;;  %v8264_v62 = vld [vmem:[%s11612_s2 + $0x66c] ss:$16 sps:$4 sm:$0xff]  }
 0x1c2   :  { %v5155_v60 = vpop.f32.mrf.mxu0 }
 0x1c3   :  { %v5196_v13 = vpop.f32.mrf.mxu1  ;;  %5441 = vmatmul.mubr.bf16.vlgmr.msra.gmra.mxu1 %v9032_v6  ;;  %v5156_v14 = vadd.f32 %v5155_v60, %v10191_v27  ;;  %5474 = vmatpush2.bf16.msra.mxu0 %v8211_v35  ;;  %v8223_v27 = vld [vmem:[%s11612_s2 + $0x328] ss:$16 sps:$4 sm:$0xff]   ;;  %v8273_v60 = vld [vmem:[%s11612_s2 + $0x5ac] ss:$16 sps:$4 sm:$0xff]  }
 0x1c4   :  { %5491 = vmatpush1.bf16.msra.mxu1 %v8214_v51  ;;  %v5157_v15 = vpop.f32.mrf.mxu0  ;;  %5475 = vmatprep.subr.bf16.mxu0 %v8219_v40  ;;  %v8259_v35 = vld [vmem:[%s11612_s2 + $0x5e8] ss:$16 sps:$4 sm:$0xff]   ;;  %v8267_v40 = vld [vmem:[%s11612_s2 + $0x5cc] ss:$16 sps:$4 sm:$0xff]  }
 0x1c5   :  { %v5198_v18 = vpop.f32.mrf.mxu1  ;;  %5492 = vmatprep.subr.bf16.mxu1 %v8222_v11  ;;  %v10397_v26 = vadd.f32 %v5196_v13, %v5156_v14  ;;  %v5158_v6 = vadd.f32 %v5157_v15, %v10202_v33  ;;  %5522 = vmatprep.mubr.bf16.mxu1 %v9128_v36  ;;  %v8231_v33 = vld [vmem:[%s11612_s2 + $0x30c] ss:$16 sps:$4 sm:$0xff]   ;;  %v8229_v36 = vld [vmem:[%s11612_s2 + $0x308] ss:$16 sps:$4 sm:$0xff]  }
 0x1c6   :  { %v5159_v20 = vpop.f32.mrf.mxu0  ;;  %v8262_v51 = vld [vmem:[%s11612_s2 + $0x668] ss:$16 sps:$4 sm:$0xff]   ;;  %v8270_v11 = vld [vmem:[%s11612_s2 + $0x64c] ss:$16 sps:$4 sm:$0xff]  }
 0x1c7   :  { %v5200_v29 = vpop.f32.mrf.mxu1  ;;  %v10407_v32 = vadd.f32 %v5198_v18, %v5158_v6  ;;  %5476 = vmatpush2.bf16.msra.mxu0 %v8217_v12  ;;  %v8265_v12 = vld [vmem:[%s11612_s2 + $0x5c8] ss:$16 sps:$4 sm:$0xff]   ;;  %v8276_v13 = vld [vmem:[%s11612_s2 + $0x62c] ss:$16 sps:$4 sm:$0xff]  }
 0x1c8   :  { %5493 = vmatpush1.bf16.msra.mxu1 %v8220_v59  ;;  %v5160_v31 = vpop.f32.mrf.mxu0  ;;  %5477 = vmatprep.subr.bf16.mxu0 %v8225_v19  ;;  %v8268_v59 = vld [vmem:[%s11612_s2 + $0x648] ss:$16 sps:$4 sm:$0xff]   ;;  %v8279_v18 = vld [vmem:[%s11612_s2 + $0x58c] ss:$16 sps:$4 sm:$0xff]  }
 0x1c9   :  { %v5201_v34 = vpop.f32.mrf.mxu1  ;;  %5494 = vmatprep.subr.bf16.mxu1 %v8228_v21  ;;  %v8271_v14 = vld [vmem:[%s11612_s2 + $0x5a8] ss:$16 sps:$4 sm:$0xff]   ;;  %v8282_v19 = vld [vmem:[%s11612_s2 + $0x60c] ss:$16 sps:$4 sm:$0xff]  }
 0x1ca   :  { %v8274_v15 = vld [vmem:[%s11612_s2 + $0x628] ss:$16 sps:$4 sm:$0xff]   ;;  %v8291_v31 = vld [vmem:[%s11612_s2 + $0x54c] ss:$16 sps:$4 sm:$0xff]  }
 0x1cb   :  { %5478 = vmatpush2.bf16.msra.mxu0 %v8223_v27  ;;  %v8277_v21 = vld [vmem:[%s11612_s2 + $0x588] ss:$16 sps:$4 sm:$0xff]   ;;  %v8285_v27 = vld [vmem:[%s11612_s2 + $0x56c] ss:$16 sps:$4 sm:$0xff]  }
 0x1cc   :  { %5495 = vmatpush1.bf16.msra.mxu1 %v8226_v28  ;;  %5479 = vmatprep.subr.bf16.mxu0 %v8231_v33  ;;  %v8280_v6 = vld [vmem:[%s11612_s2 + $0x608] ss:$16 sps:$4 sm:$0xff]   ;;  %v8288_v28 = vld [vmem:[%s11612_s2 + $0x7ec] ss:$16 sps:$4 sm:$0xff]  }
 0x1cd   :  { %5496 = vmatprep.subr.bf16.mxu1 %v8234_v30  ;;  %v8283_v20 = vld [vmem:[%s11612_s2 + $0x568] ss:$16 sps:$4 sm:$0xff]   ;;  %v8294_v34 = vld [vmem:[%s11612_s2 + $0x7cc] ss:$16 sps:$4 sm:$0xff]  }
 0x1ce   :  { %v8286_v29 = vld [vmem:[%s11612_s2 + $0x7e8] ss:$16 sps:$4 sm:$0xff]  }
 0x1cf   :  { %5480 = vmatpush2.bf16.msra.mxu0 %v8229_v36  ;;  %v8289_v33 = vld [vmem:[%s11612_s2 + $0x548] ss:$16 sps:$4 sm:$0xff]   ;;  %v8297_v36 = vld [vmem:[%s11612_s2 + $0x52c] ss:$16 sps:$4 sm:$0xff]  }
 0x1d0   :  { %5497 = vmatpush1.bf16.msra.mxu1 %v8232_v41  ;;  %5531 = vmatprep.subr.bf16.mxu0 %v8240_v47  ;;  %v8292_v30 = vld [vmem:[%s11612_s2 + $0x7c8] ss:$16 sps:$4 sm:$0xff]   ;;  %v8300_v41 = vld [vmem:[%s11612_s2 + $0x7ac] ss:$16 sps:$4 sm:$0xff]  }
 0x1d1   :  { %5498 = vmatprep.subr.bf16.mxu1 %v8237_v22  ;;  %v8295_v22 = vld [vmem:[%s11612_s2 + $0x528] ss:$16 sps:$4 sm:$0xff]  }
 0x1d2   :  { %5482 = vmatmul.mubr.bf16.vlgmr.msra.gmra.mxu0 %v9034_v7  ;;  %v8252_v7 = vld [vmem:[%s11612_s2 + $0x6ac] ss:$16 sps:$4 sm:$0xff]   ;;  %v8298_v47 = vld [vmem:[%s11612_s2 + $0x7a8] ss:$16 sps:$4 sm:$0xff]  }
 0x1d3   :  { %5532 = vmatpush1.bf16.msra.mxu0 %v8238_v44  ;;  %5563 = vmatprep.mubr.bf16.mxu0 %v9132_v37  ;;  %v8258_v37 = vld [vmem:[%s11612_s2 + $0x68c] ss:$16 sps:$4 sm:$0xff]  }
 0x1d4   :  { %5499 = vmatpush1.bf16.msra.mxu1 %v8235_v23  ;;  %5533 = vmatprep.subr.bf16.mxu0 %v8246_v46  ;;  %v8303_v23 = vld [vmem:[%s11612_s2 + $0x50c] ss:$16 sps:$4 sm:$0xff]   ;;  %v8304_v46 = vld [vmem:[%s11612_s2 + $0x788] ss:$16 sps:$4 sm:$0xff]  }
 0x1d5   :  { %5500 = vmatprep.subr.bf16.mxu1 %v8243_v45  ;;  %v8306_v44 = vld [vmem:[%s11612_s2 + $0x78c] ss:$16 sps:$4 sm:$0xff]   ;;  %v8301_v45 = vld [vmem:[%s11612_s2 + $0x508] ss:$16 sps:$4 sm:$0xff]  }
 0x1d7   :  { %5534 = vmatpush1.bf16.msra.mxu0 %v8244_v49  ;;  %v8312_v49 = vld [vmem:[%s11612_s2 + $0x8ec] ss:$16 sps:$4 sm:$0xff]  }
 0x1d8   :  { %5501 = vmatpush1.bf16.msra.mxu1 %v8241_v48  ;;  %5535 = vmatprep.subr.bf16.mxu0 %v8252_v7  ;;  %v8309_v48 = vld [vmem:[%s11612_s2 + $0x76c] ss:$16 sps:$4 sm:$0xff]   ;;  %v8310_v7 = vld [vmem:[%s11612_s2 + $0x8e8] ss:$16 sps:$4 sm:$0xff]  }
 0x1d9   :  { %5502 = vmatprep.subr.bf16.mxu1 %v8249_v50  ;;  %v8307_v50 = vld [vmem:[%s11612_s2 + $0x768] ss:$16 sps:$4 sm:$0xff]  }
 0x1db   :  { %5536 = vmatpush1.bf16.msra.mxu0 %v8250_v55  ;;  %v8318_v55 = vld [vmem:[%s11612_s2 + $0x8cc] ss:$16 sps:$4 sm:$0xff]  }
 0x1dc   :  { %5503 = vmatpush1.bf16.msra.mxu1 %v8247_v52  ;;  %5537 = vmatprep.subr.bf16.mxu0 %v8258_v37  ;;  %v8315_v52 = vld [vmem:[%s11612_s2 + $0x74c] ss:$16 sps:$4 sm:$0xff]  }
 0x1dd   :  { %5504 = vmatprep.subr.bf16.mxu1 %v8255_v56 }
 0x1df   :  { %5538 = vmatpush1.bf16.msra.mxu0 %v8256_v58  ;;  %v8313_v58 = vld [vmem:[%s11612_s2 + $0x748] ss:$16 sps:$4 sm:$0xff]  }
 0x1e0   :  { %5505 = vmatpush1.bf16.msra.mxu1 %v8253_v57  ;;  %5539 = vmatprep.subr.bf16.mxu0 %v8264_v62 }
 0x1e1   :  { %5506 = vmatprep.subr.bf16.mxu1 %v8261_v61  ;;  %v8316_v61 = vld [vmem:[%s11612_s2 + $0x8c8] ss:$16 sps:$4 sm:$0xff]  }
 0x1e3   :  { %5540 = vmatpush1.bf16.msra.mxu0 %v8262_v51 }
 0x1e4   :  { %5507 = vmatpush2.bf16.msra.mxu1 %v8259_v35  ;;  %5541 = vmatprep.subr.bf16.mxu0 %v8270_v11 }
 0x1e5   :  { %5508 = vmatprep.subr.bf16.mxu1 %v8267_v40 }
 0x1e7   :  { %5542 = vmatpush1.bf16.msra.mxu0 %v8268_v59 }
 0x1e8   :  { %5509 = vmatpush2.bf16.msra.mxu1 %v8265_v12  ;;  %5543 = vmatprep.subr.bf16.mxu0 %v8276_v13  ;;  %v8322_v13 = vld [vmem:[%s11612_s2 + $0x8a8] ss:$16 sps:$4 sm:$0xff]  }
 0x1e9   :  { %5510 = vmatprep.subr.bf16.mxu1 %v8273_v60  ;;  %v8319_v60 = vld [vmem:[%s11612_s2 + $0x728] ss:$16 sps:$4 sm:$0xff]  }
 0x1eb   :  { %5544 = vmatpush1.bf16.msra.mxu0 %v8274_v15 }
 0x1ec   :  { %5511 = vmatpush2.bf16.msra.mxu1 %v8271_v14  ;;  %5545 = vmatprep.subr.bf16.mxu0 %v8282_v19  ;;  %v8328_v19 = vld [vmem:[%s11612_s2 + $0x888] ss:$16 sps:$4 sm:$0xff]  }
 0x1ed   :  { %5512 = vmatprep.subr.bf16.mxu1 %v8279_v18  ;;  %v8325_v18 = vld [vmem:[%s11612_s2 + $0x708] ss:$16 sps:$4 sm:$0xff]  }
 0x1ef   :  { %5546 = vmatpush1.bf16.msra.mxu0 %v8280_v6  ;;  %v8336_v6 = vld [vmem:[%s11612_s2 + $0xaec] ss:$16 sps:$4 sm:$0xff]  }
 0x1f0   :  { %5513 = vmatpush2.bf16.msra.mxu1 %v8277_v21  ;;  %5547 = vmatprep.subr.bf16.mxu0 %v8288_v28  ;;  %v8333_v21 = vld [vmem:[%s11612_s2 + $0x86c] ss:$16 sps:$4 sm:$0xff]   ;;  %v8334_v28 = vld [vmem:[%s11612_s2 + $0xae8] ss:$16 sps:$4 sm:$0xff]  }
 0x1f1   :  { %5514 = vmatprep.subr.bf16.mxu1 %v8285_v27  ;;  %v8331_v27 = vld [vmem:[%s11612_s2 + $0x868] ss:$16 sps:$4 sm:$0xff]  }
 0x1f3   :  { %5548 = vmatpush2.bf16.msra.mxu0 %v8286_v29  ;;  %v8342_v29 = vld [vmem:[%s11612_s2 + $0xacc] ss:$16 sps:$4 sm:$0xff]  }
 0x1f4   :  { %5515 = vmatpush2.bf16.msra.mxu1 %v8283_v20  ;;  %5549 = vmatprep.subr.bf16.mxu0 %v8294_v34  ;;  %v8339_v20 = vld [vmem:[%s11612_s2 + $0x84c] ss:$16 sps:$4 sm:$0xff]   ;;  %v8340_v34 = vld [vmem:[%s11612_s2 + $0xac8] ss:$16 sps:$4 sm:$0xff]  }
 0x1f5   :  { %5516 = vmatprep.subr.bf16.mxu1 %v8291_v31  ;;  %v8337_v31 = vld [vmem:[%s11612_s2 + $0x848] ss:$16 sps:$4 sm:$0xff]  }
 0x1f7   :  { %5550 = vmatpush2.bf16.msra.mxu0 %v8292_v30  ;;  %v8343_v30 = vld [vmem:[%s11612_s2 + $0x828] ss:$16 sps:$4 sm:$0xff]  }
 0x1f8   :  { %5517 = vmatpush2.bf16.msra.mxu1 %v8289_v33  ;;  %5551 = vmatprep.subr.bf16.mxu0 %v8300_v41  ;;  %v8345_v33 = vld [vmem:[%s11612_s2 + $0x82c] ss:$16 sps:$4 sm:$0xff]  }
 0x1f9   :  { %5518 = vmatprep.subr.bf16.mxu1 %v8297_v36  ;;  %v8346_v36 = vld [vmem:[%s11612_s2 + $0xaa8] ss:$16 sps:$4 sm:$0xff]   ;;  %v8351_v41 = vld [vmem:[%s11612_s2 + $0x80c] ss:$16 sps:$4 sm:$0xff]  }
 0x1fb   :  { %5552 = vmatpush2.bf16.msra.mxu0 %v8298_v47  ;;  %v8352_v47 = vld [vmem:[%s11612_s2 + $0xa88] ss:$16 sps:$4 sm:$0xff]  }
 0x1fc   :  { %5519 = vmatpush2.bf16.msra.mxu1 %v8295_v22  ;;  %5553 = vmatprep.subr.bf16.mxu0 %v8306_v44  ;;  %v8349_v22 = vld [vmem:[%s11612_s2 + $0x808] ss:$16 sps:$4 sm:$0xff]   ;;  %v8360_v44 = vld [vmem:[%s11612_s2 + $0xa6c] ss:$16 sps:$4 sm:$0xff]  }
 0x1fd   :  { %5520 = vmatprep.subr.bf16.mxu1 %v8303_v23  ;;  %v8357_v23 = vld [vmem:[%s11612_s2 + $0x9ec] ss:$16 sps:$4 sm:$0xff]  }
 0x1ff   :  { %5554 = vmatpush2.bf16.msra.mxu0 %v8304_v46  ;;  %v8358_v46 = vld [vmem:[%s11612_s2 + $0xa68] ss:$16 sps:$4 sm:$0xff]  }
 0x200   :  { %5521 = vmatpush2.bf16.msra.mxu1 %v8301_v45  ;;  %5555 = vmatprep.subr.bf16.mxu0 %v8309_v48  ;;  %v8355_v45 = vld [vmem:[%s11612_s2 + $0x9e8] ss:$16 sps:$4 sm:$0xff]   ;;  %v8363_v48 = vld [vmem:[%s11612_s2 + $0x9cc] ss:$16 sps:$4 sm:$0xff]  }
 0x201   :  { %5572 = vmatprep.subr.bf16.mxu1 %v8312_v49  ;;  %v8366_v49 = vld [vmem:[%s11612_s2 + $0xa4c] ss:$16 sps:$4 sm:$0xff]  }
 0x202   :  { %v5237_v56 = vpop.f32.mrf.mxu0 }
 0x203   :  { %v5278_v37 = vpop.f32.mrf.mxu1  ;;  %5523 = vmatmul.mubr.bf16.vlgmr.msra.gmra.mxu1 %v9252_v16  ;;  %v5238_v57 = vadd.f32 %v5237_v56, %v10397_v26  ;;  %5556 = vmatpush2.bf16.msra.mxu0 %v8307_v50  ;;  %v8321_v16 = vld [vmem:[%s11612_s2 + $0x72c] ss:$16 sps:$4 sm:$0xff]   ;;  %v8361_v50 = vld [vmem:[%s11612_s2 + $0x9c8] ss:$16 sps:$4 sm:$0xff]  }
 0x204   :  { %5573 = vmatpush1.bf16.msra.mxu1 %v8310_v7  ;;  %v5239_v62 = vpop.f32.mrf.mxu0  ;;  %5557 = vmatprep.subr.bf16.mxu0 %v8315_v52  ;;  %v8324_v26 = vld [vmem:[%s11612_s2 + $0x8ac] ss:$16 sps:$4 sm:$0xff]   ;;  %v8364_v7 = vld [vmem:[%s11612_s2 + $0xa48] ss:$16 sps:$4 sm:$0xff]  }
 0x205   :  { %v5280_v35 = vpop.f32.mrf.mxu1  ;;  %5574 = vmatprep.subr.bf16.mxu1 %v8318_v55  ;;  %v10599_v51 = vadd.f32 %v5278_v37, %v5238_v57  ;;  %v5240_v40 = vadd.f32 %v5239_v62, %v10407_v32  ;;  %5604 = vmatprep.mubr.bf16.mxu1 %v9282_v24  ;;  %v8327_v24 = vld [vmem:[%s11612_s2 + $0x70c] ss:$16 sps:$4 sm:$0xff]   ;;  %v8367_v56 = vld [vmem:[%s11612_s2 + $0x9a8] ss:$16 sps:$4 sm:$0xff]  }
 0x206   :  { %v5241_v11 = vpop.f32.mrf.mxu0  ;;  %v8330_v32 = vld [vmem:[%s11612_s2 + $0x88c] ss:$16 sps:$4 sm:$0xff]   ;;  %v8370_v37 = vld [vmem:[%s11612_s2 + $0xa28] ss:$16 sps:$4 sm:$0xff]  }
 0x207   :  { %v5282_v12 = vpop.f32.mrf.mxu1  ;;  %v10603_v59 = vadd.f32 %v5280_v35, %v5240_v40  ;;  %5558 = vmatpush2.bf16.msra.mxu0 %v8313_v58  ;;  %v8369_v52 = vld [vmem:[%s11612_s2 + $0x9ac] ss:$16 sps:$4 sm:$0xff]   ;;  %v8376_v62 = vld [vmem:[%s11612_s2 + $0xa08] ss:$16 sps:$4 sm:$0xff]  }
 0x208   :  { %5575 = vmatpush1.bf16.msra.mxu1 %v8316_v61  ;;  %v5242_v14 = vpop.f32.mrf.mxu0  ;;  %5559 = vmatprep.subr.bf16.mxu0 %v8321_v16  ;;  %v8372_v55 = vld [vmem:[%s11612_s2 + $0xa2c] ss:$16 sps:$4 sm:$0xff]   ;;  %v8373_v61 = vld [vmem:[%s11612_s2 + $0x988] ss:$16 sps:$4 sm:$0xff]  }
 0x209   :  { %v5283_v15 = vpop.f32.mrf.mxu1  ;;  %5576 = vmatprep.subr.bf16.mxu1 %v8324_v26  ;;  %v8375_v57 = vld [vmem:[%s11612_s2 + $0x98c] ss:$16 sps:$4 sm:$0xff]   ;;  %v8379_v26 = vld [vmem:[%s11612_s2 + $0x968] ss:$16 sps:$4 sm:$0xff]  }
 0x20a   :  { %v8378_v58 = vld [vmem:[%s11612_s2 + $0xa0c] ss:$16 sps:$4 sm:$0xff]   ;;  %v8382_v40 = vld [vmem:[%s11612_s2 + $0xbe8] ss:$16 sps:$4 sm:$0xff]  }
 0x20b   :  { %5560 = vmatpush2.bf16.msra.mxu0 %v8319_v60  ;;  %v8381_v35 = vld [vmem:[%s11612_s2 + $0x96c] ss:$16 sps:$4 sm:$0xff]   ;;  %v8385_v60 = vld [vmem:[%s11612_s2 + $0x948] ss:$16 sps:$4 sm:$0xff]  }
 0x20c   :  { %5577 = vmatpush1.bf16.msra.mxu1 %v8322_v13  ;;  %5561 = vmatprep.subr.bf16.mxu0 %v8327_v24  ;;  %v8384_v16 = vld [vmem:[%s11612_s2 + $0xbec] ss:$16 sps:$4 sm:$0xff]   ;;  %v8388_v13 = vld [vmem:[%s11612_s2 + $0xbc8] ss:$16 sps:$4 sm:$0xff]  }
 0x20d   :  { %5578 = vmatprep.subr.bf16.mxu1 %v8330_v32  ;;  %v8387_v11 = vld [vmem:[%s11612_s2 + $0x94c] ss:$16 sps:$4 sm:$0xff]   ;;  %v8391_v24 = vld [vmem:[%s11612_s2 + $0x928] ss:$16 sps:$4 sm:$0xff]  }
 0x20e   :  { %v8390_v12 = vld [vmem:[%s11612_s2 + $0xbcc] ss:$16 sps:$4 sm:$0xff]   ;;  %v8394_v32 = vld [vmem:[%s11612_s2 + $0xba8] ss:$16 sps:$4 sm:$0xff]  }
 0x20f   :  { %5562 = vmatpush2.bf16.msra.mxu0 %v8325_v18  ;;  %v8393_v14 = vld [vmem:[%s11612_s2 + $0x92c] ss:$16 sps:$4 sm:$0xff]  }
 0x210   :  { %5579 = vmatpush1.bf16.msra.mxu1 %v8328_v19  ;;  %5613 = vmatprep.subr.bf16.mxu0 %v8336_v6  ;;  %v8396_v15 = vld [vmem:[%s11612_s2 + $0xbac] ss:$16 sps:$4 sm:$0xff]   ;;  %v8400_v6 = vld [vmem:[%s11612_s2 + $0xb88] ss:$16 sps:$4 sm:$0xff]  }
 0x211   :  { %5580 = vmatprep.subr.bf16.mxu1 %v8333_v21  ;;  %v8399_v18 = vld [vmem:[%s11612_s2 + $0x90c] ss:$16 sps:$4 sm:$0xff]   ;;  %v8397_v21 = vld [vmem:[%s11612_s2 + $0x908] ss:$16 sps:$4 sm:$0xff]  }
 0x212   :  { %5564 = vmatmul.mubr.bf16.vlgmr.msra.gmra.mxu0 %v9256_v17  ;;  %v8348_v17 = vld [vmem:[%s11612_s2 + $0xaac] ss:$16 sps:$4 sm:$0xff]  }
 0x213   :  { %5614 = vmatpush1.bf16.msra.mxu0 %v8334_v28  ;;  %5645 = vmatprep.mubr.bf16.mxu0 %v9286_v25  ;;  %v8354_v25 = vld [vmem:[%s11612_s2 + $0xa8c] ss:$16 sps:$4 sm:$0xff]  }
 0x214   :  { %5581 = vmatpush1.bf16.msra.mxu1 %v8331_v27  ;;  %5615 = vmatprep.subr.bf16.mxu0 %v8342_v29  ;;  %v8402_v19 = vld [vmem:[%s11612_s2 + $0xb8c] ss:$16 sps:$4 sm:$0xff]   ;;  %v8406_v29 = vld [vmem:[%s11612_s2 + $0xce8] ss:$16 sps:$4 sm:$0xff]  }
 0x215   :  { %5582 = vmatprep.subr.bf16.mxu1 %v8339_v20  ;;  %v8405_v27 = vld [vmem:[%s11612_s2 + $0xb6c] ss:$16 sps:$4 sm:$0xff]   ;;  %v8403_v20 = vld [vmem:[%s11612_s2 + $0xb68] ss:$16 sps:$4 sm:$0xff]  }
 0x216   :  { %v8408_v28 = vld [vmem:[%s11612_s2 + $0xcec] ss:$16 sps:$4 sm:$0xff]  }
 0x217   :  { %5616 = vmatpush1.bf16.msra.mxu0 %v8340_v34  ;;  %v8414_v34 = vld [vmem:[%s11612_s2 + $0xccc] ss:$16 sps:$4 sm:$0xff]  }
 0x218   :  { %5583 = vmatpush1.bf16.msra.mxu1 %v8337_v31  ;;  %5617 = vmatprep.subr.bf16.mxu0 %v8348_v17  ;;  %v8411_v31 = vld [vmem:[%s11612_s2 + $0xb4c] ss:$16 sps:$4 sm:$0xff]  }
 0x219   :  { %5584 = vmatprep.subr.bf16.mxu1 %v8345_v33 }
 0x21b   :  { %5618 = vmatpush1.bf16.msra.mxu0 %v8346_v36  ;;  %v8409_v36 = vld [vmem:[%s11612_s2 + $0xb48] ss:$16 sps:$4 sm:$0xff]  }
 0x21c   :  { %5585 = vmatpush1.bf16.msra.mxu1 %v8343_v30  ;;  %5619 = vmatprep.subr.bf16.mxu0 %v8354_v25 }
 0x21d   :  { %5586 = vmatprep.subr.bf16.mxu1 %v8351_v41  ;;  %v8412_v41 = vld [vmem:[%s11612_s2 + $0xcc8] ss:$16 sps:$4 sm:$0xff]  }
 0x21f   :  { %5620 = vmatpush1.bf16.msra.mxu0 %v8352_v47 }
 0x220   :  { %5587 = vmatpush1.bf16.msra.mxu1 %v8349_v22  ;;  %5621 = vmatprep.subr.bf16.mxu0 %v8360_v44 }
 0x221   :  { %5588 = vmatprep.subr.bf16.mxu1 %v8357_v23 }
 0x223   :  { %5622 = vmatpush1.bf16.msra.mxu0 %v8358_v46 }
 0x224   :  { %5589 = vmatpush2.bf16.msra.mxu1 %v8355_v45  ;;  %5623 = vmatprep.subr.bf16.mxu0 %v8366_v49  ;;  %v8418_v49 = vld [vmem:[%s11612_s2 + $0xca8] ss:$16 sps:$4 sm:$0xff]  }
 0x225   :  { %5590 = vmatprep.subr.bf16.mxu1 %v8363_v48  ;;  %v8415_v48 = vld [vmem:[%s11612_s2 + $0xb28] ss:$16 sps:$4 sm:$0xff]  }
 0x227   :  { %5624 = vmatpush1.bf16.msra.mxu0 %v8364_v7 }
 0x228   :  { %5591 = vmatpush2.bf16.msra.mxu1 %v8361_v50  ;;  %5625 = vmatprep.subr.bf16.mxu0 %v8372_v55  ;;  %v8424_v55 = vld [vmem:[%s11612_s2 + $0xc88] ss:$16 sps:$4 sm:$0xff]  }
 0x229   :  { %5592 = vmatprep.subr.bf16.mxu1 %v8369_v52  ;;  %v8421_v52 = vld [vmem:[%s11612_s2 + $0xb08] ss:$16 sps:$4 sm:$0xff]  }
 0x22b   :  { %5626 = vmatpush1.bf16.msra.mxu0 %v8370_v37  ;;  %v8432_v37 = vld [vmem:[%s11612_s2 + $0xeec] ss:$16 sps:$4 sm:$0xff]  }
 0x22c   :  { %5593 = vmatpush2.bf16.msra.mxu1 %v8367_v56  ;;  %5627 = vmatprep.subr.bf16.mxu0 %v8378_v58  ;;  %v8429_v56 = vld [vmem:[%s11612_s2 + $0xc6c] ss:$16 sps:$4 sm:$0xff]   ;;  %v8430_v58 = vld [vmem:[%s11612_s2 + $0xee8] ss:$16 sps:$4 sm:$0xff]  }
 0x22d   :  { %5594 = vmatprep.subr.bf16.mxu1 %v8375_v57  ;;  %v8427_v57 = vld [vmem:[%s11612_s2 + $0xc68] ss:$16 sps:$4 sm:$0xff]  }
 0x22f   :  { %5628 = vmatpush1.bf16.msra.mxu0 %v8376_v62  ;;  %v8438_v62 = vld [vmem:[%s11612_s2 + $0xecc] ss:$16 sps:$4 sm:$0xff]  }
 0x230   :  { %5595 = vmatpush2.bf16.msra.mxu1 %v8373_v61  ;;  %5629 = vmatprep.subr.bf16.mxu0 %v8384_v16  ;;  %v8435_v61 = vld [vmem:[%s11612_s2 + $0xc4c] ss:$16 sps:$4 sm:$0xff]  }
 0x231   :  { %5596 = vmatprep.subr.bf16.mxu1 %v8381_v35 }
 0x233   :  { %5630 = vmatpush2.bf16.msra.mxu0 %v8382_v40  ;;  %v8436_v40 = vld [vmem:[%s11612_s2 + $0xec8] ss:$16 sps:$4 sm:$0xff]  }
 0x234   :  { %5597 = vmatpush2.bf16.msra.mxu1 %v8379_v26  ;;  %5631 = vmatprep.subr.bf16.mxu0 %v8390_v12  ;;  %v8433_v26 = vld [vmem:[%s11612_s2 + $0xc48] ss:$16 sps:$4 sm:$0xff]   ;;  %v8441_v12 = vld [vmem:[%s11612_s2 + $0xc2c] ss:$16 sps:$4 sm:$0xff]  }
 0x235   :  { %5598 = vmatprep.subr.bf16.mxu1 %v8387_v11 }
 0x237   :  { %5632 = vmatpush2.bf16.msra.mxu0 %v8388_v13 }
 0x238   :  { %5599 = vmatpush2.bf16.msra.mxu1 %v8385_v60  ;;  %5633 = vmatprep.subr.bf16.mxu0 %v8396_v15  ;;  %v8442_v15 = vld [vmem:[%s11612_s2 + $0xea8] ss:$16 sps:$4 sm:$0xff]  }
 0x239   :  { %5600 = vmatprep.subr.bf16.mxu1 %v8393_v14  ;;  %v8439_v14 = vld [vmem:[%s11612_s2 + $0xc28] ss:$16 sps:$4 sm:$0xff]  }
 0x23b   :  { %5634 = vmatpush2.bf16.msra.mxu0 %v8394_v32  ;;  %v8447_v32 = vld [vmem:[%s11612_s2 + $0xc0c] ss:$16 sps:$4 sm:$0xff]  }
 0x23c   :  { %5601 = vmatpush2.bf16.msra.mxu1 %v8391_v24  ;;  %5635 = vmatprep.subr.bf16.mxu0 %v8402_v19  ;;  %v8448_v19 = vld [vmem:[%s11612_s2 + $0xe88] ss:$16 sps:$4 sm:$0xff]  }
 0x23d   :  { %5602 = vmatprep.subr.bf16.mxu1 %v8399_v18  ;;  %v8445_v18 = vld [vmem:[%s11612_s2 + $0xc08] ss:$16 sps:$4 sm:$0xff]  }
 0x23f   :  { %5636 = vmatpush2.bf16.msra.mxu0 %v8400_v6  ;;  %v8456_v6 = vld [vmem:[%s11612_s2 + $0xe6c] ss:$16 sps:$4 sm:$0xff]  }
 0x240   :  { %5603 = vmatpush2.bf16.msra.mxu1 %v8397_v21  ;;  %5637 = vmatprep.subr.bf16.mxu0 %v8405_v27  ;;  %v8453_v21 = vld [vmem:[%s11612_s2 + $0xdec] ss:$16 sps:$4 sm:$0xff]   ;;  %v8451_v27 = vld [vmem:[%s11612_s2 + $0xde8] ss:$16 sps:$4 sm:$0xff]  }
 0x241   :  { %5654 = vmatprep.subr.bf16.mxu1 %v8408_v28  ;;  %v8454_v28 = vld [vmem:[%s11612_s2 + $0xe68] ss:$16 sps:$4 sm:$0xff]  }
 0x242   :  { %v5319_v33 = vpop.f32.mrf.mxu0 }
 0x243   :  { %v5360_v17 = vpop.f32.mrf.mxu1  ;;  %5605 = vmatmul.mubr.bf16.vlgmr.msra.gmra.mxu1 %v9482_v38  ;;  %v5320_v30 = vadd.f32 %v5319_v33, %v10599_v51  ;;  %5638 = vmatpush2.bf16.msra.mxu0 %v8403_v20  ;;  %v8417_v38 = vld [vmem:[%s11612_s2 + $0xb2c] ss:$16 sps:$4 sm:$0xff]  }
 0x244   :  { %5655 = vmatpush1.bf16.msra.mxu1 %v8406_v29  ;;  %v5321_v25 = vpop.f32.mrf.mxu0  ;;  %5639 = vmatprep.subr.bf16.mxu0 %v8411_v31  ;;  %v8420_v51 = vld [vmem:[%s11612_s2 + $0xcac] ss:$16 sps:$4 sm:$0xff]   ;;  %v8457_v31 = vld [vmem:[%s11612_s2 + $0xdc8] ss:$16 sps:$4 sm:$0xff]  }
 0x245   :  { %v5362_v22 = vpop.f32.mrf.mxu1  ;;  %5656 = vmatprep.subr.bf16.mxu1 %v8414_v34  ;;  %v5361_v47 = vadd.f32 %v5360_v17, %v5320_v30  ;;  %v5322_v23 = vadd.f32 %v5321_v25, %v10603_v59  ;;  %5686 = vmatprep.mubr.bf16.mxu1 %v9504_v42  ;;  %v8423_v42 = vld [vmem:[%s11612_s2 + $0xb0c] ss:$16 sps:$4 sm:$0xff]   ;;  %v8460_v34 = vld [vmem:[%s11612_s2 + $0xe48] ss:$16 sps:$4 sm:$0xff]  }
 0x246   :  { %v5323_v44 = vpop.f32.mrf.mxu0  ;;  %v8426_v59 = vld [vmem:[%s11612_s2 + $0xc8c] ss:$16 sps:$4 sm:$0xff]   ;;  %v8463_v30 = vld [vmem:[%s11612_s2 + $0xda8] ss:$16 sps:$4 sm:$0xff]  }
 0x247   :  { %v5364_v45 = vpop.f32.mrf.mxu1  ;;  %v5363_v46 = vadd.f32 %v5362_v22, %v5322_v23  ;;  %5640 = vmatpush2.bf16.msra.mxu0 %v8409_v36  ;;  %v8459_v20 = vld [vmem:[%s11612_s2 + $0xdcc] ss:$16 sps:$4 sm:$0xff]   ;;  %v8466_v36 = vld [vmem:[%s11612_s2 + $0xe28] ss:$16 sps:$4 sm:$0xff]  }
 0x248   :  { %5657 = vmatpush1.bf16.msra.mxu1 %v8412_v41  ;;  %v5324_v50 = vpop.f32.mrf.mxu0  ;;  %5641 = vmatprep.subr.bf16.mxu0 %v8417_v38  ;;  %v8462_v29 = vld [vmem:[%s11612_s2 + $0xe4c] ss:$16 sps:$4 sm:$0xff]   ;;  %v8469_v22 = vld [vmem:[%s11612_s2 + $0xd88] ss:$16 sps:$4 sm:$0xff]  }
 0x249   :  { %v5365_v7 = vpop.f32.mrf.mxu1  ;;  %5658 = vmatprep.subr.bf16.mxu1 %v8420_v51  ;;  %v8465_v33 = vld [vmem:[%s11612_s2 + $0xdac] ss:$16 sps:$4 sm:$0xff]   ;;  %v8472_v38 = vld [vmem:[%s11612_s2 + $0xe08] ss:$16 sps:$4 sm:$0xff]  }
 0x24a   :  { %v8468_v17 = vld [vmem:[%s11612_s2 + $0xe2c] ss:$16 sps:$4 sm:$0xff]   ;;  %v8475_v23 = vld [vmem:[%s11612_s2 + $0xd68] ss:$16 sps:$4 sm:$0xff]  }
 0x24b   :  { %5642 = vmatpush2.bf16.msra.mxu0 %v8415_v48  ;;  %v8471_v41 = vld [vmem:[%s11612_s2 + $0xd8c] ss:$16 sps:$4 sm:$0xff]   ;;  %v8478_v44 = vld [vmem:[%s11612_s2 + $0xfe8] ss:$16 sps:$4 sm:$0xff]  }
 0x24c   :  { %5659 = vmatpush1.bf16.msra.mxu1 %v8418_v49  ;;  %5643 = vmatprep.subr.bf16.mxu0 %v8423_v42  ;;  %v8474_v25 = vld [vmem:[%s11612_s2 + $0xe0c] ss:$16 sps:$4 sm:$0xff]   ;;  %v8481_v48 = vld [vmem:[%s11612_s2 + $0xd48] ss:$16 sps:$4 sm:$0xff]  }
 0x24d   :  { %5660 = vmatprep.subr.bf16.mxu1 %v8426_v59  ;;  %v8477_v51 = vld [vmem:[%s11612_s2 + $0xd6c] ss:$16 sps:$4 sm:$0xff]   ;;  %v8484_v49 = vld [vmem:[%s11612_s2 + $0xfc8] ss:$16 sps:$4 sm:$0xff]  }
 0x24e   :  { %v8483_v45 = vld [vmem:[%s11612_s2 + $0xd4c] ss:$16 sps:$4 sm:$0xff]   ;;  %v8487_v42 = vld [vmem:[%s11612_s2 + $0xd28] ss:$16 sps:$4 sm:$0xff]  }
 0x24f   :  { %5644 = vmatpush2.bf16.msra.mxu0 %v8421_v52  ;;  %v8489_v50 = vld [vmem:[%s11612_s2 + $0xd2c] ss:$16 sps:$4 sm:$0xff]   ;;  %v8490_v59 = vld [vmem:[%s11612_s2 + $0xfa8] ss:$16 sps:$4 sm:$0xff]  }
 0x250   :  { %5661 = vmatpush1.bf16.msra.mxu1 %v8424_v55  ;;  %5695 = vmatprep.subr.bf16.mxu0 %v8432_v37  ;;  %v8492_v7 = vld [vmem:[%s11612_s2 + $0xfac] ss:$16 sps:$4 sm:$0xff]   ;;  %v8496_v37 = vld [vmem:[%s11612_s2 + $0xf88] ss:$16 sps:$4 sm:$0xff]  }
 0x251   :  { %5662 = vmatprep.subr.bf16.mxu1 %v8429_v56  ;;  %v8495_v52 = vld [vmem:[%s11612_s2 + $0xd0c] ss:$16 sps:$4 sm:$0xff]   ;;  %v8493_v56 = vld [vmem:[%s11612_s2 + $0xd08] ss:$16 sps:$4 sm:$0xff]  }
 0x252   :  { %v5401_v35 = vpop.f32.mrf.mxu0  ;;  %5646 = vmatmul.mubr.bf16.vlgmr.msra.gmra.mxu0 %v9486_v39  ;;  %v8444_v39 = vld [vmem:[%s11612_s2 + $0xeac] ss:$16 sps:$4 sm:$0xff]  }
 0x253   :  { %v10840_v16 = vadd.f32 %v5401_v35, %v5361_v47  ;;  %5696 = vmatpush1.bf16.msra.mxu0 %v8430_v58  ;;  %5727 = vmatprep.mubr.bf16.mxu0 %v9508_v43  ;;  %v8450_v43 = vld [vmem:[%s11612_s2 + $0xe8c] ss:$16 sps:$4 sm:$0xff]  }
 0x254   :  { %5663 = vmatpush1.bf16.msra.mxu1 %v8427_v57  ;;  %v5403_v11 = vpop.f32.mrf.mxu0  ;;  %5697 = vmatprep.subr.bf16.mxu0 %v8438_v62  ;;  %v8480_v47 = vld [vmem:[%s11612_s2 + $0xfec] ss:$16 sps:$4 sm:$0xff]   ;;  %v8502_v62 = vld [vmem:[%s11612_s2 + $0x10e8] ss:$16 sps:$4 sm:$0xff]  }
 0x255   :  { %5664 = vmatprep.subr.bf16.mxu1 %v8435_v61  ;;  %v10854_v60 = vadd.f32 %v5403_v11, %v5363_v46  ;;  %v8486_v46 = vld [vmem:[%s11612_s2 + $0xfcc] ss:$16 sps:$4 sm:$0xff]   ;;  %v8499_v61 = vld [vmem:[%s11612_s2 + $0xf68] ss:$16 sps:$4 sm:$0xff]  }
 0x256   :  { %v5405_v13 = vpop.f32.mrf.mxu0  ;;  %v8498_v55 = vld [vmem:[%s11612_s2 + $0xf8c] ss:$16 sps:$4 sm:$0xff]   ;;  %v8505_v11 = vld [vmem:[%s11612_s2 + $0xf48] ss:$16 sps:$4 sm:$0xff]  }
 0x257   :  { %5698 = vmatpush1.bf16.msra.mxu0 %v8436_v40  ;;  %v8501_v57 = vld [vmem:[%s11612_s2 + $0xf6c] ss:$16 sps:$4 sm:$0xff]  }
 0x258   :  { %5665 = vmatpush1.bf16.msra.mxu1 %v8433_v26  ;;  %v5406_v24 = vpop.f32.mrf.mxu0  ;;  %5699 = vmatprep.subr.bf16.mxu0 %v8444_v39  ;;  %v8504_v58 = vld [vmem:[%s11612_s2 + $0x10ec] ss:$16 sps:$4 sm:$0xff]  }
 0x259   :  { %5666 = vmatprep.subr.bf16.mxu1 %v8441_v12  ;;  %v8507_v35 = vld [vmem:[%s11612_s2 + $0xf4c] ss:$16 sps:$4 sm:$0xff]   ;;  %v8508_v12 = vld [vmem:[%s11612_s2 + $0x10c8] ss:$16 sps:$4 sm:$0xff]  }
 0x25a   :  { %v8510_v26 = vld [vmem:[%s11612_s2 + $0x10cc] ss:$16 sps:$4 sm:$0xff]   ;;  %v8514_v24 = vld [vmem:[%s11612_s2 + $0x10a8] ss:$16 sps:$4 sm:$0xff]  }
 0x25b   :  { %5700 = vmatpush1.bf16.msra.mxu0 %v8442_v15  ;;  %v8513_v13 = vld [vmem:[%s11612_s2 + $0xf2c] ss:$16 sps:$4 sm:$0xff]   ;;  %v8511_v15 = vld [vmem:[%s11612_s2 + $0xf28] ss:$16 sps:$4 sm:$0xff]  }
 0x25c   :  { %5667 = vmatpush1.bf16.msra.mxu1 %v8439_v14  ;;  %5701 = vmatprep.subr.bf16.mxu0 %v8450_v43  ;;  %v8519_v43 = vld [vmem:[%s11612_s2 + $0xf0c] ss:$16 sps:$4 sm:$0xff]  }
 0x25d   :  { %5668 = vmatprep.subr.bf16.mxu1 %v8447_v32 }
 0x25f   :  { %5702 = vmatpush1.bf16.msra.mxu0 %v8448_v19  ;;  %v858_v19 = vsub.s32 3, %v9679_v54 }
 0x260   :  { %5669 = vmatpush1.bf16.msra.mxu1 %v8445_v18  ;;  %5703 = vmatprep.subr.bf16.mxu0 %v8456_v6  ;;  %v854_v18 = vsub.s32 2, %v9679_v54  ;;  %v8520_v6 = vld [vmem:[%s11612_s2 + $0x1088] ss:$16 sps:$4 sm:$0xff]   ;;  %v8528_v54 = vld [vmem:[%s11612_s2 + $0x12ec] ss:$16 sps:$4 sm:$0xff]  }
 0x261   :  { %5670 = vmatprep.subr.bf16.mxu1 %v8453_v21  ;;  %v8517_v21 = vld [vmem:[%s11612_s2 + $0xf08] ss:$16 sps:$4 sm:$0xff]  }
 0x263   :  { %5704 = vmatpush1.bf16.msra.mxu0 %v8454_v28  ;;  %v8747_v28 = vld [vmem:[%s11614_s3] sm:$0xf] }
 0x264   :  { %5671 = vmatpush2.bf16.msra.mxu1 %v8451_v27  ;;  %5705 = vmatprep.subr.bf16.mxu0 %v8462_v29  ;;  %v8525_v27 = vld [vmem:[%s11612_s2 + $0x106c] ss:$16 sps:$4 sm:$0xff]   ;;  %v859_v29 = vrot.slane %v8747_v28, %v858_v19 }
 0x265   :  { %5672 = vmatprep.subr.bf16.mxu1 %v8459_v20  ;;  %v855_v20 = vrot.slane %v8747_v28, %v854_v18  ;;  %v8585_v18 = vld [vmem:[%s11612_s2 + $0x112c] ss:$16 sps:$4 sm:$0xff]   ;;  %v8589_v28 = vld [vmem:[%s11612_s2 + $0x1108] ss:$16 sps:$4 sm:$0xff]  }
 0x266   :  { %v8588_v19 = vld [vmem:[%s11612_s2 + $0x13ac] ss:$16 sps:$4 sm:$0xff]  }
 0x267   :  { %5706 = vmatpush1.bf16.msra.mxu0 %v8460_v34  ;;  %v8526_v34 = vld [vmem:[%s11612_s2 + $0x12e8] ss:$16 sps:$4 sm:$0xff]  }
 0x268   :  { %5673 = vmatpush2.bf16.msra.mxu1 %v8457_v31  ;;  %5707 = vmatprep.subr.bf16.mxu0 %v8468_v17  ;;  %v8523_v31 = vld [vmem:[%s11612_s2 + $0x1068] ss:$16 sps:$4 sm:$0xff]   ;;  %v8534_v17 = vld [vmem:[%s11612_s2 + $0x12cc] ss:$16 sps:$4 sm:$0xff]  }
 0x269   :  { %5674 = vmatprep.subr.bf16.mxu1 %v8465_v33  ;;  %v8531_v33 = vld [vmem:[%s11612_s2 + $0x104c] ss:$16 sps:$4 sm:$0xff]  }
 0x26b   :  { %5708 = vmatpush1.bf16.msra.mxu0 %v8466_v36  ;;  %v8529_v36 = vld [vmem:[%s11612_s2 + $0x1048] ss:$16 sps:$4 sm:$0xff]  }
 0x26c   :  { %5675 = vmatpush2.bf16.msra.mxu1 %v8463_v30  ;;  %5709 = vmatprep.subr.bf16.mxu0 %v8474_v25 }
 0x26d   :  { %5676 = vmatprep.subr.bf16.mxu1 %v8471_v41  ;;  %v8532_v41 = vld [vmem:[%s11612_s2 + $0x12c8] ss:$16 sps:$4 sm:$0xff]  }
 0x26f   :  { %5710 = vmatpush1.bf16.msra.mxu0 %v8472_v38 }
 0x270   :  { %5677 = vmatpush2.bf16.msra.mxu1 %v8469_v22  ;;  %5711 = vmatprep.subr.bf16.mxu0 %v8480_v47  ;;  %v8537_v22 = vld [vmem:[%s11612_s2 + $0x102c] ss:$16 sps:$4 sm:$0xff]  }
 0x271   :  { %5678 = vmatprep.subr.bf16.mxu1 %v8477_v51 }
 0x273   :  { %5712 = vmatpush2.bf16.msra.mxu0 %v8478_v44 }
 0x274   :  { %5679 = vmatpush2.bf16.msra.mxu1 %v8475_v23  ;;  %5713 = vmatprep.subr.bf16.mxu0 %v8486_v46  ;;  %v8540_v23 = vld [vmem:[%s11612_s2 + $0x12ac] ss:$16 sps:$4 sm:$0xff]  }
 0x275   :  { %5680 = vmatprep.subr.bf16.mxu1 %v8483_v45  ;;  %v8538_v45 = vld [vmem:[%s11612_s2 + $0x12a8] ss:$16 sps:$4 sm:$0xff]  }
 0x277   :  { %5714 = vmatpush2.bf16.msra.mxu0 %v8484_v49  ;;  %v8543_v49 = vld [vmem:[%s11612_s2 + $0x100c] ss:$16 sps:$4 sm:$0xff]  }
 0x278   :  { %5681 = vmatpush2.bf16.msra.mxu1 %v8481_v48  ;;  %5715 = vmatprep.subr.bf16.mxu0 %v8492_v7  ;;  %v8541_v7 = vld [vmem:[%s11612_s2 + $0x1008] ss:$16 sps:$4 sm:$0xff]  }
 0x279   :  { %5682 = vmatprep.subr.bf16.mxu1 %v8489_v50  ;;  %v8546_v50 = vld [vmem:[%s11612_s2 + $0x128c] ss:$16 sps:$4 sm:$0xff]  }
 0x27b   :  { %5716 = vmatpush2.bf16.msra.mxu0 %v8490_v59  ;;  %v8552_v59 = vld [vmem:[%s11612_s2 + $0x126c] ss:$16 sps:$4 sm:$0xff]  }
 0x27c   :  { %5683 = vmatpush2.bf16.msra.mxu1 %v8487_v42  ;;  %5717 = vmatprep.subr.bf16.mxu0 %v8498_v55  ;;  %v8549_v42 = vld [vmem:[%s11612_s2 + $0x11ec] ss:$16 sps:$4 sm:$0xff]   ;;  %v8550_v55 = vld [vmem:[%s11612_s2 + $0x1268] ss:$16 sps:$4 sm:$0xff]  }
 0x27d   :  { %5684 = vmatprep.subr.bf16.mxu1 %v8495_v52  ;;  %v8547_v52 = vld [vmem:[%s11612_s2 + $0x11e8] ss:$16 sps:$4 sm:$0xff]  }
 0x27f   :  { %5718 = vmatpush2.bf16.msra.mxu0 %v8496_v37  ;;  %v8558_v37 = vld [vmem:[%s11612_s2 + $0x124c] ss:$16 sps:$4 sm:$0xff]  }
 0x280   :  { %5685 = vmatpush2.bf16.msra.mxu1 %v8493_v56  ;;  %5719 = vmatprep.subr.bf16.mxu0 %v8501_v57  ;;  %v8555_v56 = vld [vmem:[%s11612_s2 + $0x11cc] ss:$16 sps:$4 sm:$0xff]   ;;  %v8553_v57 = vld [vmem:[%s11612_s2 + $0x11c8] ss:$16 sps:$4 sm:$0xff]  }
 0x281   :  { %5736 = vmatprep.subr.bf16.mxu1 %v8504_v58  ;;  %v8556_v58 = vld [vmem:[%s11612_s2 + $0x1248] ss:$16 sps:$4 sm:$0xff]  }
 0x283   :  { %v5442_v40 = vpop.f32.mrf.mxu1  ;;  %5687 = vmatmul.mubr.bf16.vlgmr.msra.gmra.mxu1 %v9706_v0  ;;  %5720 = vmatpush2.bf16.msra.mxu0 %v8499_v61  ;;  %v8516_v0 = vld [vmem:[%s11612_s2 + $0x10ac] ss:$16 sps:$4 sm:$0xff]  }
 0x284   :  { %5737 = vmatpush1.bf16.msra.mxu1 %v8502_v62  ;;  %5721 = vmatprep.subr.bf16.mxu0 %v8507_v35  ;;  %v5443_v30 = vadd.f32 %v5442_v40, %v855_v20  ;;  %v8561_v61 = vld [vmem:[%s11612_s2 + $0x11ac] ss:$16 sps:$4 sm:$0xff]   ;;  %v8559_v35 = vld [vmem:[%s11612_s2 + $0x11a8] ss:$16 sps:$4 sm:$0xff]  }
 0x285   :  { %v5444_v39 = vpop.f32.mrf.mxu1  ;;  %5738 = vmatprep.subr.bf16.mxu1 %v8510_v26  ;;  %5768 = vmatprep.mubr.bf16.mxu1 %v9733_v9  ;;  %v8522_v9 = vld [vmem:[%s11612_s2 + $0x108c] ss:$16 sps:$4 sm:$0xff]   ;;  %v8562_v26 = vld [vmem:[%s11612_s2 + $0x1228] ss:$16 sps:$4 sm:$0xff]  }
 0x286   :  { %v5445_v38 = vadd.f32 %v5444_v39, %v859_v29  ;;  %v8564_v62 = vld [vmem:[%s11612_s2 + $0x122c] ss:$16 sps:$4 sm:$0xff]   ;;  %v8568_v39 = vld [vmem:[%s11612_s2 + $0x1208] ss:$16 sps:$4 sm:$0xff]  }
 0x287   :  { %v5446_v14 = vpop.f32.mrf.mxu1  ;;  %5722 = vmatpush2.bf16.msra.mxu0 %v8505_v11  ;;  %v8567_v40 = vld [vmem:[%s11612_s2 + $0x118c] ss:$16 sps:$4 sm:$0xff]   ;;  %v8592_v20 = vld [vmem:[%s11612_s2 + $0x1388] ss:$16 sps:$4 sm:$0xff]  }
 0x288   :  { %5739 = vmatpush1.bf16.msra.mxu1 %v8508_v12  ;;  %5723 = vmatprep.subr.bf16.mxu0 %v8513_v13  ;;  %v8570_v11 = vld [vmem:[%s11612_s2 + $0x120c] ss:$16 sps:$4 sm:$0xff]   ;;  %v8565_v12 = vld [vmem:[%s11612_s2 + $0x1188] ss:$16 sps:$4 sm:$0xff]  }
 0x289   :  { %v5447_v32 = vpop.f32.mrf.mxu1  ;;  %5740 = vmatprep.subr.bf16.mxu1 %v8516_v0  ;;  %v8573_v13 = vld [vmem:[%s11612_s2 + $0x116c] ss:$16 sps:$4 sm:$0xff]   ;;  %v8571_v14 = vld [vmem:[%s11612_s2 + $0x1168] ss:$16 sps:$4 sm:$0xff]  }
 0x28a   :  { %v8576_v0 = vld [vmem:[%s11612_s2 + $0x13ec] ss:$16 sps:$4 sm:$0xff]  }
 0x28b   :  { %5724 = vmatpush2.bf16.msra.mxu0 %v8511_v15  ;;  %v8574_v15 = vld [vmem:[%s11612_s2 + $0x13e8] ss:$16 sps:$4 sm:$0xff]   ;;  %v8582_v32 = vld [vmem:[%s11612_s2 + $0x13cc] ss:$16 sps:$4 sm:$0xff]  }
 0x28c   :  { %5741 = vmatpush1.bf16.msra.mxu1 %v8514_v24  ;;  %5725 = vmatprep.subr.bf16.mxu0 %v8519_v43  ;;  %v8579_v24 = vld [vmem:[%s11612_s2 + $0x114c] ss:$16 sps:$4 sm:$0xff]   ;;  %v8577_v43 = vld [vmem:[%s11612_s2 + $0x1148] ss:$16 sps:$4 sm:$0xff]  }
 0x28d   :  { %5742 = vmatprep.subr.bf16.mxu1 %v8522_v9  ;;  %v8580_v9 = vld [vmem:[%s11612_s2 + $0x13c8] ss:$16 sps:$4 sm:$0xff]   ;;  %v8597_v29 = vld [vmem:[%s11612_s2 + $0x136c] ss:$16 sps:$4 sm:$0xff]  }
 0x28f   :  { %5726 = vmatpush2.bf16.msra.mxu0 %v8517_v21  ;;  %v8583_v21 = vld [vmem:[%s11612_s2 + $0x1128] ss:$16 sps:$4 sm:$0xff]  }
 0x290   :  { %5743 = vmatpush1.bf16.msra.mxu1 %v8520_v6  ;;  %5777 = vmatprep.subr.bf16.mxu0 %v8528_v54  ;;  %v8586_v6 = vld [vmem:[%s11612_s2 + $0x13a8] ss:$16 sps:$4 sm:$0xff]   ;;  %v8594_v54 = vld [vmem:[%s11612_s2 + $0x138c] ss:$16 sps:$4 sm:$0xff]  }
 0x291   :  { %5744 = vmatprep.subr.bf16.mxu1 %v8525_v27  ;;  %v8591_v27 = vld [vmem:[%s11612_s2 + $0x110c] ss:$16 sps:$4 sm:$0xff]  }
 0x292   :  { %v5483_v25 = vpop.f32.mrf.mxu0  ;;  %5728 = vmatmul.mubr.bf16.vlgmr.msra.gmra.mxu0 %v9710_v1  ;;  %v8535_v1 = vld [vmem:[%s11612_s2 + $0x1028] ss:$16 sps:$4 sm:$0xff]  }
 0x293   :  { %v11054_v51 = vadd.f32 %v5483_v25, %v5443_v30  ;;  %5778 = vmatpush1.bf16.msra.mxu0 %v8526_v34  ;;  %5809 = vmatprep.mubr.bf16.mxu0 %v9737_v10  ;;  %v8544_v10 = vld [vmem:[%s11612_s2 + $0x1288] ss:$16 sps:$4 sm:$0xff]   ;;  %v8606_v30 = vld [vmem:[%s11612_s2 + $0x14cc] ss:$16 sps:$4 sm:$0xff]  }
 0x294   :  { %5745 = vmatpush1.bf16.msra.mxu1 %v8523_v31  ;;  %v5485_v47 = vpop.f32.mrf.mxu0  ;;  %5779 = vmatprep.subr.bf16.mxu0 %v8534_v17  ;;  %v8600_v31 = vld [vmem:[%s11612_s2 + $0x14ec] ss:$16 sps:$4 sm:$0xff]   ;;  %v8595_v34 = vld [vmem:[%s11612_s2 + $0x1368] ss:$16 sps:$4 sm:$0xff]  }
 0x295   :  { %5746 = vmatprep.subr.bf16.mxu1 %v8531_v33  ;;  %v11059_v44 = vadd.f32 %v5485_v47, %v5445_v38  ;;  %v8598_v33 = vld [vmem:[%s11612_s2 + $0x14e8] ss:$16 sps:$4 sm:$0xff]   ;;  %v8603_v17 = vld [vmem:[%s11612_s2 + $0x134c] ss:$16 sps:$4 sm:$0xff]  }
 0x296   :  { %v5487_v46 = vpop.f32.mrf.mxu0  ;;  %v8601_v25 = vld [vmem:[%s11612_s2 + $0x1348] ss:$16 sps:$4 sm:$0xff]   ;;  %v8609_v47 = vld [vmem:[%s11612_s2 + $0x132c] ss:$16 sps:$4 sm:$0xff]  }
 0x297   :  { %5780 = vmatpush1.bf16.msra.mxu0 %v8532_v41 }
 0x298   :  { %5747 = vmatpush1.bf16.msra.mxu1 %v8529_v36  ;;  %v5488_v48 = vpop.f32.mrf.mxu0  ;;  %5781 = vmatprep.subr.bf16.mxu0 %v8540_v23 }
 0x299   :  { %5748 = vmatprep.subr.bf16.mxu1 %v8537_v22  ;;  %v8604_v22 = vld [vmem:[%s11612_s2 + $0x14c8] ss:$16 sps:$4 sm:$0xff]  }
 0x29a   :  { %v8613_v48 = vld [vmem:[%s11612_s2 + $0x1308] ss:$16 sps:$4 sm:$0xff]  }
 0x29b   :  { %5782 = vmatpush1.bf16.msra.mxu0 %v8538_v45  ;;  %v8610_v45 = vld [vmem:[%s11612_s2 + $0x14a8] ss:$16 sps:$4 sm:$0xff]  }
 0x29c   :  { %5749 = vmatpush1.bf16.msra.mxu1 %v8535_v1  ;;  %5783 = vmatprep.subr.bf16.mxu0 %v8546_v50  ;;  %v8607_v1 = vld [vmem:[%s11612_s2 + $0x1328] ss:$16 sps:$4 sm:$0xff]   ;;  %v8621_v50 = vld [vmem:[%s11612_s2 + $0x146c] ss:$16 sps:$4 sm:$0xff]  }
 0x29d   :  { %5750 = vmatprep.subr.bf16.mxu1 %v8543_v49  ;;  %v8616_v49 = vld [vmem:[%s11612_s2 + $0x1488] ss:$16 sps:$4 sm:$0xff]  }
 0x29f   :  { %5784 = vmatpush1.bf16.msra.mxu0 %v8544_v10  ;;  %v8619_v10 = vld [vmem:[%s11612_s2 + $0x1468] ss:$16 sps:$4 sm:$0xff]  }
 0x2a0   :  { %5751 = vmatpush1.bf16.msra.mxu1 %v8541_v7  ;;  %5785 = vmatprep.subr.bf16.mxu0 %v8552_v59  ;;  %v8624_v7 = vld [vmem:[%s11612_s2 + $0x16ec] ss:$16 sps:$4 sm:$0xff]  }
 0x2a1   :  { %5752 = vmatprep.subr.bf16.mxu1 %v8549_v42  ;;  %v8622_v42 = vld [vmem:[%s11612_s2 + $0x16e8] ss:$16 sps:$4 sm:$0xff]   ;;  %v8627_v59 = vld [vmem:[%s11612_s2 + $0x144c] ss:$16 sps:$4 sm:$0xff]  }
 0x2a3   :  { %5786 = vmatpush1.bf16.msra.mxu0 %v8550_v55 }
 0x2a4   :  { %5753 = vmatpush2.bf16.msra.mxu1 %v8547_v52  ;;  %5787 = vmatprep.subr.bf16.mxu0 %v8558_v37  ;;  %v8630_v52 = vld [vmem:[%s11612_s2 + $0x16cc] ss:$16 sps:$4 sm:$0xff]   ;;  %v8625_v37 = vld [vmem:[%s11612_s2 + $0x1448] ss:$16 sps:$4 sm:$0xff]  }
 0x2a5   :  { %5754 = vmatprep.subr.bf16.mxu1 %v8555_v56 }
 0x2a7   :  { %5788 = vmatpush1.bf16.msra.mxu0 %v8556_v58 }
 0x2a8   :  { %5755 = vmatpush2.bf16.msra.mxu1 %v8553_v57  ;;  %5789 = vmatprep.subr.bf16.mxu0 %v8564_v62  ;;  %v8628_v57 = vld [vmem:[%s11612_s2 + $0x16c8] ss:$16 sps:$4 sm:$0xff]  }
 0x2a9   :  { %5756 = vmatprep.subr.bf16.mxu1 %v8561_v61  ;;  %v8633_v61 = vld [vmem:[%s11612_s2 + $0x142c] ss:$16 sps:$4 sm:$0xff]  }
 0x2ab   :  { %5790 = vmatpush1.bf16.msra.mxu0 %v8562_v26  ;;  %v8631_v26 = vld [vmem:[%s11612_s2 + $0x1428] ss:$16 sps:$4 sm:$0xff]  }
 0x2ac   :  { %5757 = vmatpush2.bf16.msra.mxu1 %v8559_v35  ;;  %5791 = vmatprep.subr.bf16.mxu0 %v8570_v11 }
 0x2ad   :  { %5758 = vmatprep.subr.bf16.mxu1 %v8567_v40  ;;  %v8634_v40 = vld [vmem:[%s11612_s2 + $0x16a8] ss:$16 sps:$4 sm:$0xff]  }
 0x2af   :  { %5792 = vmatpush1.bf16.msra.mxu0 %v8568_v39  ;;  %v8637_v39 = vld [vmem:[%s11612_s2 + $0x1408] ss:$16 sps:$4 sm:$0xff]  }
 0x2b0   :  { %5759 = vmatpush2.bf16.msra.mxu1 %v8565_v12  ;;  %5793 = vmatprep.subr.bf16.mxu0 %v8576_v0  ;;  %v8639_v12 = vld [vmem:[%s11612_s2 + $0x140c] ss:$16 sps:$4 sm:$0xff]  }
 0x2b1   :  { %5760 = vmatprep.subr.bf16.mxu1 %v8573_v13  ;;  %v8640_v13 = vld [vmem:[%s11612_s2 + $0x1688] ss:$16 sps:$4 sm:$0xff]   ;;  %v8645_v0 = vld [vmem:[%s11612_s2 + $0x15ec] ss:$16 sps:$4 sm:$0xff]  }
 0x2b3   :  { %5794 = vmatpush2.bf16.msra.mxu0 %v8574_v15  ;;  %v8643_v15 = vld [vmem:[%s11612_s2 + $0x15e8] ss:$16 sps:$4 sm:$0xff]  }
 0x2b4   :  { %5761 = vmatpush2.bf16.msra.mxu1 %v8571_v14  ;;  %5795 = vmatprep.subr.bf16.mxu0 %v8582_v32  ;;  %v8648_v14 = vld [vmem:[%s11612_s2 + $0x166c] ss:$16 sps:$4 sm:$0xff]  }
 0x2b5   :  { %5762 = vmatprep.subr.bf16.mxu1 %v8579_v24  ;;  %v8646_v24 = vld [vmem:[%s11612_s2 + $0x1668] ss:$16 sps:$4 sm:$0xff]   ;;  %v8651_v32 = vld [vmem:[%s11612_s2 + $0x15cc] ss:$16 sps:$4 sm:$0xff]  }
 0x2b7   :  { %5796 = vmatpush2.bf16.msra.mxu0 %v8580_v9  ;;  %v8649_v9 = vld [vmem:[%s11612_s2 + $0x15c8] ss:$16 sps:$4 sm:$0xff]  }
 0x2b8   :  { %5763 = vmatpush2.bf16.msra.mxu1 %v8577_v43  ;;  %5797 = vmatprep.subr.bf16.mxu0 %v8588_v19  ;;  %v8654_v43 = vld [vmem:[%s11612_s2 + $0x164c] ss:$16 sps:$4 sm:$0xff]  }
 0x2b9   :  { %5764 = vmatprep.subr.bf16.mxu1 %v8585_v18  ;;  %v8652_v18 = vld [vmem:[%s11612_s2 + $0x1648] ss:$16 sps:$4 sm:$0xff]   ;;  %v8657_v19 = vld [vmem:[%s11612_s2 + $0x15ac] ss:$16 sps:$4 sm:$0xff]  }
 0x2bb   :  { %5798 = vmatpush2.bf16.msra.mxu0 %v8586_v6  ;;  %v8655_v6 = vld [vmem:[%s11612_s2 + $0x15a8] ss:$16 sps:$4 sm:$0xff]  }
 0x2bc   :  { %5765 = vmatpush2.bf16.msra.mxu1 %v8583_v21  ;;  %5799 = vmatprep.subr.bf16.mxu0 %v8594_v54  ;;  %v8660_v21 = vld [vmem:[%s11612_s2 + $0x162c] ss:$16 sps:$4 sm:$0xff]  }
 0x2bd   :  { %5766 = vmatprep.subr.bf16.mxu1 %v8591_v27  ;;  %v8658_v27 = vld [vmem:[%s11612_s2 + $0x1628] ss:$16 sps:$4 sm:$0xff]   ;;  %v8663_v54 = vld [vmem:[%s11612_s2 + $0x158c] ss:$16 sps:$4 sm:$0xff]  }
 0x2bf   :  { %5800 = vmatpush2.bf16.msra.mxu0 %v8592_v20  ;;  %v8661_v20 = vld [vmem:[%s11612_s2 + $0x1588] ss:$16 sps:$4 sm:$0xff]  }
 0x2c0   :  { %5767 = vmatpush2.bf16.msra.mxu1 %v8589_v28  ;;  %5801 = vmatprep.subr.bf16.mxu0 %v8597_v29  ;;  %v8666_v28 = vld [vmem:[%s11612_s2 + $0x160c] ss:$16 sps:$4 sm:$0xff]   ;;  %v8664_v29 = vld [vmem:[%s11612_s2 + $0x1608] ss:$16 sps:$4 sm:$0xff]  }
 0x2c1   :  { %5818 = vmatprep.subr.bf16.mxu1 %v8600_v31  ;;  %v8669_v31 = vld [vmem:[%s11612_s2 + $0x156c] ss:$16 sps:$4 sm:$0xff]  }
 0x2c3   :  { %v5524_v36 = vpop.f32.mrf.mxu1  ;;  %5769 = vmatmul.mubr.bf16.vlgmr.msra.gmra.mxu1 %v9946_v63  ;;  %5802 = vmatpush2.bf16.msra.mxu0 %v8595_v34  ;;  %v8612_v63 = vld [vmem:[%s11612_s2 + $0x14ac] ss:$16 sps:$4 sm:$0xff]  }
 0x2c4   :  { %v5525_v41 = vadd.f32 %v5524_v36, %v11054_v51  ;;  %5819 = vmatpush1.bf16.msra.mxu1 %v8598_v33  ;;  %5803 = vmatprep.subr.bf16.mxu0 %v8603_v17  ;;  %v8672_v34 = vld [vmem:[%s11612_s2 + $0x17ec] ss:$16 sps:$4 sm:$0xff]   ;;  %v8667_v33 = vld [vmem:[%s11612_s2 + $0x1568] ss:$16 sps:$4 sm:$0xff]  }
 0x2c5   :  { %v5526_v38 = vpop.f32.mrf.mxu1  ;;  %5820 = vmatprep.subr.bf16.mxu1 %v8606_v30  ;;  %5850 = vmatprep.mubr.bf16.mxu1 %v9966_v5  ;;  %v8618_v5 = vld [vmem:[%s11612_s2 + $0x148c] ss:$16 sps:$4 sm:$0xff]   ;;  %v8670_v17 = vld [vmem:[%s11612_s2 + $0x17e8] ss:$16 sps:$4 sm:$0xff]  }
 0x2c6   :  { %v5527_v51 = vadd.f32 %v5526_v38, %v11059_v44  ;;  %v8615_v44 = vld [vmem:[%s11612_s2 + $0x130c] ss:$16 sps:$4 sm:$0xff]  }
 0x2c7   :  { %v5528_v23 = vpop.f32.mrf.mxu1  ;;  %5804 = vmatpush2.bf16.msra.mxu0 %v8601_v25  ;;  %v8675_v30 = vld [vmem:[%s11612_s2 + $0x154c] ss:$16 sps:$4 sm:$0xff]   ;;  %v8676_v25 = vld [vmem:[%s11612_s2 + $0x17c8] ss:$16 sps:$4 sm:$0xff]  }
 0x2c8   :  { %5821 = vmatpush1.bf16.msra.mxu1 %v8604_v22  ;;  %5805 = vmatprep.subr.bf16.mxu0 %v8609_v47  ;;  %v8678_v36 = vld [vmem:[%s11612_s2 + $0x17cc] ss:$16 sps:$4 sm:$0xff]   ;;  %v8679_v47 = vld [vmem:[%s11612_s2 + $0x1528] ss:$16 sps:$4 sm:$0xff]  }
 0x2c9   :  { %v5529_v46 = vpop.f32.mrf.mxu1  ;;  %5822 = vmatprep.subr.bf16.mxu1 %v8612_v63  ;;  %v8681_v22 = vld [vmem:[%s11612_s2 + $0x152c] ss:$16 sps:$4 sm:$0xff]   ;;  %v8682_v63 = vld [vmem:[%s11612_s2 + $0x17a8] ss:$16 sps:$4 sm:$0xff]  }
 0x2ca   :  { %v8684_v38 = vld [vmem:[%s11612_s2 + $0x17ac] ss:$16 sps:$4 sm:$0xff]  }
 0x2cb   :  { %5806 = vmatpush2.bf16.msra.mxu0 %v8607_v1  ;;  %v8690_v23 = vld [vmem:[%s11612_s2 + $0x178c] ss:$16 sps:$4 sm:$0xff]   ;;  %v8685_v1 = vld [vmem:[%s11612_s2 + $0x1508] ss:$16 sps:$4 sm:$0xff]  }
 0x2cc   :  { %5823 = vmatpush1.bf16.msra.mxu1 %v8610_v45  ;;  %5807 = vmatprep.subr.bf16.mxu0 %v8615_v44  ;;  %v8688_v45 = vld [vmem:[%s11612_s2 + $0x1788] ss:$16 sps:$4 sm:$0xff]   ;;  %v8693_v46 = vld [vmem:[%s11612_s2 + $0x176c] ss:$16 sps:$4 sm:$0xff]  }
 0x2cd   :  { %5824 = vmatprep.subr.bf16.mxu1 %v8618_v5  ;;  %v8696_v44 = vld [vmem:[%s11612_s2 + $0x186c] ss:$16 sps:$4 sm:$0xff]   ;;  %v8691_v5 = vld [vmem:[%s11612_s2 + $0x1768] ss:$16 sps:$4 sm:$0xff]  }
 0x2cf   :  { %5808 = vmatpush2.bf16.msra.mxu0 %v8613_v48  ;;  %v8694_v48 = vld [vmem:[%s11612_s2 + $0x1868] ss:$16 sps:$4 sm:$0xff]  }
 0x2d0   :  { %5825 = vmatpush1.bf16.msra.mxu1 %v8616_v49  ;;  %5859 = vmatprep.subr.bf16.mxu0 %v8624_v7  ;;  %v8699_v49 = vld [vmem:[%s11612_s2 + $0x174c] ss:$16 sps:$4 sm:$0xff]  }
 0x2d1   :  { %5826 = vmatprep.subr.bf16.mxu1 %v8621_v50  ;;  %v8702_v50 = vld [vmem:[%s11612_s2 + $0x184c] ss:$16 sps:$4 sm:$0xff]  }
 0x2d2   :  { %v5565_v55 = vpop.f32.mrf.mxu0  ;;  %5810 = vmatmul.mubr.bf16.vlgmr.msra.gmra.mxu0 %v9950_v4  ;;  %v8636_v4 = vld [vmem:[%s11612_s2 + $0x16ac] ss:$16 sps:$4 sm:$0xff]  }
 0x2d3   :  { %v11247_v56 = vadd.f32 %v5565_v55, %v5525_v41  ;;  %5860 = vmatpush1.bf16.msra.mxu0 %v8622_v42  ;;  %5891 = vmatprep.mubr.bf16.mxu0 %v9970_v8  ;;  %v8642_v8 = vld [vmem:[%s11612_s2 + $0x168c] ss:$16 sps:$4 sm:$0xff]   ;;  %v8673_v41 = vld [vmem:[%s11612_s2 + $0x1548] ss:$16 sps:$4 sm:$0xff]  }
 0x2d4   :  { %5827 = vmatpush1.bf16.msra.mxu1 %v8619_v10  ;;  %v5567_v58 = vpop.f32.mrf.mxu0  ;;  %5861 = vmatprep.subr.bf16.mxu0 %v8630_v52  ;;  %v8697_v42 = vld [vmem:[%s11612_s2 + $0x1748] ss:$16 sps:$4 sm:$0xff]   ;;  %v8705_v55 = vld [vmem:[%s11612_s2 + $0x172c] ss:$16 sps:$4 sm:$0xff]  }
 0x2d5   :  { %5828 = vmatprep.subr.bf16.mxu1 %v8627_v59  ;;  %v11261_v62 = vadd.f32 %v5567_v58, %v5527_v51  ;;  %v8687_v51 = vld [vmem:[%s11612_s2 + $0x150c] ss:$16 sps:$4 sm:$0xff]   ;;  %v8700_v59 = vld [vmem:[%s11612_s2 + $0x1848] ss:$16 sps:$4 sm:$0xff]  }
 0x2d6   :  { %v5569_v35 = vpop.f32.mrf.mxu0  ;;  %v8706_v58 = vld [vmem:[%s11612_s2 + $0x1828] ss:$16 sps:$4 sm:$0xff]  }
 0x2d7   :  { %5862 = vmatpush1.bf16.msra.mxu0 %v8628_v57  ;;  %v8703_v57 = vld [vmem:[%s11612_s2 + $0x1728] ss:$16 sps:$4 sm:$0xff]  }
 0x2d8   :  { %5829 = vmatpush1.bf16.msra.mxu1 %v8625_v37  ;;  %v5570_v11 = vpop.f32.mrf.mxu0  ;;  %5863 = vmatprep.subr.bf16.mxu0 %v8636_v4  ;;  %v8711_v4 = vld [vmem:[%s11612_s2 + $0x170c] ss:$16 sps:$4 sm:$0xff]   ;;  %v8712_v35 = vld [vmem:[%s11612_s2 + $0x1808] ss:$16 sps:$4 sm:$0xff]  }
 0x2d9   :  { %5830 = vmatprep.subr.bf16.mxu1 %v8633_v61  ;;  %v8716_v11 = vld [vmem:[%s11615_s4 + $0x38] sm:$0xff]  }
 0x2db   :  { %5864 = vmatpush1.bf16.msra.mxu0 %v8634_v40  ;;  %v5942_v40 = vmax.f32 %v10854_v60, 0.0 }
 0x2dc   :  { %5831 = vmatpush1.bf16.msra.mxu1 %v8631_v26  ;;  %5865 = vmatprep.subr.bf16.mxu0 %v8642_v8  ;;  %v8715_v26 = vld [vmem:[%s11615_s4 + $0x78] sm:$0xff]  }
 0x2dd   :  { %5832 = vmatprep.subr.bf16.mxu1 %v8639_v12  ;;  %v8717_v12 = vld [vmem:[%s11615_s4 + $0x70] sm:$0xff]   ;;  %v5946_v8 = vpack.c.bf16 %v5942_v40, %v5942_v40 }
 0x2df   :  { %5866 = vmatpush1.bf16.msra.mxu0 %v8640_v13  ;;  %v8748_v13 = vld [vmem:[%s11613_s0 + $0x60] ss:$0 sps:$4 sm:$0xff]  }
 0x2e0   :  { %5833 = vmatpush1.bf16.msra.mxu1 %v8637_v39  ;;  %5867 = vmatprep.subr.bf16.mxu0 %v8648_v14 }
 0x2e1   :  { %5834 = vmatprep.subr.bf16.mxu1 %v8645_v0  ;;  %v8718_v0 = vld [vmem:[%s11615_s4 + $0x30] sm:$0xff]  }
 0x2e3   :  { %5868 = vmatpush1.bf16.msra.mxu0 %v8646_v24 }
 0x2e4   :  { %5835 = vmatpush2.bf16.msra.mxu1 %v8643_v15  ;;  %5869 = vmatprep.subr.bf16.mxu0 %v8654_v43  ;;  %v8719_v15 = vld [vmem:[%s11615_s4 + $0x68] sm:$0xff]  }
 0x2e5   :  { %5836 = vmatprep.subr.bf16.mxu1 %v8651_v32  ;;  %v8720_v32 = vld [vmem:[%s11615_s4 + $0x28] sm:$0xff]  }
 0x2e7   :  { %5870 = vmatpush1.bf16.msra.mxu0 %v8652_v18  ;;  %v8731_v18 = vld [vmem:[%s11615_s4 + $0xf8] sm:$0xff]  }
 0x2e8   :  { %5837 = vmatpush2.bf16.msra.mxu1 %v8649_v9  ;;  %5871 = vmatprep.subr.bf16.mxu0 %v8660_v21  ;;  %v8721_v9 = vld [vmem:[%s11615_s4 + $0x60] sm:$0xff]  }
 0x2e9   :  { %5838 = vmatprep.subr.bf16.mxu1 %v8657_v19  ;;  %v8732_v19 = vld [vmem:[%s11615_s4 + $0xb8] sm:$0xff]   ;;  %v8722_v21 = vld [vmem:[%s11615_s4 + $0x20] sm:$0xff]  }
 0x2eb   :  { %5872 = vmatpush1.bf16.msra.mxu0 %v8658_v27  ;;  %v8724_v27 = vld [vmem:[%s11615_s4 + $0x18] sm:$0xff]  }
 0x2ec   :  { %5839 = vmatpush2.bf16.msra.mxu1 %v8655_v6  ;;  %5873 = vmatprep.subr.bf16.mxu0 %v8666_v28  ;;  %v8723_v6 = vld [vmem:[%s11615_s4 + $0x58] sm:$0xff]   ;;  %v8726_v28 = vld [vmem:[%s11615_s4 + $0x10] sm:$0xff]  }
 0x2ed   :  { %5840 = vmatprep.subr.bf16.mxu1 %v8663_v54  ;;  %v8725_v54 = vld [vmem:[%s11615_s4 + $0x50] sm:$0xff]  }
 0x2ef   :  { %5874 = vmatpush1.bf16.msra.mxu0 %v8664_v29  ;;  %v8728_v29 = vld [vmem:[%s11615_s4 + $0x8] sm:$0xff]  }
 0x2f0   :  { %5841 = vmatpush2.bf16.msra.mxu1 %v8661_v20  ;;  %5875 = vmatprep.subr.bf16.mxu0 %v8672_v34  ;;  %v8727_v20 = vld [vmem:[%s11615_s4 + $0x48] sm:$0xff]   ;;  %v8730_v34 = vld [vmem:[%s11615_s4] sm:$0xff]  }
 0x2f1   :  { %5842 = vmatprep.subr.bf16.mxu1 %v8669_v31  ;;  %v8729_v31 = vld [vmem:[%s11615_s4 + $0x40] sm:$0xff]  }
 0x2f3   :  { %5876 = vmatpush2.bf16.msra.mxu0 %v8670_v17 }
 0x2f4   :  { %5843 = vmatpush2.bf16.msra.mxu1 %v8667_v33  ;;  %5877 = vmatprep.subr.bf16.mxu0 %v8678_v36  ;;  %v5941_v33 = vmax.f32 %v10840_v16, 0.0  ;;  %v8734_v36 = vld [vmem:[%s11615_s4 + $0xb0] sm:$0xff]   ;;  %v8735_v16 = vld [vmem:[%s11615_s4 + $0xe8] sm:$0xff]  }
 0x2f5   :  { %5844 = vmatprep.subr.bf16.mxu1 %v8675_v30  ;;  %v8733_v30 = vld [vmem:[%s11615_s4 + $0xf0] sm:$0xff]  }
 0x2f6   :  { %v5945_v17 = vpack.c.bf16 %v5941_v33, %v5941_v33 }
 0x2f7   :  { %5878 = vmatpush2.bf16.msra.mxu0 %v8676_v25 }
 0x2f8   :  { %5845 = vmatpush2.bf16.msra.mxu1 %v8673_v41  ;;  %5879 = vmatprep.subr.bf16.mxu0 %v8684_v38 }
 0x2f9   :  { %5846 = vmatprep.subr.bf16.mxu1 %v8681_v22 }
 0x2fb   :  { %5880 = vmatpush2.bf16.msra.mxu0 %v8682_v63 }
 0x2fc   :  { %5847 = vmatpush2.bf16.msra.mxu1 %v8679_v47  ;;  %5881 = vmatprep.subr.bf16.mxu0 %v8690_v23  ;;  %v8736_v47 = vld [vmem:[%s11615_s4 + $0xa8] sm:$0xff]   ;;  %v8737_v23 = vld [vmem:[%s11615_s4 + $0xe0] sm:$0xff]  }
 0x2fd   :  { %5848 = vmatprep.subr.bf16.mxu1 %v8687_v51 }
 0x2ff   :  { %5882 = vmatpush2.bf16.msra.mxu0 %v8688_v45  ;;  %v8739_v45 = vld [vmem:[%s11615_s4 + $0xd8] sm:$0xff]  }
 0x300   :  { %5849 = vmatpush2.bf16.msra.mxu1 %v8685_v1  ;;  %5883 = vmatprep.subr.bf16.mxu0 %v8693_v46  ;;  %v8738_v1 = vld [vmem:[%s11615_s4 + $0xa0] sm:$0xff]   ;;  %v8740_v46 = vld [vmem:[%s11615_s4 + $0x98] sm:$0xff]  }
 0x301   :  { %5908 = vmatprep.subr.bf16.mxu1 %v8696_v44  ;;  %v8741_v44 = vld [vmem:[%s11615_s4 + $0xd0] sm:$0xff]  }
 0x303   :  { %v5606_v7 = vpop.f32.mrf.mxu1  ;;  %5851 = vmatmul.mubr.bf16.vlgmr.msra.gmra.mxu1 %v10164_v2  ;;  %5884 = vmatpush2.bf16.msra.mxu0 %v8691_v5  ;;  %v8708_v2 = vld [vmem:[%s11612_s2 + $0x182c] ss:$16 sps:$4 sm:$0xff]   ;;  %v8742_v5 = vld [vmem:[%s11615_s4 + $0x90] sm:$0xff]  }
 0x304   :  { %v5607_v10 = vadd.f32 %v5606_v7, %v11247_v56  ;;  %5909 = vmatpush1.bf16.msra.mxu1 %v8694_v48  ;;  %5885 = vmatprep.subr.bf16.mxu0 %v8699_v49  ;;  %v8743_v7 = vld [vmem:[%s11615_s4 + $0xc8] sm:$0xff]  }
 0x305   :  { %v5608_v52 = vpop.f32.mrf.mxu1  ;;  %5910 = vmatprep.subr.bf16.mxu1 %v8702_v50  ;;  %5932 = vmatprep.mubr.bf16.mxu1 %v8749_v53  ;;  %v8714_v53 = vld [vmem:[%s11612_s2 + $0x180c] ss:$16 sps:$4 sm:$0xff]  }
 0x306   :  { %v5609_v56 = vadd.f32 %v5608_v52, %v11261_v62  ;;  %v8709_v62 = vld [vmem:[%s11612_s2 + $0x1708] ss:$16 sps:$4 sm:$0xff]  }
 0x307   :  { %v5610_v37 = vpop.f32.mrf.mxu1  ;;  %5886 = vmatpush2.bf16.msra.mxu0 %v8697_v42  ;;  %v8744_v42 = vld [vmem:[%s11615_s4 + $0x88] sm:$0xff]  }
 0x308   :  { %5911 = vmatpush1.bf16.msra.mxu1 %v8700_v59  ;;  %5887 = vmatprep.subr.bf16.mxu0 %v8705_v55  ;;  %v8745_v55 = vld [vmem:[%s11615_s4 + $0xc0] sm:$0xff]   ;;  %v6295_v37 = vld [vmem:[%s11616_s6 + $0x18] sm:$0xff] }
 0x309   :  { %v5611_v61 = vpop.f32.mrf.mxu1  ;;  %5912 = vmatprep.subr.bf16.mxu1 %v8708_v2  ;;  %v8746_v2 = vld [vmem:[%s11615_s4 + $0x80] sm:$0xff]  }
 0x30b   :  { %5888 = vmatpush2.bf16.msra.mxu0 %v8703_v57 }
 0x30c   :  { %5913 = vmatpush1.bf16.msra.mxu1 %v8706_v58  ;;  %5889 = vmatprep.subr.bf16.mxu0 %v8711_v4 }
 0x30d   :  { %5914 = vmatprep.subr.bf16.mxu1 %v8714_v53 }
 0x30f   :  { %5890 = vmatpush2.bf16.msra.mxu0 %v8709_v62 }
 0x310   :  { %5915 = vmatpush1.bf16.msra.mxu1 %v8712_v35  ;;  %7418 = vmatprep.subr.bf16.mxu0 %v8715_v26 }
 0x311   :  { %7440 = vmatprep.subr.bf16.mxu1 %v8731_v18 }
 0x312   :  { %v5647_v39 = vpop.f32.mrf.mxu0  ;;  %5892 = vmatmul.mubr.bf16.vlgmr.msra.gmra.mxu0 %v10168_v3 }
 0x313   :  { %7377 = vmatmul.mubr.msk.bf16.vlgmr.msra.gmra.mxu1 %vm4871_vm0, %v8748_v13  ;;  %v5648_v60 = vadd.f32 %v5647_v39, %v5607_v10  ;;  %7419 = vmatpush3.bf16.msra.mxu0 %v8716_v11 }
 0x314   :  { %6244 = vmatprep.mubr.bf16.mxu0 %v5946_v8  ;;  %v5649_v14 = vpop.f32.mrf.mxu0  ;;  %7420 = vmatprep.subr.bf16.mxu0 %v8717_v12 }
 0x315   :  { %v5650_v3 = vadd.f32 %v5649_v14, %v5609_v56  ;;  %7441 = vmatpush3.bf16.msra.mxu1 %v8732_v19  ;;  %v8750_v56 = vmov 0.0  }
 0x316   :  { %v5651_v24 = vpop.f32.mrf.mxu0  ;;  %7442 = vmatprep.subr.bf16.mxu1 %v8733_v30 }
 0x317   :  { %7421 = vmatpush3.bf16.msra.mxu0 %v8718_v0 }
 0x318   :  { %v5652_v43 = vpop.f32.mrf.mxu0  ;;  %7422 = vmatprep.subr.bf16.mxu0 %v8719_v15 }
 0x319   :  { %7443 = vmatpush3.bf16.msra.mxu1 %v8734_v36 }
 0x31a   :  { %7444 = vmatprep.subr.bf16.mxu1 %v8735_v16  ;;  %v6292_v16 = vld [vmem:[%s11616_s6] sm:$0xff] }
 0x31b   :  { %7423 = vmatpush3.bf16.msra.mxu0 %v8720_v32 }
 0x31c   :  { %7424 = vmatprep.subr.bf16.mxu0 %v8721_v9 }
 0x31d   :  { %7445 = vmatpush3.bf16.msra.mxu1 %v8736_v47  ;;  %v6396_v47 = vld [vmem:[%s11618_s9 + $0x18] sm:$0xff] }
 0x31e   :  { %7446 = vmatprep.subr.bf16.mxu1 %v8737_v23 }
 0x31f   :  { %7425 = vmatpush3.bf16.msra.mxu0 %v8722_v21 }
 0x320   :  { %7426 = vmatprep.subr.bf16.mxu0 %v8723_v6 }
 0x321   :  { %7447 = vmatpush3.bf16.msra.mxu1 %v8738_v1 }
 0x322   :  { %7448 = vmatprep.subr.bf16.mxu1 %v8739_v45 }
 0x323   :  { %7427 = vmatpush3.bf16.msra.mxu0 %v8724_v27 }
 0x324   :  { %7428 = vmatprep.subr.bf16.mxu0 %v8725_v54 }
 0x325   :  { %7449 = vmatpush3.bf16.msra.mxu1 %v8740_v46 }
 0x326   :  { %7450 = vmatprep.subr.bf16.mxu1 %v8741_v44 }
 0x327   :  { %7429 = vmatpush3.bf16.msra.mxu0 %v8726_v28 }
 0x328   :  { %7430 = vmatprep.subr.bf16.mxu0 %v8727_v20 }
 0x329   :  { %7451 = vmatpush3.bf16.msra.mxu1 %v8742_v5 }
 0x32a   :  { %7452 = vmatprep.subr.bf16.mxu1 %v8743_v7  ;;  %v6481_v7 = vld [vmem:[%s11620_s11 + $0x18] sm:$0xff] }
 0x32b   :  { %7431 = vmatpush3.bf16.msra.mxu0 %v8728_v29 }
 0x32c   :  { %7432 = vmatprep.subr.bf16.mxu0 %v8729_v31 }
 0x32d   :  { %7453 = vmatpush3.bf16.msra.mxu1 %v8744_v42 }
 0x32e   :  { %7454 = vmatprep.subr.bf16.mxu1 %v8745_v55  ;;  %v7413_v55 = vld [vmem:[%s11622_s8] ss:$0 sm:$0xff] }
 0x32f   :  { %7433 = vmatpush3.bf16.msra.mxu0 %v8730_v34 }
 0x330   :  { %7477 = vmatprep.subr.mxu0 %v8750_v56 }
 0x331   :  { %7455 = vmatpush3.bf16.msra.mxu1 %v8746_v2 }
 0x332   :  { %6245 = vmatmul.mubr.bf16.vlgmr.msra.gmra.mxu0 %v5945_v17  ;;  %7488 = vmatprep.subr.mxu1 %v8750_v56 }
 0x333   :  { %7478 = vmatpush3.msra.mxu0 %v6295_v37  ;;  %7485 = vmatprep.mubr.msk.f32.mxu0 %vm8751_vm1, %v8750_v56 }
 0x334   :  { %7479 = vmatprep.subr.mxu0 %v8750_v56 }
 0x343   :  { %v5688_v41 = vpop.f32.mrf.mxu1 }
 0x344   :  { %v5689_v25 = vadd.f32 %v5688_v41, %v5648_v60 }
 0x345   :  { %v5690_v22 = vpop.f32.mrf.mxu1 }
 0x346   :  { %v5691_v38 = vadd.f32 %v5690_v22, %v5650_v3  ;;  %v6293_v22 = vld [vmem:[%s11616_s6 + $0x8] sm:$0xff] }
 0x347   :  { %v5692_v63 = vpop.f32.mrf.mxu1 }
 0x348   :  { %v7378_v63 = vld [vmem:[%s11619_s5] ss:$0 sm:$0xff] }
 0x349   :  { %v5693_v51 = vpop.f32.mrf.mxu1 }
 0x352   :  { %v5729_v48 = vpop.f32.mrf.mxu0 }
 0x353   :  { %v5730_v49 = vadd.f32 %v5729_v48, %v5689_v25  ;;  %v6294_v25 = vld [vmem:[%s11616_s6 + $0x10] sm:$0xff] }
 0x354   :  { %v5731_v50 = vpop.f32.mrf.mxu0  ;;  %7480 = vmatpush3.msra.mxu0 %v6294_v25  ;;  %v6395_v48 = vld [vmem:[%s11618_s9 + $0x10] sm:$0xff] }
 0x355   :  { %v5732_v10 = vadd.f32 %v5731_v50, %v5691_v38  ;;  %7481 = vmatprep.subr.mxu0 %v8750_v56  ;;  %v6296_v38 = vld [vmem:[%s11617_s1] sm:$0xff] }
 0x356   :  { %v5733_v59 = vpop.f32.mrf.mxu0  ;;  %7482 = vmatpush3.msra.mxu0 %v6293_v22  ;;  %6300 = vperm.xlu0 %7513, %v6296_v38   ;;  %v6393_v50 = vld [vmem:[%s11618_s9] sm:$0xff] }
 0x357   :  { %7483 = vmatprep.subr.mxu0 %v8750_v56 }
 0x358   :  { %v5734_v52 = vpop.f32.mrf.mxu0  ;;  %7484 = vmatpush3.msra.mxu0 %v6292_v16 }
 0x359   :  { %7499 = vmatprep.subr.mxu0 %v8750_v56 }
 0x383   :  { %v5770_v57 = vpop.f32.mrf.mxu1 }
 0x384   :  { %v5771_v58 = vadd.f32 %v5770_v57, %v5730_v49  ;;  %v6394_v49 = vld [vmem:[%s11618_s9 + $0x8] sm:$0xff] }
 0x385   :  { %v5772_v61 = vpop.f32.mrf.mxu1 }
 0x386   :  { %v5773_v4 = vadd.f32 %v5772_v61, %v5732_v10  ;;  %v7411_v10 = vld [vmem:[%s11621_s7] ss:$0 sm:$0xff]  ;;  %v6480_v61 = vld [vmem:[%s11620_s11 + $0x10] sm:$0xff] }
 0x387   :  { %v5774_v53 = vpop.f32.mrf.mxu1 }
 0x388   :  { %v6478_v53 = vld [vmem:[%s11620_s11] sm:$0xff] }
 0x389   :  { %v5775_v62 = vpop.f32.mrf.mxu1 }
 0x38a   :  { %v7414_v62 = vld [vmem:[%s11623_s10] ss:$0 sm:$0xff] }
 0x392   :  { %v5811_v35 = vpop.f32.mrf.mxu0 }
 0x393   :  { %v5812_v60 = vadd.f32 %v5811_v35, %v5771_v58 }
 0x394   :  { %v5813_v26 = vpop.f32.mrf.mxu0 }
 0x395   :  { %v5814_v0 = vadd.f32 %v5813_v26, %v5773_v4  ;;  %v6479_v4 = vld [vmem:[%s11620_s11 + $0x8] sm:$0xff] }
 0x396   :  { %v5815_v40 = vpop.f32.mrf.mxu0 }
 0x398   :  { %v5816_v11 = vpop.f32.mrf.mxu0 }
 0x3c3   :  { %v5852_v12 = vpop.f32.mrf.mxu1 }
 0x3c4   :  { %v5853_v14 = vadd.f32 %v5852_v12, %v5812_v60  ;;  %v7416_v12 = vld [vmem:[%s11624_s12] ss:$0 sm:$0xff] }
 0x3c5   :  { %v5854_v8 = vpop.f32.mrf.mxu1 }
 0x3c6   :  { %v5855_v24 = vadd.f32 %v5854_v8, %v5814_v0 }
 0x3c7   :  { %v5856_v39 = vpop.f32.mrf.mxu1 }
 0x3c9   :  { %v5857_v13 = vpop.f32.mrf.mxu1 }
 0x3d1   :  { %v6301_v42 = vpop.permute.xlu0 %6300 }
 0x3d2   :  { %v5893_v15 = vpop.f32.mrf.mxu0  ;;  %v6309_v59 = vmul.f32 %v7411_v10, %v6301_v42 }
 0x3d3   :  { %v5934_v3 = vpop.f32.mrf.mxu1  ;;  %v5894_v32 = vadd.f32 %v5893_v15, %v5853_v14 }
 0x3d4   :  { %v5895_v43 = vpop.f32.mrf.mxu0 }
 0x3d5   :  { %v5936_v9 = vpop.f32.mrf.mxu1  ;;  %v5935_v18 = vadd.f32 %v5934_v3, %v5894_v32  ;;  %v5896_v19 = vadd.f32 %v5895_v43, %v5855_v24 }
 0x3d6   :  { %v5897_v21 = vpop.f32.mrf.mxu0 }
 0x3d7   :  { %v5938_v6 = vpop.f32.mrf.mxu1  ;;  %v5937_v27 = vadd.f32 %v5936_v9, %v5896_v19  ;;  %v5943_v54 = vmax.f32 %v5935_v18, 0.0 }
 0x3d8   :  { %v5898_v28 = vpop.f32.mrf.mxu0 }
 0x3d9   :  { %v5939_v20 = vpop.f32.mrf.mxu1  ;;  %v5944_v29 = vmax.f32 %v5937_v27, 0.0  ;;  %v5947_v34 = vpack.c.bf16 %v5943_v54, %v5943_v54 }
 0x3db   :  { %v5948_v31 = vpack.c.bf16 %v5944_v29, %v5944_v29 }
 0x3dd   :  { %6284 = vmatprep.mubr.bf16.mxu1 %v5948_v31 }
 0x3de   :  { %6285 = vmatmul.mubr.bf16.vlgmr.msra.gmra.mxu1 %v5947_v34 }
 0x3df   :  { %7496 = vmatprep.mubr.msk.f32.mxu1 %vm8751_vm1, %v8750_v56  ;;  %7489 = vmatpush3.msra.mxu1 %v6396_v47 }
 0x3e0   :  { %7490 = vmatprep.subr.mxu1 %v8750_v56 }
 0x3e1   :  { %7491 = vmatpush3.msra.mxu1 %v6395_v48 }
 0x3e2   :  { %7492 = vmatprep.subr.mxu1 %v8750_v56 }
 0x3e3   :  { %7493 = vmatpush3.msra.mxu1 %v6394_v49 }
 0x3e4   :  { %7494 = vmatprep.subr.mxu1 %v8750_v56 }
 0x3e5   :  { %7495 = vmatpush3.msra.mxu1 %v6393_v50 }
 0x3f2   :  { %v7434_v33 = vpop.f32.mrf.mxu0 }
 0x3f4   :  { %v7435_v17 = vpop.f32.mrf.mxu0 }
 0x3f5   :  { %v7436_v30 = vadd.f32 %v7435_v17, %v7434_v33 }
 0x3f6   :  { %v7437_v36 = vpop.f32.mrf.mxu0 }
 0x3f7   :  { %v6247_v1 = vadd.f32 %v7436_v30, %v7378_v63 }
 0x3f8   :  { %v7438_v41 = vpop.f32.mrf.mxu0 }
 0x49e   :  { %v7456_v51 = vpop.f32.mrf.mxu1 }
 0x4a0   :  { %v7457_v23 = vpop.f32.mrf.mxu1 }
 0x4a1   :  { %v7458_v45 = vadd.f32 %v7457_v23, %v7456_v51 }
 0x4a2   :  { %v7459_v46 = vpop.f32.mrf.mxu1 }
 0x4a3   :  { %v6287_v44 = vadd.f32 %v7458_v45, %v6247_v1 }
 0x4a4   :  { %v7460_v5 = vpop.f32.mrf.mxu1 }
 0x4a5   :  { %7486 = vmatmul.mubr.msk.f32.vlgmr.msra.gmra.mxu0 %vm6310_vm2, %v6287_v44 }
 0x4a6   :  { %7507 = vmatprep.mubr.msk.f32.mxu0 %vm8751_vm1, %v8750_v56  ;;  %7500 = vmatpush3.msra.mxu0 %v6481_v7 }
 0x4a7   :  { %7501 = vmatprep.subr.mxu0 %v8750_v56 }
 0x4a8   :  { %7502 = vmatpush3.msra.mxu0 %v6480_v61 }
 0x4a9   :  { %7503 = vmatprep.subr.mxu0 %v8750_v56 }
 0x4aa   :  { %7504 = vmatpush3.msra.mxu0 %v6479_v4 }
 0x4ab   :  { %7505 = vmatprep.subr.mxu0 %v8750_v56 }
 0x4ac   :  { %7506 = vmatpush3.msra.mxu0 %v6478_v53 }
 0x565   :  { %v6380_v52 = vpop.f32.mrf.mxu0 }
 0x566   :  { %v6381_v2 = vadd.f32 %v6380_v52, %v6309_v59 }
 0x567   :  { %v7487_v37 = vpop.f32.mrf.mxu0 }
 0x568   :  { %v6391_v57 = vadd.f32 %v7413_v55, %v6381_v2 }
 0x56a   :  { %v6392_v58 = vmax.f32 %v6391_v57, 0.0 }
 0x56c   :  { %7497 = vmatmul.mubr.msk.f32.vlgmr.msra.gmra.mxu1 %vm6310_vm2, %v6392_v58 }
 0x62c   :  { %v6473_v35 = vpop.f32.mrf.mxu1 }
 0x62d   :  { %v6474_v26 = vadd.f32 %v7414_v62, %v6473_v35 }
 0x62e   :  { %v7498_v40 = vpop.f32.mrf.mxu1 }
 0x62f   :  { %v6477_v11 = vmax.f32 %v6474_v26, 0.0 }
 0x631   :  { %7508 = vmatmul.mubr.msk.f32.vlgmr.msra.gmra.mxu0 %vm6310_vm2, %v6477_v11 }
 0x6f1   :  { %v6558_v56 = vpop.f32.mrf.mxu0 }
 0x6f2   :  { %v6559_v8 = vadd.f32 %v7416_v12, %v6558_v56 }
 0x6f3   :  { %v7509_v39 = vpop.f32.mrf.mxu0 }
 0x6f4   :  { %6562 = vst.msk [vmem:[%s11625_s13] sm:$0xff] %vm6310_vm2, %v6559_v8 }

</bundles_post_ra>
